<compile_context>
chip_gen: v7x
topology: tpu7x:2x2x1
jax: 0.10.0
libtpu: 0.0.40
codegen_flags: <defaults>
</compile_context>

<pallas_src>
import jax
import jax.numpy as jnp
import numpy as np
from jax.experimental import pallas as pl
from jax.experimental.pallas import tpu as pltpu


# --------------------------------------------------------------------------
# Fused whole-network kernel
# --------------------------------------------------------------------------

def _make_uorb_kernel(names):
    """refs = (x_ref, *weight_refs, out_ref); weights looked up by name."""

    def conv3(x, w):
        # x: (H, WC) f32 activation, w: (3*WC, N) bf16 stacked block-Toeplitz.
        # One MXU matmul with K = 3*WC; vertical zero padding comes from the
        # zero rows of the shifted LHS blocks, horizontal padding is baked in.
        H, WC = x.shape
        xb = x.astype(jnp.bfloat16)                          # single cast/conv
        zrow = jnp.zeros((1, WC), jnp.bfloat16)
        up = jnp.concatenate([zrow, xb[:H - 1]], axis=0)     # x[h-1]
        dn = jnp.concatenate([xb[1:], zrow], axis=0)         # x[h+1]
        lhs = jnp.concatenate([up, xb, dn], axis=1)          # (H, 3*WC)
        return jnp.dot(lhs, w, preferred_element_type=jnp.float32)

    def kernel(*refs):
        x_ref = refs[0]
        out_ref = refs[-1]
        p = dict(zip(names, refs[1:-1]))

        def orb(x, tag):
            # ORB(num_cab=1): conv+b -> PReLU -> conv+b -> CA -> +x -> conv -> +x
            wconv = p[tag + "_w"]        # (3, 3*WC, WC) bf16
            bias = p[tag + "_b"]         # (4, WC) f32: b1, b2, ca_b2, alpha
            caw = p[tag + "_caw"]        # (2, Cr, WC) f32
            cab1 = p[tag + "_cab1"]      # (Cr, 1) f32
            t = conv3(x, wconv[0]) + bias[0:1, :]
            t = jnp.where(t >= 0.0, t, bias[3:4, :] * t)      # PReLU (shared alpha)
            t2 = conv3(t, wconv[1]) + bias[1:2, :]
            # channel attention (global avg pool folded into widened fc1)
            colsum = jnp.sum(t2, axis=0, keepdims=True)       # (1, WC)
            z = jnp.sum(caw[0] * colsum, axis=1, keepdims=True) + cab1[...]
            z = jnp.maximum(z, 0.0)                           # (Cr, 1)
            s = jax.nn.sigmoid(jnp.sum(caw[1] * z, axis=0, keepdims=True)
                               + bias[2:3, :])                # (1, WC)
            cab = t2 * s + x                                  # CAB residual
            return conv3(cab, wconv[2]) + x                   # ORB residual

        def resample(x, tag):
            # Downsample: conv(C->C/2) + PixelUnshuffle(2)
            # Upsample:   conv(C->2C)  + PixelShuffle(2)
            # The lane part of the (un)shuffle is folded into the conv weight:
            # output columns [0:half] hold the dy=0 rows and [half:] the dy=1
            # rows, already in the next level's canonical lane layout.  The
            # row pairing / interleave is two tiny 0/1 row matmuls.
            y = conv3(x, p[tag + "_w"][...]).astype(jnp.bfloat16)   # (Hin, 2*WC)
            half = y.shape[1] // 2
            r = p[tag + "_r"]                                       # (2, Hout, Hin)
            return (jnp.dot(r[0], y[:, :half],
                            preferred_element_type=jnp.float32)
                    + jnp.dot(r[1], y[:, half:],
                              preferred_element_type=jnp.float32))

        def reduce_concat(x_up, skip, tag):
            # torch.cat([up, skip], dim=1) + 1x1 reduce conv -> one K=2*WC matmul
            lhs = jnp.concatenate([x_up.astype(jnp.bfloat16),
                                   skip.astype(jnp.bfloat16)], axis=1)
            return jnp.dot(lhs, p[tag + "_wr"][...],
                           preferred_element_type=jnp.float32)

        x = x_ref[0]                                    # (H1, WC) f32
        e1 = orb(x, "enc1")
        e2 = orb(resample(e1, "down12"), "enc2")        # (H1/2, WC)
        e3 = orb(resample(e2, "down23"), "enc3")        # (H1/4, WC)
        u2 = resample(e3, "up32")                       # (H1/2, WC)
        d2 = orb(reduce_concat(u2, e2, "dec2"), "dec2")
        u1 = resample(d2, "up21")                       # (H1, WC)
        d1 = orb(reduce_concat(u1, e1, "dec1"), "dec1")
        out_ref[0] = (x + d1).astype(out_ref.dtype)

    return kernel


def uorb_forward(x, params):
    # x: (B, H, W, C) NHWC f32  (== PyTorch NCHW (B, C, H, W))
    B, H, W, C = x.shape
    WC = W * C
    names = list(params.keys())
    arrays = [params[k] for k in names]

    in_specs = [pl.BlockSpec((1, H, WC), lambda b: (b, 0, 0))]
    for a in arrays:
        # full-array resident blocks (index never changes across grid steps)
        in_specs.append(pl.BlockSpec(a.shape, lambda b, n=a.ndim: (0,) * n))

    y = pl.pallas_call(
        _make_uorb_kernel(names),
        out_shape=jax.ShapeDtypeStruct((B, H, WC), jnp.float32),
        grid=(B,),
        in_specs=in_specs,
        out_specs=pl.BlockSpec((1, H, WC), lambda b: (b, 0, 0)),
        compiler_params=pltpu.CompilerParams(
            dimension_semantics=("parallel",),      # one image per TC on v7x
            vmem_limit_bytes=16 * 1024 * 1024,      # ~2.4 MiB weights + headroom
        ),
    )(x.reshape(B, H, WC), *arrays)
    return y.reshape(B, H, W, C)


# --------------------------------------------------------------------------
# Weight construction (all Toeplitz / permutation folding done once, in numpy)
# --------------------------------------------------------------------------

def _rand(key, shape, fan_in):
    a = np.asarray(jax.random.normal(key, shape, jnp.float32))
    return (a / np.sqrt(float(fan_in))).astype(np.float32)


def _toeplitz3x3(w_raw, W_sp):
    """(3,3,Cin,Cout) conv weight -> (3*W*Cin, W*Cout) stacked block-Toeplitz.
    Row block dy multiplies x[h-1+dy]; horizontal zero padding baked in."""
    w_raw = np.asarray(w_raw, np.float32)
    _, _, Cin, Cout = w_raw.shape
    T = np.zeros((3, W_sp, Cin, W_sp, Cout), np.float32)
    for dy in range(3):
        for wo in range(W_sp):
            for dx in range(3):
                wi = wo - 1 + dx
                if 0 <= wi < W_sp:
                    T[dy, wi, :, wo, :] = w_raw[dy, dx]
    return T.reshape(3 * W_sp * Cin, W_sp * Cout)


def init_orb_params(key, prefix, H, W, C, reduction=4, reduce_in=False):
    Cr = max(C // reduction, 1)
    WC = W * C
    ks = jax.random.split(key, 6)
    w1 = _rand(ks[0], (3, 3, C, C), 9 * C)
    w2 = _rand(ks[1], (3, 3, C, C), 9 * C)
    w3 = _rand(ks[2], (3, 3, C, C), 9 * C)
    wc1 = _rand(ks[3], (Cr, C), C)
    wc2 = _rand(ks[4], (Cr, C), Cr)

    wconv = np.stack([_toeplitz3x3(w, W) for w in (w1, w2, w3)])   # (3, 3WC, WC)
    biases = np.stack([
        np.tile(np.full((C,), 0.01, np.float32), W),      # b1
        np.tile(np.full((C,), -0.01, np.float32), W),     # b2
        np.zeros((WC,), np.float32),                      # ca fc2 bias
        np.full((WC,), 0.25, np.float32),                 # PReLU alpha (nn.PReLU() default)
    ])                                                     # (4, WC)
    caw = np.stack([np.tile(wc1, (1, W)) / float(H * W),   # avg-pool folded into fc1
                    np.tile(wc2, (1, W))])                 # (2, Cr, WC)
    p = {
        prefix + "_w": jnp.asarray(wconv, jnp.bfloat16),
        prefix + "_b": jnp.asarray(biases, jnp.float32),
        prefix + "_caw": jnp.asarray(caw, jnp.float32),
        prefix + "_cab1": jnp.zeros((Cr, 1), jnp.float32),
    }
    if reduce_in:
        # fused concat([up, skip]) + 1x1 reduce conv -> (2*WC, WC) block-diag
        wr_raw = _rand(ks[5], (2 * C, C), 2 * C)
        eye = np.eye(W, dtype=np.float32)
        wr = np.concatenate([np.kron(eye, wr_raw[:C]),     # acts on upsampled path
                             np.kron(eye, wr_raw[C:])],    # acts on skip path
                            axis=0)
        p[prefix + "_wr"] = jnp.asarray(wr, jnp.bfloat16)
    return p


def init_down_params(key, prefix, H, W, C):
    # Downsample(C): Conv2d(C, C//2, 3, bias=False) -> PixelUnshuffle(2)
    Cd = C // 2
    Cn = 4 * Cd                        # channels at the next (coarser) level
    Wn, Hn = W // 2, H // 2
    T = _toeplitz3x3(_rand(key, (3, 3, C, Cd), 9 * C), W)          # (3WC, W*Cd)
    # lane placement of the unshuffle for each output row parity dy (exact 0/1)
    P = np.zeros((2, W * Cd, Wn * Cn), np.float32)
    for w1 in range(W):
        for c in range(Cd):
            w2, dx = w1 // 2, w1 % 2
            for dy in range(2):
                P[dy, w1 * Cd + c, w2 * Cn + c * 4 + dy * 2 + dx] = 1.0
    wdown = np.concatenate([T @ P[0], T @ P[1]], axis=1)           # (3WC, 2*Wn*Cn)
    rows = np.zeros((2, Hn, H), np.float32)                        # even/odd row pick
    for h2 in range(Hn):
        rows[0, h2, 2 * h2] = 1.0
        rows[1, h2, 2 * h2 + 1] = 1.0
    return {prefix + "_w": jnp.asarray(wdown, jnp.bfloat16),
            prefix + "_r": jnp.asarray(rows, jnp.bfloat16)}


def init_up_params(key, prefix, H, W, C):
    # Upsample(C): Conv2d(C, 2C, 3, bias=False) -> PixelShuffle(2)
    Cu = 2 * C
    Cn = C // 2                        # channels at the next (finer) level
    Wn, Hn = 2 * W, 2 * H
    T = _toeplitz3x3(_rand(key, (3, 3, C, Cu), 9 * C), W)          # (3WC, W*Cu)
    Q = np.zeros((2, W * Cu, Wn * Cn), np.float32)
    for w3 in range(W):
        for c in range(Cn):
            for dy in range(2):
                for dx in range(2):
                    Q[dy, w3 * Cu + c * 4 + dy * 2 + dx,
                      (2 * w3 + dx) * Cn + c] = 1.0
    wup = np.concatenate([T @ Q[0], T @ Q[1]], axis=1)             # (3WC, 2*Wn*Cn)
    rows = np.zeros((2, Hn, H), np.float32)                        # even/odd row place
    for h3 in range(H):
        rows[0, 2 * h3, h3] = 1.0
        rows[1, 2 * h3 + 1, h3] = 1.0
    return {prefix + "_w": jnp.asarray(wup, jnp.bfloat16),
            prefix + "_r": jnp.asarray(rows, jnp.bfloat16)}


def init_uorb_params(key, dim, H, W):
    ks = jax.random.split(key, 9)
    p = {}
    p.update(init_orb_params(ks[0], "enc1", H, W, dim))
    p.update(init_down_params(ks[1], "down12", H, W, dim))
    p.update(init_orb_params(ks[2], "enc2", H // 2, W // 2, 2 * dim))
    p.update(init_down_params(ks[3], "down23", H // 2, W // 2, 2 * dim))
    p.update(init_orb_params(ks[4], "enc3", H // 4, W // 4, 4 * dim))
    p.update(init_up_params(ks[5], "up32", H // 4, W // 4, 4 * dim))
    p.update(init_orb_params(ks[6], "dec2", H // 2, W // 2, 2 * dim, reduce_in=True))
    p.update(init_up_params(ks[7], "up21", H // 2, W // 2, 2 * dim))
    p.update(init_orb_params(ks[8], "dec1", H, W, dim, reduce_in=True))
    return p


# --------------------------------------------------------------------------

if __name__ == "__main__":
    B, H, W, dim = 2, 16, 16, 8   # == PyTorch UORB(dim=8) input (2, 8, 16, 16) NCHW
    key = jax.random.PRNGKey(0)
    kx, kp = jax.random.split(key)
    x = jax.random.normal(kx, (B, H, W, dim), jnp.float32)
    params = init_uorb_params(kp, dim, H, W)

    out = jax.jit(uorb_forward)(x, params)
    out = jax.block_until_ready(out)
    assert out.shape == (B, H, W, dim) and out.dtype == jnp.float32
    assert bool(jnp.all(jnp.isfinite(out)))
    print("KERNEL_OK")
</pallas_src>

<mosaic_0001>
module attributes {stable_mosaic.version = 11 : i64} {
  func.func @kernel(%arg0: i32, %arg1: memref<1x16x128xf32, #tpu.memory_space<vmem>>, %arg2: memref<4x128xf32, #tpu.memory_space<vmem>>, %arg3: memref<2x1xf32, #tpu.memory_space<vmem>>, %arg4: memref<2x2x128xf32, #tpu.memory_space<vmem>>, %arg5: memref<3x384x128xbf16, #tpu.memory_space<vmem>>, %arg6: memref<256x128xbf16, #tpu.memory_space<vmem>>, %arg7: memref<4x128xf32, #tpu.memory_space<vmem>>, %arg8: memref<4x1xf32, #tpu.memory_space<vmem>>, %arg9: memref<2x4x128xf32, #tpu.memory_space<vmem>>, %arg10: memref<3x384x128xbf16, #tpu.memory_space<vmem>>, %arg11: memref<256x128xbf16, #tpu.memory_space<vmem>>, %arg12: memref<2x8x16xbf16, #tpu.memory_space<vmem>>, %arg13: memref<384x256xbf16, #tpu.memory_space<vmem>>, %arg14: memref<2x4x8xbf16, #tpu.memory_space<vmem>>, %arg15: memref<384x256xbf16, #tpu.memory_space<vmem>>, %arg16: memref<4x128xf32, #tpu.memory_space<vmem>>, %arg17: memref<2x1xf32, #tpu.memory_space<vmem>>, %arg18: memref<2x2x128xf32, #tpu.memory_space<vmem>>, %arg19: memref<3x384x128xbf16, #tpu.memory_space<vmem>>, %arg20: memref<4x128xf32, #tpu.memory_space<vmem>>, %arg21: memref<4x1xf32, #tpu.memory_space<vmem>>, %arg22: memref<2x4x128xf32, #tpu.memory_space<vmem>>, %arg23: memref<3x384x128xbf16, #tpu.memory_space<vmem>>, %arg24: memref<4x128xf32, #tpu.memory_space<vmem>>, %arg25: memref<8x1xf32, #tpu.memory_space<vmem>>, %arg26: memref<2x8x128xf32, #tpu.memory_space<vmem>>, %arg27: memref<3x384x128xbf16, #tpu.memory_space<vmem>>, %arg28: memref<2x16x8xbf16, #tpu.memory_space<vmem>>, %arg29: memref<384x256xbf16, #tpu.memory_space<vmem>>, %arg30: memref<2x8x4xbf16, #tpu.memory_space<vmem>>, %arg31: memref<384x256xbf16, #tpu.memory_space<vmem>>, %arg32: memref<1x16x128xf32, #tpu.memory_space<vmem>>) attributes {dimension_semantics = [#tpu.dimension_semantics<parallel>], iteration_bounds = array<i64: 2>, scalar_prefetch = 0 : i64, scratch_operands = 0 : i64, tpu.core_type = #tpu.core_type<tc>, window_params = [{transform_indices = @transform_0, window_bounds = array<i64: 1, 16, 128>}, {pipeline_mode = #tpu.pipeline_mode<synchronous>, transform_indices = @transform_1, window_bounds = array<i64: 4, 128>}, {pipeline_mode = #tpu.pipeline_mode<synchronous>, transform_indices = @transform_2, window_bounds = array<i64: 2, 1>}, {pipeline_mode = #tpu.pipeline_mode<synchronous>, transform_indices = @transform_3, window_bounds = array<i64: 2, 2, 128>}, {pipeline_mode = #tpu.pipeline_mode<synchronous>, transform_indices = @transform_4, window_bounds = array<i64: 3, 384, 128>}, {pipeline_mode = #tpu.pipeline_mode<synchronous>, transform_indices = @transform_5, window_bounds = array<i64: 256, 128>}, {pipeline_mode = #tpu.pipeline_mode<synchronous>, transform_indices = @transform_6, window_bounds = array<i64: 4, 128>}, {pipeline_mode = #tpu.pipeline_mode<synchronous>, transform_indices = @transform_7, window_bounds = array<i64: 4, 1>}, {pipeline_mode = #tpu.pipeline_mode<synchronous>, transform_indices = @transform_8, window_bounds = array<i64: 2, 4, 128>}, {pipeline_mode = #tpu.pipeline_mode<synchronous>, transform_indices = @transform_9, window_bounds = array<i64: 3, 384, 128>}, {pipeline_mode = #tpu.pipeline_mode<synchronous>, transform_indices = @transform_10, window_bounds = array<i64: 256, 128>}, {pipeline_mode = #tpu.pipeline_mode<synchronous>, transform_indices = @transform_11, window_bounds = array<i64: 2, 8, 16>}, {pipeline_mode = #tpu.pipeline_mode<synchronous>, transform_indices = @transform_12, window_bounds = array<i64: 384, 256>}, {pipeline_mode = #tpu.pipeline_mode<synchronous>, transform_indices = @transform_13, window_bounds = array<i64: 2, 4, 8>}, {pipeline_mode = #tpu.pipeline_mode<synchronous>, transform_indices = @transform_14, window_bounds = array<i64: 384, 256>}, {pipeline_mode = #tpu.pipeline_mode<synchronous>, transform_indices = @transform_15, window_bounds = array<i64: 4, 128>}, {pipeline_mode = #tpu.pipeline_mode<synchronous>, transform_indices = @transform_16, window_bounds = array<i64: 2, 1>}, {pipeline_mode = #tpu.pipeline_mode<synchronous>, transform_indices = @transform_17, window_bounds = array<i64: 2, 2, 128>}, {pipeline_mode = #tpu.pipeline_mode<synchronous>, transform_indices = @transform_18, window_bounds = array<i64: 3, 384, 128>}, {pipeline_mode = #tpu.pipeline_mode<synchronous>, transform_indices = @transform_19, window_bounds = array<i64: 4, 128>}, {pipeline_mode = #tpu.pipeline_mode<synchronous>, transform_indices = @transform_20, window_bounds = array<i64: 4, 1>}, {pipeline_mode = #tpu.pipeline_mode<synchronous>, transform_indices = @transform_21, window_bounds = array<i64: 2, 4, 128>}, {pipeline_mode = #tpu.pipeline_mode<synchronous>, transform_indices = @transform_22, window_bounds = array<i64: 3, 384, 128>}, {pipeline_mode = #tpu.pipeline_mode<synchronous>, transform_indices = @transform_23, window_bounds = array<i64: 4, 128>}, {pipeline_mode = #tpu.pipeline_mode<synchronous>, transform_indices = @transform_24, window_bounds = array<i64: 8, 1>}, {pipeline_mode = #tpu.pipeline_mode<synchronous>, transform_indices = @transform_25, window_bounds = array<i64: 2, 8, 128>}, {pipeline_mode = #tpu.pipeline_mode<synchronous>, transform_indices = @transform_26, window_bounds = array<i64: 3, 384, 128>}, {pipeline_mode = #tpu.pipeline_mode<synchronous>, transform_indices = @transform_27, window_bounds = array<i64: 2, 16, 8>}, {pipeline_mode = #tpu.pipeline_mode<synchronous>, transform_indices = @transform_28, window_bounds = array<i64: 384, 256>}, {pipeline_mode = #tpu.pipeline_mode<synchronous>, transform_indices = @transform_29, window_bounds = array<i64: 2, 8, 4>}, {pipeline_mode = #tpu.pipeline_mode<synchronous>, transform_indices = @transform_30, window_bounds = array<i64: 384, 256>}, {transform_indices = @transform_31, window_bounds = array<i64: 1, 16, 128>}]} {
    %c0 = arith.constant 0 : index
    %c0_0 = arith.constant 0 : index
    %c0_1 = arith.constant 0 : index
    %0 = vector.load %arg1[%c0, %c0_0, %c0_1] : memref<1x16x128xf32, #tpu.memory_space<vmem>>, vector<1x16x128xf32>
    %1 = vector.shape_cast %0 : vector<1x16x128xf32> to vector<16x128xf32>
    %c0_2 = arith.constant 0 : index
    %c0_3 = arith.constant 0 : index
    %c0_4 = arith.constant 0 : index
    %2 = vector.load %arg19[%c0_2, %c0_3, %c0_4] : memref<3x384x128xbf16, #tpu.memory_space<vmem>>, vector<1x384x128xbf16>
    %3 = vector.shape_cast %2 : vector<1x384x128xbf16> to vector<384x128xbf16>
    %4 = arith.truncf %1 : vector<16x128xf32> to vector<16x128xbf16>
    %cst = arith.constant 0.000000e+00 : bf16
    %5 = vector.broadcast %cst : bf16 to vector<1x128xbf16>
    %6 = vector.extract_strided_slice %4 {offsets = [0, 0], sizes = [15, 128], strides = [1, 1]} : vector<16x128xbf16> to vector<15x128xbf16>
    %7 = tpu.concatenate %5, %6 in 0 : vector<1x128xbf16>, vector<15x128xbf16> -> vector<16x128xbf16>
    %8 = vector.extract_strided_slice %4 {offsets = [1, 0], sizes = [15, 128], strides = [1, 1]} : vector<16x128xbf16> to vector<15x128xbf16>
    %9 = tpu.concatenate %8, %5 in 0 : vector<15x128xbf16>, vector<1x128xbf16> -> vector<16x128xbf16>
    %10 = tpu.concatenate %7, %4, %9 in 1 : vector<16x128xbf16>, vector<16x128xbf16>, vector<16x128xbf16> -> vector<16x384xbf16>
    %cst_5 = arith.constant dense<0.000000e+00> : vector<16x128xf32>
    %11 = tpu.matmul %10, %3, %cst_5 {dimension_numbers = #tpu.dot_dimension_numbers<[1], [0], [0], [1], [0, 0, 1, 1], [], []>} : vector<16x384xbf16>, vector<384x128xbf16>, vector<16x128xf32> -> vector<16x128xf32>
    %c0_6 = arith.constant 0 : index
    %c0_7 = arith.constant 0 : index
    %12 = vector.load %arg16[%c0_6, %c0_7] : memref<4x128xf32, #tpu.memory_space<vmem>>, vector<1x128xf32>
    %13 = vector.broadcast %12 : vector<1x128xf32> to vector<16x128xf32>
    %14 = arith.addf %11, %13 : vector<16x128xf32>
    %cst_8 = arith.constant 0.000000e+00 : f32
    %15 = vector.broadcast %cst_8 : f32 to vector<16x128xf32>
    %16 = arith.cmpf oge, %14, %15 : vector<16x128xf32>
    %c3 = arith.constant 3 : index
    %c0_9 = arith.constant 0 : index
    %17 = vector.load %arg16[%c3, %c0_9] : memref<4x128xf32, #tpu.memory_space<vmem>>, vector<1x128xf32>
    %18 = vector.broadcast %17 : vector<1x128xf32> to vector<16x128xf32>
    %19 = arith.mulf %18, %14 : vector<16x128xf32>
    %20 = arith.select %16, %14, %19 : vector<16x128xi1>, vector<16x128xf32>
    %c1 = arith.constant 1 : index
    %c0_10 = arith.constant 0 : index
    %c0_11 = arith.constant 0 : index
    %21 = vector.load %arg19[%c1, %c0_10, %c0_11] : memref<3x384x128xbf16, #tpu.memory_space<vmem>>, vector<1x384x128xbf16>
    %22 = vector.shape_cast %21 : vector<1x384x128xbf16> to vector<384x128xbf16>
    %23 = arith.truncf %20 : vector<16x128xf32> to vector<16x128xbf16>
    %cst_12 = arith.constant 0.000000e+00 : bf16
    %24 = vector.broadcast %cst_12 : bf16 to vector<1x128xbf16>
    %25 = vector.extract_strided_slice %23 {offsets = [0, 0], sizes = [15, 128], strides = [1, 1]} : vector<16x128xbf16> to vector<15x128xbf16>
    %26 = tpu.concatenate %24, %25 in 0 : vector<1x128xbf16>, vector<15x128xbf16> -> vector<16x128xbf16>
    %27 = vector.extract_strided_slice %23 {offsets = [1, 0], sizes = [15, 128], strides = [1, 1]} : vector<16x128xbf16> to vector<15x128xbf16>
    %28 = tpu.concatenate %27, %24 in 0 : vector<15x128xbf16>, vector<1x128xbf16> -> vector<16x128xbf16>
    %29 = tpu.concatenate %26, %23, %28 in 1 : vector<16x128xbf16>, vector<16x128xbf16>, vector<16x128xbf16> -> vector<16x384xbf16>
    %cst_13 = arith.constant dense<0.000000e+00> : vector<16x128xf32>
    %30 = tpu.matmul %29, %22, %cst_13 {dimension_numbers = #tpu.dot_dimension_numbers<[1], [0], [0], [1], [0, 0, 1, 1], [], []>} : vector<16x384xbf16>, vector<384x128xbf16>, vector<16x128xf32> -> vector<16x128xf32>
    %c1_14 = arith.constant 1 : index
    %c0_15 = arith.constant 0 : index
    %31 = vector.load %arg16[%c1_14, %c0_15] : memref<4x128xf32, #tpu.memory_space<vmem>>, vector<1x128xf32>
    %32 = vector.broadcast %31 : vector<1x128xf32> to vector<16x128xf32>
    %33 = arith.addf %30, %32 : vector<16x128xf32>
    %cst_16 = arith.constant dense<0.000000e+00> : vector<128xf32>
    %34 = vector.multi_reduction <add>, %33, %cst_16 [0] : vector<16x128xf32> to vector<128xf32>
    %35 = vector.shape_cast %34 : vector<128xf32> to vector<1x128xf32>
    %c0_17 = arith.constant 0 : index
    %c0_18 = arith.constant 0 : index
    %c0_19 = arith.constant 0 : index
    %36 = vector.load %arg18[%c0_17, %c0_18, %c0_19] : memref<2x2x128xf32, #tpu.memory_space<vmem>>, vector<1x2x128xf32>
    %37 = vector.shape_cast %36 : vector<1x2x128xf32> to vector<2x128xf32>
    %38 = vector.broadcast %35 : vector<1x128xf32> to vector<2x128xf32>
    %39 = arith.mulf %37, %38 : vector<2x128xf32>
    %cst_20 = arith.constant dense<0.000000e+00> : vector<2xf32>
    %40 = vector.multi_reduction <add>, %39, %cst_20 [1] : vector<2x128xf32> to vector<2xf32>
    %41 = vector.shape_cast %40 : vector<2xf32> to vector<2x1xf32>
    %c0_21 = arith.constant 0 : index
    %c0_22 = arith.constant 0 : index
    %42 = vector.load %arg17[%c0_21, %c0_22] : memref<2x1xf32, #tpu.memory_space<vmem>>, vector<2x1xf32>
    %43 = arith.addf %41, %42 : vector<2x1xf32>
    %cst_23 = arith.constant 0.000000e+00 : f32
    %44 = vector.broadcast %cst_23 : f32 to vector<2x1xf32>
    %45 = arith.maximumf %43, %44 : vector<2x1xf32>
    %c1_24 = arith.constant 1 : index
    %c0_25 = arith.constant 0 : index
    %c0_26 = arith.constant 0 : index
    %46 = vector.load %arg18[%c1_24, %c0_25, %c0_26] : memref<2x2x128xf32, #tpu.memory_space<vmem>>, vector<1x2x128xf32>
    %47 = vector.shape_cast %46 : vector<1x2x128xf32> to vector<2x128xf32>
    %48 = vector.broadcast %45 : vector<2x1xf32> to vector<2x128xf32>
    %49 = arith.mulf %47, %48 : vector<2x128xf32>
    %cst_27 = arith.constant dense<0.000000e+00> : vector<128xf32>
    %50 = vector.multi_reduction <add>, %49, %cst_27 [0] : vector<2x128xf32> to vector<128xf32>
    %51 = vector.shape_cast %50 : vector<128xf32> to vector<1x128xf32>
    %c2 = arith.constant 2 : index
    %c0_28 = arith.constant 0 : index
    %52 = vector.load %arg16[%c2, %c0_28] : memref<4x128xf32, #tpu.memory_space<vmem>>, vector<1x128xf32>
    %53 = arith.addf %51, %52 : vector<1x128xf32>
    %54 = arith.negf %53 : vector<1x128xf32>
    %55 = math.exp %54 : vector<1x128xf32>
    %cst_29 = arith.constant 1.000000e+00 : f32
    %56 = vector.broadcast %cst_29 : f32 to vector<1x128xf32>
    %57 = arith.addf %56, %55 : vector<1x128xf32>
    %58 = arith.divf %56, %57 : vector<1x128xf32>
    %59 = vector.broadcast %58 : vector<1x128xf32> to vector<16x128xf32>
    %60 = arith.mulf %33, %59 : vector<16x128xf32>
    %61 = arith.addf %60, %1 : vector<16x128xf32>
    %c2_30 = arith.constant 2 : index
    %c0_31 = arith.constant 0 : index
    %c0_32 = arith.constant 0 : index
    %62 = vector.load %arg19[%c2_30, %c0_31, %c0_32] : memref<3x384x128xbf16, #tpu.memory_space<vmem>>, vector<1x384x128xbf16>
    %63 = vector.shape_cast %62 : vector<1x384x128xbf16> to vector<384x128xbf16>
    %64 = arith.truncf %61 : vector<16x128xf32> to vector<16x128xbf16>
    %cst_33 = arith.constant 0.000000e+00 : bf16
    %65 = vector.broadcast %cst_33 : bf16 to vector<1x128xbf16>
    %66 = vector.extract_strided_slice %64 {offsets = [0, 0], sizes = [15, 128], strides = [1, 1]} : vector<16x128xbf16> to vector<15x128xbf16>
    %67 = tpu.concatenate %65, %66 in 0 : vector<1x128xbf16>, vector<15x128xbf16> -> vector<16x128xbf16>
    %68 = vector.extract_strided_slice %64 {offsets = [1, 0], sizes = [15, 128], strides = [1, 1]} : vector<16x128xbf16> to vector<15x128xbf16>
    %69 = tpu.concatenate %68, %65 in 0 : vector<15x128xbf16>, vector<1x128xbf16> -> vector<16x128xbf16>
    %70 = tpu.concatenate %67, %64, %69 in 1 : vector<16x128xbf16>, vector<16x128xbf16>, vector<16x128xbf16> -> vector<16x384xbf16>
    %cst_34 = arith.constant dense<0.000000e+00> : vector<16x128xf32>
    %71 = tpu.matmul %70, %63, %cst_34 {dimension_numbers = #tpu.dot_dimension_numbers<[1], [0], [0], [1], [0, 0, 1, 1], [], []>} : vector<16x384xbf16>, vector<384x128xbf16>, vector<16x128xf32> -> vector<16x128xf32>
    %72 = arith.addf %71, %1 : vector<16x128xf32>
    %c0_35 = arith.constant 0 : index
    %c0_36 = arith.constant 0 : index
    %73 = vector.load %arg13[%c0_35, %c0_36] : memref<384x256xbf16, #tpu.memory_space<vmem>>, vector<384x256xbf16>
    %74 = arith.truncf %72 : vector<16x128xf32> to vector<16x128xbf16>
    %cst_37 = arith.constant 0.000000e+00 : bf16
    %75 = vector.broadcast %cst_37 : bf16 to vector<1x128xbf16>
    %76 = vector.extract_strided_slice %74 {offsets = [0, 0], sizes = [15, 128], strides = [1, 1]} : vector<16x128xbf16> to vector<15x128xbf16>
    %77 = tpu.concatenate %75, %76 in 0 : vector<1x128xbf16>, vector<15x128xbf16> -> vector<16x128xbf16>
    %78 = vector.extract_strided_slice %74 {offsets = [1, 0], sizes = [15, 128], strides = [1, 1]} : vector<16x128xbf16> to vector<15x128xbf16>
    %79 = tpu.concatenate %78, %75 in 0 : vector<15x128xbf16>, vector<1x128xbf16> -> vector<16x128xbf16>
    %80 = tpu.concatenate %77, %74, %79 in 1 : vector<16x128xbf16>, vector<16x128xbf16>, vector<16x128xbf16> -> vector<16x384xbf16>
    %cst_38 = arith.constant dense<0.000000e+00> : vector<16x256xf32>
    %81 = tpu.matmul %80, %73, %cst_38 {dimension_numbers = #tpu.dot_dimension_numbers<[1], [0], [0], [1], [0, 0, 1, 1], [], []>} : vector<16x384xbf16>, vector<384x256xbf16>, vector<16x256xf32> -> vector<16x256xf32>
    %82 = arith.truncf %81 : vector<16x256xf32> to vector<16x256xbf16>
    %c0_39 = arith.constant 0 : index
    %c0_40 = arith.constant 0 : index
    %c0_41 = arith.constant 0 : index
    %83 = vector.load %arg12[%c0_39, %c0_40, %c0_41] : memref<2x8x16xbf16, #tpu.memory_space<vmem>>, vector<1x8x16xbf16>
    %84 = vector.shape_cast %83 : vector<1x8x16xbf16> to vector<8x16xbf16>
    %85 = vector.extract_strided_slice %82 {offsets = [0, 0], sizes = [16, 128], strides = [1, 1]} : vector<16x256xbf16> to vector<16x128xbf16>
    %cst_42 = arith.constant dense<0.000000e+00> : vector<8x128xf32>
    %86 = tpu.matmul %84, %85, %cst_42 {dimension_numbers = #tpu.dot_dimension_numbers<[1], [0], [0], [1], [0, 0, 1, 1], [], []>} : vector<8x16xbf16>, vector<16x128xbf16>, vector<8x128xf32> -> vector<8x128xf32>
    %c1_43 = arith.constant 1 : index
    %c0_44 = arith.constant 0 : index
    %c0_45 = arith.constant 0 : index
    %87 = vector.load %arg12[%c1_43, %c0_44, %c0_45] : memref<2x8x16xbf16, #tpu.memory_space<vmem>>, vector<1x8x16xbf16>
    %88 = vector.shape_cast %87 : vector<1x8x16xbf16> to vector<8x16xbf16>
    %89 = vector.extract_strided_slice %82 {offsets = [0, 128], sizes = [16, 128], strides = [1, 1]} : vector<16x256xbf16> to vector<16x128xbf16>
    %cst_46 = arith.constant dense<0.000000e+00> : vector<8x128xf32>
    %90 = tpu.matmul %88, %89, %cst_46 {dimension_numbers = #tpu.dot_dimension_numbers<[1], [0], [0], [1], [0, 0, 1, 1], [], []>} : vector<8x16xbf16>, vector<16x128xbf16>, vector<8x128xf32> -> vector<8x128xf32>
    %91 = arith.addf %86, %90 : vector<8x128xf32>
    %c0_47 = arith.constant 0 : index
    %c0_48 = arith.constant 0 : index
    %c0_49 = arith.constant 0 : index
    %92 = vector.load %arg23[%c0_47, %c0_48, %c0_49] : memref<3x384x128xbf16, #tpu.memory_space<vmem>>, vector<1x384x128xbf16>
    %93 = vector.shape_cast %92 : vector<1x384x128xbf16> to vector<384x128xbf16>
    %94 = arith.truncf %91 : vector<8x128xf32> to vector<8x128xbf16>
    %cst_50 = arith.constant 0.000000e+00 : bf16
    %95 = vector.broadcast %cst_50 : bf16 to vector<1x128xbf16>
    %96 = vector.extract_strided_slice %94 {offsets = [0, 0], sizes = [7, 128], strides = [1, 1]} : vector<8x128xbf16> to vector<7x128xbf16>
    %97 = tpu.concatenate %95, %96 in 0 : vector<1x128xbf16>, vector<7x128xbf16> -> vector<8x128xbf16>
    %98 = vector.extract_strided_slice %94 {offsets = [1, 0], sizes = [7, 128], strides = [1, 1]} : vector<8x128xbf16> to vector<7x128xbf16>
    %99 = tpu.concatenate %98, %95 in 0 : vector<7x128xbf16>, vector<1x128xbf16> -> vector<8x128xbf16>
    %100 = tpu.concatenate %97, %94, %99 in 1 : vector<8x128xbf16>, vector<8x128xbf16>, vector<8x128xbf16> -> vector<8x384xbf16>
    %cst_51 = arith.constant dense<0.000000e+00> : vector<8x128xf32>
    %101 = tpu.matmul %100, %93, %cst_51 {dimension_numbers = #tpu.dot_dimension_numbers<[1], [0], [0], [1], [0, 0, 1, 1], [], []>} : vector<8x384xbf16>, vector<384x128xbf16>, vector<8x128xf32> -> vector<8x128xf32>
    %c0_52 = arith.constant 0 : index
    %c0_53 = arith.constant 0 : index
    %102 = vector.load %arg20[%c0_52, %c0_53] : memref<4x128xf32, #tpu.memory_space<vmem>>, vector<1x128xf32>
    %103 = vector.broadcast %102 : vector<1x128xf32> to vector<8x128xf32>
    %104 = arith.addf %101, %103 : vector<8x128xf32>
    %cst_54 = arith.constant 0.000000e+00 : f32
    %105 = vector.broadcast %cst_54 : f32 to vector<8x128xf32>
    %106 = arith.cmpf oge, %104, %105 : vector<8x128xf32>
    %c3_55 = arith.constant 3 : index
    %c0_56 = arith.constant 0 : index
    %107 = vector.load %arg20[%c3_55, %c0_56] : memref<4x128xf32, #tpu.memory_space<vmem>>, vector<1x128xf32>
    %108 = vector.broadcast %107 : vector<1x128xf32> to vector<8x128xf32>
    %109 = arith.mulf %108, %104 : vector<8x128xf32>
    %110 = arith.select %106, %104, %109 : vector<8x128xi1>, vector<8x128xf32>
    %c1_57 = arith.constant 1 : index
    %c0_58 = arith.constant 0 : index
    %c0_59 = arith.constant 0 : index
    %111 = vector.load %arg23[%c1_57, %c0_58, %c0_59] : memref<3x384x128xbf16, #tpu.memory_space<vmem>>, vector<1x384x128xbf16>
    %112 = vector.shape_cast %111 : vector<1x384x128xbf16> to vector<384x128xbf16>
    %113 = arith.truncf %110 : vector<8x128xf32> to vector<8x128xbf16>
    %cst_60 = arith.constant 0.000000e+00 : bf16
    %114 = vector.broadcast %cst_60 : bf16 to vector<1x128xbf16>
    %115 = vector.extract_strided_slice %113 {offsets = [0, 0], sizes = [7, 128], strides = [1, 1]} : vector<8x128xbf16> to vector<7x128xbf16>
    %116 = tpu.concatenate %114, %115 in 0 : vector<1x128xbf16>, vector<7x128xbf16> -> vector<8x128xbf16>
    %117 = vector.extract_strided_slice %113 {offsets = [1, 0], sizes = [7, 128], strides = [1, 1]} : vector<8x128xbf16> to vector<7x128xbf16>
    %118 = tpu.concatenate %117, %114 in 0 : vector<7x128xbf16>, vector<1x128xbf16> -> vector<8x128xbf16>
    %119 = tpu.concatenate %116, %113, %118 in 1 : vector<8x128xbf16>, vector<8x128xbf16>, vector<8x128xbf16> -> vector<8x384xbf16>
    %cst_61 = arith.constant dense<0.000000e+00> : vector<8x128xf32>
    %120 = tpu.matmul %119, %112, %cst_61 {dimension_numbers = #tpu.dot_dimension_numbers<[1], [0], [0], [1], [0, 0, 1, 1], [], []>} : vector<8x384xbf16>, vector<384x128xbf16>, vector<8x128xf32> -> vector<8x128xf32>
    %c1_62 = arith.constant 1 : index
    %c0_63 = arith.constant 0 : index
    %121 = vector.load %arg20[%c1_62, %c0_63] : memref<4x128xf32, #tpu.memory_space<vmem>>, vector<1x128xf32>
    %122 = vector.broadcast %121 : vector<1x128xf32> to vector<8x128xf32>
    %123 = arith.addf %120, %122 : vector<8x128xf32>
    %cst_64 = arith.constant dense<0.000000e+00> : vector<128xf32>
    %124 = vector.multi_reduction <add>, %123, %cst_64 [0] : vector<8x128xf32> to vector<128xf32>
    %125 = vector.shape_cast %124 : vector<128xf32> to vector<1x128xf32>
    %c0_65 = arith.constant 0 : index
    %c0_66 = arith.constant 0 : index
    %c0_67 = arith.constant 0 : index
    %126 = vector.load %arg22[%c0_65, %c0_66, %c0_67] : memref<2x4x128xf32, #tpu.memory_space<vmem>>, vector<1x4x128xf32>
    %127 = vector.shape_cast %126 : vector<1x4x128xf32> to vector<4x128xf32>
    %128 = vector.broadcast %125 : vector<1x128xf32> to vector<4x128xf32>
    %129 = arith.mulf %127, %128 : vector<4x128xf32>
    %cst_68 = arith.constant dense<0.000000e+00> : vector<4xf32>
    %130 = vector.multi_reduction <add>, %129, %cst_68 [1] : vector<4x128xf32> to vector<4xf32>
    %131 = vector.shape_cast %130 : vector<4xf32> to vector<4x1xf32>
    %c0_69 = arith.constant 0 : index
    %c0_70 = arith.constant 0 : index
    %132 = vector.load %arg21[%c0_69, %c0_70] : memref<4x1xf32, #tpu.memory_space<vmem>>, vector<4x1xf32>
    %133 = arith.addf %131, %132 : vector<4x1xf32>
    %cst_71 = arith.constant 0.000000e+00 : f32
    %134 = vector.broadcast %cst_71 : f32 to vector<4x1xf32>
    %135 = arith.maximumf %133, %134 : vector<4x1xf32>
    %c1_72 = arith.constant 1 : index
    %c0_73 = arith.constant 0 : index
    %c0_74 = arith.constant 0 : index
    %136 = vector.load %arg22[%c1_72, %c0_73, %c0_74] : memref<2x4x128xf32, #tpu.memory_space<vmem>>, vector<1x4x128xf32>
    %137 = vector.shape_cast %136 : vector<1x4x128xf32> to vector<4x128xf32>
    %138 = vector.broadcast %135 : vector<4x1xf32> to vector<4x128xf32>
    %139 = arith.mulf %137, %138 : vector<4x128xf32>
    %cst_75 = arith.constant dense<0.000000e+00> : vector<128xf32>
    %140 = vector.multi_reduction <add>, %139, %cst_75 [0] : vector<4x128xf32> to vector<128xf32>
    %141 = vector.shape_cast %140 : vector<128xf32> to vector<1x128xf32>
    %c2_76 = arith.constant 2 : index
    %c0_77 = arith.constant 0 : index
    %142 = vector.load %arg20[%c2_76, %c0_77] : memref<4x128xf32, #tpu.memory_space<vmem>>, vector<1x128xf32>
    %143 = arith.addf %141, %142 : vector<1x128xf32>
    %144 = arith.negf %143 : vector<1x128xf32>
    %145 = math.exp %144 : vector<1x128xf32>
    %cst_78 = arith.constant 1.000000e+00 : f32
    %146 = vector.broadcast %cst_78 : f32 to vector<1x128xf32>
    %147 = arith.addf %146, %145 : vector<1x128xf32>
    %148 = arith.divf %146, %147 : vector<1x128xf32>
    %149 = vector.broadcast %148 : vector<1x128xf32> to vector<8x128xf32>
    %150 = arith.mulf %123, %149 : vector<8x128xf32>
    %151 = arith.addf %150, %91 : vector<8x128xf32>
    %c2_79 = arith.constant 2 : index
    %c0_80 = arith.constant 0 : index
    %c0_81 = arith.constant 0 : index
    %152 = vector.load %arg23[%c2_79, %c0_80, %c0_81] : memref<3x384x128xbf16, #tpu.memory_space<vmem>>, vector<1x384x128xbf16>
    %153 = vector.shape_cast %152 : vector<1x384x128xbf16> to vector<384x128xbf16>
    %154 = arith.truncf %151 : vector<8x128xf32> to vector<8x128xbf16>
    %cst_82 = arith.constant 0.000000e+00 : bf16
    %155 = vector.broadcast %cst_82 : bf16 to vector<1x128xbf16>
    %156 = vector.extract_strided_slice %154 {offsets = [0, 0], sizes = [7, 128], strides = [1, 1]} : vector<8x128xbf16> to vector<7x128xbf16>
    %157 = tpu.concatenate %155, %156 in 0 : vector<1x128xbf16>, vector<7x128xbf16> -> vector<8x128xbf16>
    %158 = vector.extract_strided_slice %154 {offsets = [1, 0], sizes = [7, 128], strides = [1, 1]} : vector<8x128xbf16> to vector<7x128xbf16>
    %159 = tpu.concatenate %158, %155 in 0 : vector<7x128xbf16>, vector<1x128xbf16> -> vector<8x128xbf16>
    %160 = tpu.concatenate %157, %154, %159 in 1 : vector<8x128xbf16>, vector<8x128xbf16>, vector<8x128xbf16> -> vector<8x384xbf16>
    %cst_83 = arith.constant dense<0.000000e+00> : vector<8x128xf32>
    %161 = tpu.matmul %160, %153, %cst_83 {dimension_numbers = #tpu.dot_dimension_numbers<[1], [0], [0], [1], [0, 0, 1, 1], [], []>} : vector<8x384xbf16>, vector<384x128xbf16>, vector<8x128xf32> -> vector<8x128xf32>
    %162 = arith.addf %161, %91 : vector<8x128xf32>
    %c0_84 = arith.constant 0 : index
    %c0_85 = arith.constant 0 : index
    %163 = vector.load %arg15[%c0_84, %c0_85] : memref<384x256xbf16, #tpu.memory_space<vmem>>, vector<384x256xbf16>
    %164 = arith.truncf %162 : vector<8x128xf32> to vector<8x128xbf16>
    %cst_86 = arith.constant 0.000000e+00 : bf16
    %165 = vector.broadcast %cst_86 : bf16 to vector<1x128xbf16>
    %166 = vector.extract_strided_slice %164 {offsets = [0, 0], sizes = [7, 128], strides = [1, 1]} : vector<8x128xbf16> to vector<7x128xbf16>
    %167 = tpu.concatenate %165, %166 in 0 : vector<1x128xbf16>, vector<7x128xbf16> -> vector<8x128xbf16>
    %168 = vector.extract_strided_slice %164 {offsets = [1, 0], sizes = [7, 128], strides = [1, 1]} : vector<8x128xbf16> to vector<7x128xbf16>
    %169 = tpu.concatenate %168, %165 in 0 : vector<7x128xbf16>, vector<1x128xbf16> -> vector<8x128xbf16>
    %170 = tpu.concatenate %167, %164, %169 in 1 : vector<8x128xbf16>, vector<8x128xbf16>, vector<8x128xbf16> -> vector<8x384xbf16>
    %cst_87 = arith.constant dense<0.000000e+00> : vector<8x256xf32>
    %171 = tpu.matmul %170, %163, %cst_87 {dimension_numbers = #tpu.dot_dimension_numbers<[1], [0], [0], [1], [0, 0, 1, 1], [], []>} : vector<8x384xbf16>, vector<384x256xbf16>, vector<8x256xf32> -> vector<8x256xf32>
    %172 = arith.truncf %171 : vector<8x256xf32> to vector<8x256xbf16>
    %c0_88 = arith.constant 0 : index
    %c0_89 = arith.constant 0 : index
    %c0_90 = arith.constant 0 : index
    %173 = vector.load %arg14[%c0_88, %c0_89, %c0_90] : memref<2x4x8xbf16, #tpu.memory_space<vmem>>, vector<1x4x8xbf16>
    %174 = vector.shape_cast %173 : vector<1x4x8xbf16> to vector<4x8xbf16>
    %175 = vector.extract_strided_slice %172 {offsets = [0, 0], sizes = [8, 128], strides = [1, 1]} : vector<8x256xbf16> to vector<8x128xbf16>
    %cst_91 = arith.constant dense<0.000000e+00> : vector<4x128xf32>
    %176 = tpu.matmul %174, %175, %cst_91 {dimension_numbers = #tpu.dot_dimension_numbers<[1], [0], [0], [1], [0, 0, 1, 1], [], []>} : vector<4x8xbf16>, vector<8x128xbf16>, vector<4x128xf32> -> vector<4x128xf32>
    %c1_92 = arith.constant 1 : index
    %c0_93 = arith.constant 0 : index
    %c0_94 = arith.constant 0 : index
    %177 = vector.load %arg14[%c1_92, %c0_93, %c0_94] : memref<2x4x8xbf16, #tpu.memory_space<vmem>>, vector<1x4x8xbf16>
    %178 = vector.shape_cast %177 : vector<1x4x8xbf16> to vector<4x8xbf16>
    %179 = vector.extract_strided_slice %172 {offsets = [0, 128], sizes = [8, 128], strides = [1, 1]} : vector<8x256xbf16> to vector<8x128xbf16>
    %cst_95 = arith.constant dense<0.000000e+00> : vector<4x128xf32>
    %180 = tpu.matmul %178, %179, %cst_95 {dimension_numbers = #tpu.dot_dimension_numbers<[1], [0], [0], [1], [0, 0, 1, 1], [], []>} : vector<4x8xbf16>, vector<8x128xbf16>, vector<4x128xf32> -> vector<4x128xf32>
    %181 = arith.addf %176, %180 : vector<4x128xf32>
    %c0_96 = arith.constant 0 : index
    %c0_97 = arith.constant 0 : index
    %c0_98 = arith.constant 0 : index
    %182 = vector.load %arg27[%c0_96, %c0_97, %c0_98] : memref<3x384x128xbf16, #tpu.memory_space<vmem>>, vector<1x384x128xbf16>
    %183 = vector.shape_cast %182 : vector<1x384x128xbf16> to vector<384x128xbf16>
    %184 = arith.truncf %181 : vector<4x128xf32> to vector<4x128xbf16>
    %cst_99 = arith.constant 0.000000e+00 : bf16
    %185 = vector.broadcast %cst_99 : bf16 to vector<1x128xbf16>
    %186 = vector.extract_strided_slice %184 {offsets = [0, 0], sizes = [3, 128], strides = [1, 1]} : vector<4x128xbf16> to vector<3x128xbf16>
    %187 = tpu.concatenate %185, %186 in 0 : vector<1x128xbf16>, vector<3x128xbf16> -> vector<4x128xbf16>
    %188 = vector.extract_strided_slice %184 {offsets = [1, 0], sizes = [3, 128], strides = [1, 1]} : vector<4x128xbf16> to vector<3x128xbf16>
    %189 = tpu.concatenate %188, %185 in 0 : vector<3x128xbf16>, vector<1x128xbf16> -> vector<4x128xbf16>
    %190 = tpu.concatenate %187, %184, %189 in 1 : vector<4x128xbf16>, vector<4x128xbf16>, vector<4x128xbf16> -> vector<4x384xbf16>
    %cst_100 = arith.constant dense<0.000000e+00> : vector<4x128xf32>
    %191 = tpu.matmul %190, %183, %cst_100 {dimension_numbers = #tpu.dot_dimension_numbers<[1], [0], [0], [1], [0, 0, 1, 1], [], []>} : vector<4x384xbf16>, vector<384x128xbf16>, vector<4x128xf32> -> vector<4x128xf32>
    %c0_101 = arith.constant 0 : index
    %c0_102 = arith.constant 0 : index
    %192 = vector.load %arg24[%c0_101, %c0_102] : memref<4x128xf32, #tpu.memory_space<vmem>>, vector<1x128xf32>
    %193 = vector.broadcast %192 : vector<1x128xf32> to vector<4x128xf32>
    %194 = arith.addf %191, %193 : vector<4x128xf32>
    %cst_103 = arith.constant 0.000000e+00 : f32
    %195 = vector.broadcast %cst_103 : f32 to vector<4x128xf32>
    %196 = arith.cmpf oge, %194, %195 : vector<4x128xf32>
    %c3_104 = arith.constant 3 : index
    %c0_105 = arith.constant 0 : index
    %197 = vector.load %arg24[%c3_104, %c0_105] : memref<4x128xf32, #tpu.memory_space<vmem>>, vector<1x128xf32>
    %198 = vector.broadcast %197 : vector<1x128xf32> to vector<4x128xf32>
    %199 = arith.mulf %198, %194 : vector<4x128xf32>
    %200 = arith.select %196, %194, %199 : vector<4x128xi1>, vector<4x128xf32>
    %c1_106 = arith.constant 1 : index
    %c0_107 = arith.constant 0 : index
    %c0_108 = arith.constant 0 : index
    %201 = vector.load %arg27[%c1_106, %c0_107, %c0_108] : memref<3x384x128xbf16, #tpu.memory_space<vmem>>, vector<1x384x128xbf16>
    %202 = vector.shape_cast %201 : vector<1x384x128xbf16> to vector<384x128xbf16>
    %203 = arith.truncf %200 : vector<4x128xf32> to vector<4x128xbf16>
    %cst_109 = arith.constant 0.000000e+00 : bf16
    %204 = vector.broadcast %cst_109 : bf16 to vector<1x128xbf16>
    %205 = vector.extract_strided_slice %203 {offsets = [0, 0], sizes = [3, 128], strides = [1, 1]} : vector<4x128xbf16> to vector<3x128xbf16>
    %206 = tpu.concatenate %204, %205 in 0 : vector<1x128xbf16>, vector<3x128xbf16> -> vector<4x128xbf16>
    %207 = vector.extract_strided_slice %203 {offsets = [1, 0], sizes = [3, 128], strides = [1, 1]} : vector<4x128xbf16> to vector<3x128xbf16>
    %208 = tpu.concatenate %207, %204 in 0 : vector<3x128xbf16>, vector<1x128xbf16> -> vector<4x128xbf16>
    %209 = tpu.concatenate %206, %203, %208 in 1 : vector<4x128xbf16>, vector<4x128xbf16>, vector<4x128xbf16> -> vector<4x384xbf16>
    %cst_110 = arith.constant dense<0.000000e+00> : vector<4x128xf32>
    %210 = tpu.matmul %209, %202, %cst_110 {dimension_numbers = #tpu.dot_dimension_numbers<[1], [0], [0], [1], [0, 0, 1, 1], [], []>} : vector<4x384xbf16>, vector<384x128xbf16>, vector<4x128xf32> -> vector<4x128xf32>
    %c1_111 = arith.constant 1 : index
    %c0_112 = arith.constant 0 : index
    %211 = vector.load %arg24[%c1_111, %c0_112] : memref<4x128xf32, #tpu.memory_space<vmem>>, vector<1x128xf32>
    %212 = vector.broadcast %211 : vector<1x128xf32> to vector<4x128xf32>
    %213 = arith.addf %210, %212 : vector<4x128xf32>
    %cst_113 = arith.constant dense<0.000000e+00> : vector<128xf32>
    %214 = vector.multi_reduction <add>, %213, %cst_113 [0] : vector<4x128xf32> to vector<128xf32>
    %215 = vector.shape_cast %214 : vector<128xf32> to vector<1x128xf32>
    %c0_114 = arith.constant 0 : index
    %c0_115 = arith.constant 0 : index
    %c0_116 = arith.constant 0 : index
    %216 = vector.load %arg26[%c0_114, %c0_115, %c0_116] : memref<2x8x128xf32, #tpu.memory_space<vmem>>, vector<1x8x128xf32>
    %217 = vector.shape_cast %216 : vector<1x8x128xf32> to vector<8x128xf32>
    %218 = vector.broadcast %215 : vector<1x128xf32> to vector<8x128xf32>
    %219 = arith.mulf %217, %218 : vector<8x128xf32>
    %cst_117 = arith.constant dense<0.000000e+00> : vector<8xf32>
    %220 = vector.multi_reduction <add>, %219, %cst_117 [1] : vector<8x128xf32> to vector<8xf32>
    %221 = vector.shape_cast %220 : vector<8xf32> to vector<8x1xf32>
    %c0_118 = arith.constant 0 : index
    %c0_119 = arith.constant 0 : index
    %222 = vector.load %arg25[%c0_118, %c0_119] : memref<8x1xf32, #tpu.memory_space<vmem>>, vector<8x1xf32>
    %223 = arith.addf %221, %222 : vector<8x1xf32>
    %cst_120 = arith.constant 0.000000e+00 : f32
    %224 = vector.broadcast %cst_120 : f32 to vector<8x1xf32>
    %225 = arith.maximumf %223, %224 : vector<8x1xf32>
    %c1_121 = arith.constant 1 : index
    %c0_122 = arith.constant 0 : index
    %c0_123 = arith.constant 0 : index
    %226 = vector.load %arg26[%c1_121, %c0_122, %c0_123] : memref<2x8x128xf32, #tpu.memory_space<vmem>>, vector<1x8x128xf32>
    %227 = vector.shape_cast %226 : vector<1x8x128xf32> to vector<8x128xf32>
    %228 = vector.broadcast %225 : vector<8x1xf32> to vector<8x128xf32>
    %229 = arith.mulf %227, %228 : vector<8x128xf32>
    %cst_124 = arith.constant dense<0.000000e+00> : vector<128xf32>
    %230 = vector.multi_reduction <add>, %229, %cst_124 [0] : vector<8x128xf32> to vector<128xf32>
    %231 = vector.shape_cast %230 : vector<128xf32> to vector<1x128xf32>
    %c2_125 = arith.constant 2 : index
    %c0_126 = arith.constant 0 : index
    %232 = vector.load %arg24[%c2_125, %c0_126] : memref<4x128xf32, #tpu.memory_space<vmem>>, vector<1x128xf32>
    %233 = arith.addf %231, %232 : vector<1x128xf32>
    %234 = arith.negf %233 : vector<1x128xf32>
    %235 = math.exp %234 : vector<1x128xf32>
    %cst_127 = arith.constant 1.000000e+00 : f32
    %236 = vector.broadcast %cst_127 : f32 to vector<1x128xf32>
    %237 = arith.addf %236, %235 : vector<1x128xf32>
    %238 = arith.divf %236, %237 : vector<1x128xf32>
    %239 = vector.broadcast %238 : vector<1x128xf32> to vector<4x128xf32>
    %240 = arith.mulf %213, %239 : vector<4x128xf32>
    %241 = arith.addf %240, %181 : vector<4x128xf32>
    %c2_128 = arith.constant 2 : index
    %c0_129 = arith.constant 0 : index
    %c0_130 = arith.constant 0 : index
    %242 = vector.load %arg27[%c2_128, %c0_129, %c0_130] : memref<3x384x128xbf16, #tpu.memory_space<vmem>>, vector<1x384x128xbf16>
    %243 = vector.shape_cast %242 : vector<1x384x128xbf16> to vector<384x128xbf16>
    %244 = arith.truncf %241 : vector<4x128xf32> to vector<4x128xbf16>
    %cst_131 = arith.constant 0.000000e+00 : bf16
    %245 = vector.broadcast %cst_131 : bf16 to vector<1x128xbf16>
    %246 = vector.extract_strided_slice %244 {offsets = [0, 0], sizes = [3, 128], strides = [1, 1]} : vector<4x128xbf16> to vector<3x128xbf16>
    %247 = tpu.concatenate %245, %246 in 0 : vector<1x128xbf16>, vector<3x128xbf16> -> vector<4x128xbf16>
    %248 = vector.extract_strided_slice %244 {offsets = [1, 0], sizes = [3, 128], strides = [1, 1]} : vector<4x128xbf16> to vector<3x128xbf16>
    %249 = tpu.concatenate %248, %245 in 0 : vector<3x128xbf16>, vector<1x128xbf16> -> vector<4x128xbf16>
    %250 = tpu.concatenate %247, %244, %249 in 1 : vector<4x128xbf16>, vector<4x128xbf16>, vector<4x128xbf16> -> vector<4x384xbf16>
    %cst_132 = arith.constant dense<0.000000e+00> : vector<4x128xf32>
    %251 = tpu.matmul %250, %243, %cst_132 {dimension_numbers = #tpu.dot_dimension_numbers<[1], [0], [0], [1], [0, 0, 1, 1], [], []>} : vector<4x384xbf16>, vector<384x128xbf16>, vector<4x128xf32> -> vector<4x128xf32>
    %252 = arith.addf %251, %181 : vector<4x128xf32>
    %c0_133 = arith.constant 0 : index
    %c0_134 = arith.constant 0 : index
    %253 = vector.load %arg31[%c0_133, %c0_134] : memref<384x256xbf16, #tpu.memory_space<vmem>>, vector<384x256xbf16>
    %254 = arith.truncf %252 : vector<4x128xf32> to vector<4x128xbf16>
    %cst_135 = arith.constant 0.000000e+00 : bf16
    %255 = vector.broadcast %cst_135 : bf16 to vector<1x128xbf16>
    %256 = vector.extract_strided_slice %254 {offsets = [0, 0], sizes = [3, 128], strides = [1, 1]} : vector<4x128xbf16> to vector<3x128xbf16>
    %257 = tpu.concatenate %255, %256 in 0 : vector<1x128xbf16>, vector<3x128xbf16> -> vector<4x128xbf16>
    %258 = vector.extract_strided_slice %254 {offsets = [1, 0], sizes = [3, 128], strides = [1, 1]} : vector<4x128xbf16> to vector<3x128xbf16>
    %259 = tpu.concatenate %258, %255 in 0 : vector<3x128xbf16>, vector<1x128xbf16> -> vector<4x128xbf16>
    %260 = tpu.concatenate %257, %254, %259 in 1 : vector<4x128xbf16>, vector<4x128xbf16>, vector<4x128xbf16> -> vector<4x384xbf16>
    %cst_136 = arith.constant dense<0.000000e+00> : vector<4x256xf32>
    %261 = tpu.matmul %260, %253, %cst_136 {dimension_numbers = #tpu.dot_dimension_numbers<[1], [0], [0], [1], [0, 0, 1, 1], [], []>} : vector<4x384xbf16>, vector<384x256xbf16>, vector<4x256xf32> -> vector<4x256xf32>
    %262 = arith.truncf %261 : vector<4x256xf32> to vector<4x256xbf16>
    %c0_137 = arith.constant 0 : index
    %c0_138 = arith.constant 0 : index
    %c0_139 = arith.constant 0 : index
    %263 = vector.load %arg30[%c0_137, %c0_138, %c0_139] : memref<2x8x4xbf16, #tpu.memory_space<vmem>>, vector<1x8x4xbf16>
    %264 = vector.shape_cast %263 : vector<1x8x4xbf16> to vector<8x4xbf16>
    %265 = vector.extract_strided_slice %262 {offsets = [0, 0], sizes = [4, 128], strides = [1, 1]} : vector<4x256xbf16> to vector<4x128xbf16>
    %cst_140 = arith.constant dense<0.000000e+00> : vector<8x128xf32>
    %266 = tpu.matmul %264, %265, %cst_140 {dimension_numbers = #tpu.dot_dimension_numbers<[1], [0], [0], [1], [0, 0, 1, 1], [], []>} : vector<8x4xbf16>, vector<4x128xbf16>, vector<8x128xf32> -> vector<8x128xf32>
    %c1_141 = arith.constant 1 : index
    %c0_142 = arith.constant 0 : index
    %c0_143 = arith.constant 0 : index
    %267 = vector.load %arg30[%c1_141, %c0_142, %c0_143] : memref<2x8x4xbf16, #tpu.memory_space<vmem>>, vector<1x8x4xbf16>
    %268 = vector.shape_cast %267 : vector<1x8x4xbf16> to vector<8x4xbf16>
    %269 = vector.extract_strided_slice %262 {offsets = [0, 128], sizes = [4, 128], strides = [1, 1]} : vector<4x256xbf16> to vector<4x128xbf16>
    %cst_144 = arith.constant dense<0.000000e+00> : vector<8x128xf32>
    %270 = tpu.matmul %268, %269, %cst_144 {dimension_numbers = #tpu.dot_dimension_numbers<[1], [0], [0], [1], [0, 0, 1, 1], [], []>} : vector<8x4xbf16>, vector<4x128xbf16>, vector<8x128xf32> -> vector<8x128xf32>
    %271 = arith.addf %266, %270 : vector<8x128xf32>
    %272 = arith.truncf %271 : vector<8x128xf32> to vector<8x128xbf16>
    %273 = arith.truncf %162 : vector<8x128xf32> to vector<8x128xbf16>
    %274 = tpu.concatenate %272, %273 in 1 : vector<8x128xbf16>, vector<8x128xbf16> -> vector<8x256xbf16>
    %c0_145 = arith.constant 0 : index
    %c0_146 = arith.constant 0 : index
    %275 = vector.load %arg11[%c0_145, %c0_146] : memref<256x128xbf16, #tpu.memory_space<vmem>>, vector<256x128xbf16>
    %cst_147 = arith.constant dense<0.000000e+00> : vector<8x128xf32>
    %276 = tpu.matmul %274, %275, %cst_147 {dimension_numbers = #tpu.dot_dimension_numbers<[1], [0], [0], [1], [0, 0, 1, 1], [], []>} : vector<8x256xbf16>, vector<256x128xbf16>, vector<8x128xf32> -> vector<8x128xf32>
    %c0_148 = arith.constant 0 : index
    %c0_149 = arith.constant 0 : index
    %c0_150 = arith.constant 0 : index
    %277 = vector.load %arg10[%c0_148, %c0_149, %c0_150] : memref<3x384x128xbf16, #tpu.memory_space<vmem>>, vector<1x384x128xbf16>
    %278 = vector.shape_cast %277 : vector<1x384x128xbf16> to vector<384x128xbf16>
    %279 = arith.truncf %276 : vector<8x128xf32> to vector<8x128xbf16>
    %cst_151 = arith.constant 0.000000e+00 : bf16
    %280 = vector.broadcast %cst_151 : bf16 to vector<1x128xbf16>
    %281 = vector.extract_strided_slice %279 {offsets = [0, 0], sizes = [7, 128], strides = [1, 1]} : vector<8x128xbf16> to vector<7x128xbf16>
    %282 = tpu.concatenate %280, %281 in 0 : vector<1x128xbf16>, vector<7x128xbf16> -> vector<8x128xbf16>
    %283 = vector.extract_strided_slice %279 {offsets = [1, 0], sizes = [7, 128], strides = [1, 1]} : vector<8x128xbf16> to vector<7x128xbf16>
    %284 = tpu.concatenate %283, %280 in 0 : vector<7x128xbf16>, vector<1x128xbf16> -> vector<8x128xbf16>
    %285 = tpu.concatenate %282, %279, %284 in 1 : vector<8x128xbf16>, vector<8x128xbf16>, vector<8x128xbf16> -> vector<8x384xbf16>
    %cst_152 = arith.constant dense<0.000000e+00> : vector<8x128xf32>
    %286 = tpu.matmul %285, %278, %cst_152 {dimension_numbers = #tpu.dot_dimension_numbers<[1], [0], [0], [1], [0, 0, 1, 1], [], []>} : vector<8x384xbf16>, vector<384x128xbf16>, vector<8x128xf32> -> vector<8x128xf32>
    %c0_153 = arith.constant 0 : index
    %c0_154 = arith.constant 0 : index
    %287 = vector.load %arg7[%c0_153, %c0_154] : memref<4x128xf32, #tpu.memory_space<vmem>>, vector<1x128xf32>
    %288 = vector.broadcast %287 : vector<1x128xf32> to vector<8x128xf32>
    %289 = arith.addf %286, %288 : vector<8x128xf32>
    %cst_155 = arith.constant 0.000000e+00 : f32
    %290 = vector.broadcast %cst_155 : f32 to vector<8x128xf32>
    %291 = arith.cmpf oge, %289, %290 : vector<8x128xf32>
    %c3_156 = arith.constant 3 : index
    %c0_157 = arith.constant 0 : index
    %292 = vector.load %arg7[%c3_156, %c0_157] : memref<4x128xf32, #tpu.memory_space<vmem>>, vector<1x128xf32>
    %293 = vector.broadcast %292 : vector<1x128xf32> to vector<8x128xf32>
    %294 = arith.mulf %293, %289 : vector<8x128xf32>
    %295 = arith.select %291, %289, %294 : vector<8x128xi1>, vector<8x128xf32>
    %c1_158 = arith.constant 1 : index
    %c0_159 = arith.constant 0 : index
    %c0_160 = arith.constant 0 : index
    %296 = vector.load %arg10[%c1_158, %c0_159, %c0_160] : memref<3x384x128xbf16, #tpu.memory_space<vmem>>, vector<1x384x128xbf16>
    %297 = vector.shape_cast %296 : vector<1x384x128xbf16> to vector<384x128xbf16>
    %298 = arith.truncf %295 : vector<8x128xf32> to vector<8x128xbf16>
    %cst_161 = arith.constant 0.000000e+00 : bf16
    %299 = vector.broadcast %cst_161 : bf16 to vector<1x128xbf16>
    %300 = vector.extract_strided_slice %298 {offsets = [0, 0], sizes = [7, 128], strides = [1, 1]} : vector<8x128xbf16> to vector<7x128xbf16>
    %301 = tpu.concatenate %299, %300 in 0 : vector<1x128xbf16>, vector<7x128xbf16> -> vector<8x128xbf16>
    %302 = vector.extract_strided_slice %298 {offsets = [1, 0], sizes = [7, 128], strides = [1, 1]} : vector<8x128xbf16> to vector<7x128xbf16>
    %303 = tpu.concatenate %302, %299 in 0 : vector<7x128xbf16>, vector<1x128xbf16> -> vector<8x128xbf16>
    %304 = tpu.concatenate %301, %298, %303 in 1 : vector<8x128xbf16>, vector<8x128xbf16>, vector<8x128xbf16> -> vector<8x384xbf16>
    %cst_162 = arith.constant dense<0.000000e+00> : vector<8x128xf32>
    %305 = tpu.matmul %304, %297, %cst_162 {dimension_numbers = #tpu.dot_dimension_numbers<[1], [0], [0], [1], [0, 0, 1, 1], [], []>} : vector<8x384xbf16>, vector<384x128xbf16>, vector<8x128xf32> -> vector<8x128xf32>
    %c1_163 = arith.constant 1 : index
    %c0_164 = arith.constant 0 : index
    %306 = vector.load %arg7[%c1_163, %c0_164] : memref<4x128xf32, #tpu.memory_space<vmem>>, vector<1x128xf32>
    %307 = vector.broadcast %306 : vector<1x128xf32> to vector<8x128xf32>
    %308 = arith.addf %305, %307 : vector<8x128xf32>
    %cst_165 = arith.constant dense<0.000000e+00> : vector<128xf32>
    %309 = vector.multi_reduction <add>, %308, %cst_165 [0] : vector<8x128xf32> to vector<128xf32>
    %310 = vector.shape_cast %309 : vector<128xf32> to vector<1x128xf32>
    %c0_166 = arith.constant 0 : index
    %c0_167 = arith.constant 0 : index
    %c0_168 = arith.constant 0 : index
    %311 = vector.load %arg9[%c0_166, %c0_167, %c0_168] : memref<2x4x128xf32, #tpu.memory_space<vmem>>, vector<1x4x128xf32>
    %312 = vector.shape_cast %311 : vector<1x4x128xf32> to vector<4x128xf32>
    %313 = vector.broadcast %310 : vector<1x128xf32> to vector<4x128xf32>
    %314 = arith.mulf %312, %313 : vector<4x128xf32>
    %cst_169 = arith.constant dense<0.000000e+00> : vector<4xf32>
    %315 = vector.multi_reduction <add>, %314, %cst_169 [1] : vector<4x128xf32> to vector<4xf32>
    %316 = vector.shape_cast %315 : vector<4xf32> to vector<4x1xf32>
    %c0_170 = arith.constant 0 : index
    %c0_171 = arith.constant 0 : index
    %317 = vector.load %arg8[%c0_170, %c0_171] : memref<4x1xf32, #tpu.memory_space<vmem>>, vector<4x1xf32>
    %318 = arith.addf %316, %317 : vector<4x1xf32>
    %cst_172 = arith.constant 0.000000e+00 : f32
    %319 = vector.broadcast %cst_172 : f32 to vector<4x1xf32>
    %320 = arith.maximumf %318, %319 : vector<4x1xf32>
    %c1_173 = arith.constant 1 : index
    %c0_174 = arith.constant 0 : index
    %c0_175 = arith.constant 0 : index
    %321 = vector.load %arg9[%c1_173, %c0_174, %c0_175] : memref<2x4x128xf32, #tpu.memory_space<vmem>>, vector<1x4x128xf32>
    %322 = vector.shape_cast %321 : vector<1x4x128xf32> to vector<4x128xf32>
    %323 = vector.broadcast %320 : vector<4x1xf32> to vector<4x128xf32>
    %324 = arith.mulf %322, %323 : vector<4x128xf32>
    %cst_176 = arith.constant dense<0.000000e+00> : vector<128xf32>
    %325 = vector.multi_reduction <add>, %324, %cst_176 [0] : vector<4x128xf32> to vector<128xf32>
    %326 = vector.shape_cast %325 : vector<128xf32> to vector<1x128xf32>
    %c2_177 = arith.constant 2 : index
    %c0_178 = arith.constant 0 : index
    %327 = vector.load %arg7[%c2_177, %c0_178] : memref<4x128xf32, #tpu.memory_space<vmem>>, vector<1x128xf32>
    %328 = arith.addf %326, %327 : vector<1x128xf32>
    %329 = arith.negf %328 : vector<1x128xf32>
    %330 = math.exp %329 : vector<1x128xf32>
    %cst_179 = arith.constant 1.000000e+00 : f32
    %331 = vector.broadcast %cst_179 : f32 to vector<1x128xf32>
    %332 = arith.addf %331, %330 : vector<1x128xf32>
    %333 = arith.divf %331, %332 : vector<1x128xf32>
    %334 = vector.broadcast %333 : vector<1x128xf32> to vector<8x128xf32>
    %335 = arith.mulf %308, %334 : vector<8x128xf32>
    %336 = arith.addf %335, %276 : vector<8x128xf32>
    %c2_180 = arith.constant 2 : index
    %c0_181 = arith.constant 0 : index
    %c0_182 = arith.constant 0 : index
    %337 = vector.load %arg10[%c2_180, %c0_181, %c0_182] : memref<3x384x128xbf16, #tpu.memory_space<vmem>>, vector<1x384x128xbf16>
    %338 = vector.shape_cast %337 : vector<1x384x128xbf16> to vector<384x128xbf16>
    %339 = arith.truncf %336 : vector<8x128xf32> to vector<8x128xbf16>
    %cst_183 = arith.constant 0.000000e+00 : bf16
    %340 = vector.broadcast %cst_183 : bf16 to vector<1x128xbf16>
    %341 = vector.extract_strided_slice %339 {offsets = [0, 0], sizes = [7, 128], strides = [1, 1]} : vector<8x128xbf16> to vector<7x128xbf16>
    %342 = tpu.concatenate %340, %341 in 0 : vector<1x128xbf16>, vector<7x128xbf16> -> vector<8x128xbf16>
    %343 = vector.extract_strided_slice %339 {offsets = [1, 0], sizes = [7, 128], strides = [1, 1]} : vector<8x128xbf16> to vector<7x128xbf16>
    %344 = tpu.concatenate %343, %340 in 0 : vector<7x128xbf16>, vector<1x128xbf16> -> vector<8x128xbf16>
    %345 = tpu.concatenate %342, %339, %344 in 1 : vector<8x128xbf16>, vector<8x128xbf16>, vector<8x128xbf16> -> vector<8x384xbf16>
    %cst_184 = arith.constant dense<0.000000e+00> : vector<8x128xf32>
    %346 = tpu.matmul %345, %338, %cst_184 {dimension_numbers = #tpu.dot_dimension_numbers<[1], [0], [0], [1], [0, 0, 1, 1], [], []>} : vector<8x384xbf16>, vector<384x128xbf16>, vector<8x128xf32> -> vector<8x128xf32>
    %347 = arith.addf %346, %276 : vector<8x128xf32>
    %c0_185 = arith.constant 0 : index
    %c0_186 = arith.constant 0 : index
    %348 = vector.load %arg29[%c0_185, %c0_186] : memref<384x256xbf16, #tpu.memory_space<vmem>>, vector<384x256xbf16>
    %349 = arith.truncf %347 : vector<8x128xf32> to vector<8x128xbf16>
    %cst_187 = arith.constant 0.000000e+00 : bf16
    %350 = vector.broadcast %cst_187 : bf16 to vector<1x128xbf16>
    %351 = vector.extract_strided_slice %349 {offsets = [0, 0], sizes = [7, 128], strides = [1, 1]} : vector<8x128xbf16> to vector<7x128xbf16>
    %352 = tpu.concatenate %350, %351 in 0 : vector<1x128xbf16>, vector<7x128xbf16> -> vector<8x128xbf16>
    %353 = vector.extract_strided_slice %349 {offsets = [1, 0], sizes = [7, 128], strides = [1, 1]} : vector<8x128xbf16> to vector<7x128xbf16>
    %354 = tpu.concatenate %353, %350 in 0 : vector<7x128xbf16>, vector<1x128xbf16> -> vector<8x128xbf16>
    %355 = tpu.concatenate %352, %349, %354 in 1 : vector<8x128xbf16>, vector<8x128xbf16>, vector<8x128xbf16> -> vector<8x384xbf16>
    %cst_188 = arith.constant dense<0.000000e+00> : vector<8x256xf32>
    %356 = tpu.matmul %355, %348, %cst_188 {dimension_numbers = #tpu.dot_dimension_numbers<[1], [0], [0], [1], [0, 0, 1, 1], [], []>} : vector<8x384xbf16>, vector<384x256xbf16>, vector<8x256xf32> -> vector<8x256xf32>
    %357 = arith.truncf %356 : vector<8x256xf32> to vector<8x256xbf16>
    %c0_189 = arith.constant 0 : index
    %c0_190 = arith.constant 0 : index
    %c0_191 = arith.constant 0 : index
    %358 = vector.load %arg28[%c0_189, %c0_190, %c0_191] : memref<2x16x8xbf16, #tpu.memory_space<vmem>>, vector<1x16x8xbf16>
    %359 = vector.shape_cast %358 : vector<1x16x8xbf16> to vector<16x8xbf16>
    %360 = vector.extract_strided_slice %357 {offsets = [0, 0], sizes = [8, 128], strides = [1, 1]} : vector<8x256xbf16> to vector<8x128xbf16>
    %cst_192 = arith.constant dense<0.000000e+00> : vector<16x128xf32>
    %361 = tpu.matmul %359, %360, %cst_192 {dimension_numbers = #tpu.dot_dimension_numbers<[1], [0], [0], [1], [0, 0, 1, 1], [], []>} : vector<16x8xbf16>, vector<8x128xbf16>, vector<16x128xf32> -> vector<16x128xf32>
    %c1_193 = arith.constant 1 : index
    %c0_194 = arith.constant 0 : index
    %c0_195 = arith.constant 0 : index
    %362 = vector.load %arg28[%c1_193, %c0_194, %c0_195] : memref<2x16x8xbf16, #tpu.memory_space<vmem>>, vector<1x16x8xbf16>
    %363 = vector.shape_cast %362 : vector<1x16x8xbf16> to vector<16x8xbf16>
    %364 = vector.extract_strided_slice %357 {offsets = [0, 128], sizes = [8, 128], strides = [1, 1]} : vector<8x256xbf16> to vector<8x128xbf16>
    %cst_196 = arith.constant dense<0.000000e+00> : vector<16x128xf32>
    %365 = tpu.matmul %363, %364, %cst_196 {dimension_numbers = #tpu.dot_dimension_numbers<[1], [0], [0], [1], [0, 0, 1, 1], [], []>} : vector<16x8xbf16>, vector<8x128xbf16>, vector<16x128xf32> -> vector<16x128xf32>
    %366 = arith.addf %361, %365 : vector<16x128xf32>
    %367 = arith.truncf %366 : vector<16x128xf32> to vector<16x128xbf16>
    %368 = arith.truncf %72 : vector<16x128xf32> to vector<16x128xbf16>
    %369 = tpu.concatenate %367, %368 in 1 : vector<16x128xbf16>, vector<16x128xbf16> -> vector<16x256xbf16>
    %c0_197 = arith.constant 0 : index
    %c0_198 = arith.constant 0 : index
    %370 = vector.load %arg6[%c0_197, %c0_198] : memref<256x128xbf16, #tpu.memory_space<vmem>>, vector<256x128xbf16>
    %cst_199 = arith.constant dense<0.000000e+00> : vector<16x128xf32>
    %371 = tpu.matmul %369, %370, %cst_199 {dimension_numbers = #tpu.dot_dimension_numbers<[1], [0], [0], [1], [0, 0, 1, 1], [], []>} : vector<16x256xbf16>, vector<256x128xbf16>, vector<16x128xf32> -> vector<16x128xf32>
    %c0_200 = arith.constant 0 : index
    %c0_201 = arith.constant 0 : index
    %c0_202 = arith.constant 0 : index
    %372 = vector.load %arg5[%c0_200, %c0_201, %c0_202] : memref<3x384x128xbf16, #tpu.memory_space<vmem>>, vector<1x384x128xbf16>
    %373 = vector.shape_cast %372 : vector<1x384x128xbf16> to vector<384x128xbf16>
    %374 = arith.truncf %371 : vector<16x128xf32> to vector<16x128xbf16>
    %cst_203 = arith.constant 0.000000e+00 : bf16
    %375 = vector.broadcast %cst_203 : bf16 to vector<1x128xbf16>
    %376 = vector.extract_strided_slice %374 {offsets = [0, 0], sizes = [15, 128], strides = [1, 1]} : vector<16x128xbf16> to vector<15x128xbf16>
    %377 = tpu.concatenate %375, %376 in 0 : vector<1x128xbf16>, vector<15x128xbf16> -> vector<16x128xbf16>
    %378 = vector.extract_strided_slice %374 {offsets = [1, 0], sizes = [15, 128], strides = [1, 1]} : vector<16x128xbf16> to vector<15x128xbf16>
    %379 = tpu.concatenate %378, %375 in 0 : vector<15x128xbf16>, vector<1x128xbf16> -> vector<16x128xbf16>
    %380 = tpu.concatenate %377, %374, %379 in 1 : vector<16x128xbf16>, vector<16x128xbf16>, vector<16x128xbf16> -> vector<16x384xbf16>
    %cst_204 = arith.constant dense<0.000000e+00> : vector<16x128xf32>
    %381 = tpu.matmul %380, %373, %cst_204 {dimension_numbers = #tpu.dot_dimension_numbers<[1], [0], [0], [1], [0, 0, 1, 1], [], []>} : vector<16x384xbf16>, vector<384x128xbf16>, vector<16x128xf32> -> vector<16x128xf32>
    %c0_205 = arith.constant 0 : index
    %c0_206 = arith.constant 0 : index
    %382 = vector.load %arg2[%c0_205, %c0_206] : memref<4x128xf32, #tpu.memory_space<vmem>>, vector<1x128xf32>
    %383 = vector.broadcast %382 : vector<1x128xf32> to vector<16x128xf32>
    %384 = arith.addf %381, %383 : vector<16x128xf32>
    %cst_207 = arith.constant 0.000000e+00 : f32
    %385 = vector.broadcast %cst_207 : f32 to vector<16x128xf32>
    %386 = arith.cmpf oge, %384, %385 : vector<16x128xf32>
    %c3_208 = arith.constant 3 : index
    %c0_209 = arith.constant 0 : index
    %387 = vector.load %arg2[%c3_208, %c0_209] : memref<4x128xf32, #tpu.memory_space<vmem>>, vector<1x128xf32>
    %388 = vector.broadcast %387 : vector<1x128xf32> to vector<16x128xf32>
    %389 = arith.mulf %388, %384 : vector<16x128xf32>
    %390 = arith.select %386, %384, %389 : vector<16x128xi1>, vector<16x128xf32>
    %c1_210 = arith.constant 1 : index
    %c0_211 = arith.constant 0 : index
    %c0_212 = arith.constant 0 : index
    %391 = vector.load %arg5[%c1_210, %c0_211, %c0_212] : memref<3x384x128xbf16, #tpu.memory_space<vmem>>, vector<1x384x128xbf16>
    %392 = vector.shape_cast %391 : vector<1x384x128xbf16> to vector<384x128xbf16>
    %393 = arith.truncf %390 : vector<16x128xf32> to vector<16x128xbf16>
    %cst_213 = arith.constant 0.000000e+00 : bf16
    %394 = vector.broadcast %cst_213 : bf16 to vector<1x128xbf16>
    %395 = vector.extract_strided_slice %393 {offsets = [0, 0], sizes = [15, 128], strides = [1, 1]} : vector<16x128xbf16> to vector<15x128xbf16>
    %396 = tpu.concatenate %394, %395 in 0 : vector<1x128xbf16>, vector<15x128xbf16> -> vector<16x128xbf16>
    %397 = vector.extract_strided_slice %393 {offsets = [1, 0], sizes = [15, 128], strides = [1, 1]} : vector<16x128xbf16> to vector<15x128xbf16>
    %398 = tpu.concatenate %397, %394 in 0 : vector<15x128xbf16>, vector<1x128xbf16> -> vector<16x128xbf16>
    %399 = tpu.concatenate %396, %393, %398 in 1 : vector<16x128xbf16>, vector<16x128xbf16>, vector<16x128xbf16> -> vector<16x384xbf16>
    %cst_214 = arith.constant dense<0.000000e+00> : vector<16x128xf32>
    %400 = tpu.matmul %399, %392, %cst_214 {dimension_numbers = #tpu.dot_dimension_numbers<[1], [0], [0], [1], [0, 0, 1, 1], [], []>} : vector<16x384xbf16>, vector<384x128xbf16>, vector<16x128xf32> -> vector<16x128xf32>
    %c1_215 = arith.constant 1 : index
    %c0_216 = arith.constant 0 : index
    %401 = vector.load %arg2[%c1_215, %c0_216] : memref<4x128xf32, #tpu.memory_space<vmem>>, vector<1x128xf32>
    %402 = vector.broadcast %401 : vector<1x128xf32> to vector<16x128xf32>
    %403 = arith.addf %400, %402 : vector<16x128xf32>
    %cst_217 = arith.constant dense<0.000000e+00> : vector<128xf32>
    %404 = vector.multi_reduction <add>, %403, %cst_217 [0] : vector<16x128xf32> to vector<128xf32>
    %405 = vector.shape_cast %404 : vector<128xf32> to vector<1x128xf32>
    %c0_218 = arith.constant 0 : index
    %c0_219 = arith.constant 0 : index
    %c0_220 = arith.constant 0 : index
    %406 = vector.load %arg4[%c0_218, %c0_219, %c0_220] : memref<2x2x128xf32, #tpu.memory_space<vmem>>, vector<1x2x128xf32>
    %407 = vector.shape_cast %406 : vector<1x2x128xf32> to vector<2x128xf32>
    %408 = vector.broadcast %405 : vector<1x128xf32> to vector<2x128xf32>
    %409 = arith.mulf %407, %408 : vector<2x128xf32>
    %cst_221 = arith.constant dense<0.000000e+00> : vector<2xf32>
    %410 = vector.multi_reduction <add>, %409, %cst_221 [1] : vector<2x128xf32> to vector<2xf32>
    %411 = vector.shape_cast %410 : vector<2xf32> to vector<2x1xf32>
    %c0_222 = arith.constant 0 : index
    %c0_223 = arith.constant 0 : index
    %412 = vector.load %arg3[%c0_222, %c0_223] : memref<2x1xf32, #tpu.memory_space<vmem>>, vector<2x1xf32>
    %413 = arith.addf %411, %412 : vector<2x1xf32>
    %cst_224 = arith.constant 0.000000e+00 : f32
    %414 = vector.broadcast %cst_224 : f32 to vector<2x1xf32>
    %415 = arith.maximumf %413, %414 : vector<2x1xf32>
    %c1_225 = arith.constant 1 : index
    %c0_226 = arith.constant 0 : index
    %c0_227 = arith.constant 0 : index
    %416 = vector.load %arg4[%c1_225, %c0_226, %c0_227] : memref<2x2x128xf32, #tpu.memory_space<vmem>>, vector<1x2x128xf32>
    %417 = vector.shape_cast %416 : vector<1x2x128xf32> to vector<2x128xf32>
    %418 = vector.broadcast %415 : vector<2x1xf32> to vector<2x128xf32>
    %419 = arith.mulf %417, %418 : vector<2x128xf32>
    %cst_228 = arith.constant dense<0.000000e+00> : vector<128xf32>
    %420 = vector.multi_reduction <add>, %419, %cst_228 [0] : vector<2x128xf32> to vector<128xf32>
    %421 = vector.shape_cast %420 : vector<128xf32> to vector<1x128xf32>
    %c2_229 = arith.constant 2 : index
    %c0_230 = arith.constant 0 : index
    %422 = vector.load %arg2[%c2_229, %c0_230] : memref<4x128xf32, #tpu.memory_space<vmem>>, vector<1x128xf32>
    %423 = arith.addf %421, %422 : vector<1x128xf32>
    %424 = arith.negf %423 : vector<1x128xf32>
    %425 = math.exp %424 : vector<1x128xf32>
    %cst_231 = arith.constant 1.000000e+00 : f32
    %426 = vector.broadcast %cst_231 : f32 to vector<1x128xf32>
    %427 = arith.addf %426, %425 : vector<1x128xf32>
    %428 = arith.divf %426, %427 : vector<1x128xf32>
    %429 = vector.broadcast %428 : vector<1x128xf32> to vector<16x128xf32>
    %430 = arith.mulf %403, %429 : vector<16x128xf32>
    %431 = arith.addf %430, %371 : vector<16x128xf32>
    %c2_232 = arith.constant 2 : index
    %c0_233 = arith.constant 0 : index
    %c0_234 = arith.constant 0 : index
    %432 = vector.load %arg5[%c2_232, %c0_233, %c0_234] : memref<3x384x128xbf16, #tpu.memory_space<vmem>>, vector<1x384x128xbf16>
    %433 = vector.shape_cast %432 : vector<1x384x128xbf16> to vector<384x128xbf16>
    %434 = arith.truncf %431 : vector<16x128xf32> to vector<16x128xbf16>
    %cst_235 = arith.constant 0.000000e+00 : bf16
    %435 = vector.broadcast %cst_235 : bf16 to vector<1x128xbf16>
    %436 = vector.extract_strided_slice %434 {offsets = [0, 0], sizes = [15, 128], strides = [1, 1]} : vector<16x128xbf16> to vector<15x128xbf16>
    %437 = tpu.concatenate %435, %436 in 0 : vector<1x128xbf16>, vector<15x128xbf16> -> vector<16x128xbf16>
    %438 = vector.extract_strided_slice %434 {offsets = [1, 0], sizes = [15, 128], strides = [1, 1]} : vector<16x128xbf16> to vector<15x128xbf16>
    %439 = tpu.concatenate %438, %435 in 0 : vector<15x128xbf16>, vector<1x128xbf16> -> vector<16x128xbf16>
    %440 = tpu.concatenate %437, %434, %439 in 1 : vector<16x128xbf16>, vector<16x128xbf16>, vector<16x128xbf16> -> vector<16x384xbf16>
    %cst_236 = arith.constant dense<0.000000e+00> : vector<16x128xf32>
    %441 = tpu.matmul %440, %433, %cst_236 {dimension_numbers = #tpu.dot_dimension_numbers<[1], [0], [0], [1], [0, 0, 1, 1], [], []>} : vector<16x384xbf16>, vector<384x128xbf16>, vector<16x128xf32> -> vector<16x128xf32>
    %442 = arith.addf %441, %371 : vector<16x128xf32>
    %443 = arith.addf %1, %442 : vector<16x128xf32>
    %c0_237 = arith.constant 0 : index
    %c0_238 = arith.constant 0 : index
    %c0_239 = arith.constant 0 : index
    %444 = vector.load %arg32[%c0_237, %c0_238, %c0_239] : memref<1x16x128xf32, #tpu.memory_space<vmem>>, vector<1x16x128xf32>
    %445 = vector.shape_cast %444 : vector<1x16x128xf32> to vector<16x128xf32>
    %446 = vector.shape_cast %443 : vector<16x128xf32> to vector<1x16x128xf32>
    tpu.vector_store %arg32[%c0_237, %c0_238, %c0_239], %446 {strides = array<i32>} : memref<1x16x128xf32, #tpu.memory_space<vmem>>, vector<1x16x128xf32>,
    return
  }
  func.func @transform_0(%arg0: i32) -> (i32, i32, i32) {
    %c0_i32 = arith.constant 0 : i32
    %c0_i32_0 = arith.constant 0 : i32
    %c0_i32_1 = arith.constant 0 : i32
    return %arg0, %c0_i32, %c0_i32_0 : i32, i32, i32
  }
  func.func @transform_1(%arg0: i32) -> (i32, i32) {
    %c0_i32 = arith.constant 0 : i32
    %c0_i32_0 = arith.constant 0 : i32
    %c0_i32_1 = arith.constant 0 : i32
    return %c0_i32, %c0_i32_0 : i32, i32
  }
  func.func @transform_2(%arg0: i32) -> (i32, i32) {
    %c0_i32 = arith.constant 0 : i32
    %c0_i32_0 = arith.constant 0 : i32
    %c0_i32_1 = arith.constant 0 : i32
    return %c0_i32, %c0_i32_0 : i32, i32
  }
  func.func @transform_3(%arg0: i32) -> (i32, i32, i32) {
    %c0_i32 = arith.constant 0 : i32
    %c0_i32_0 = arith.constant 0 : i32
    %c0_i32_1 = arith.constant 0 : i32
    %c0_i32_2 = arith.constant 0 : i32
    return %c0_i32, %c0_i32_0, %c0_i32_1 : i32, i32, i32
  }
  func.func @transform_4(%arg0: i32) -> (i32, i32, i32) {
    %c0_i32 = arith.constant 0 : i32
    %c0_i32_0 = arith.constant 0 : i32
    %c0_i32_1 = arith.constant 0 : i32
    %c0_i32_2 = arith.constant 0 : i32
    return %c0_i32, %c0_i32_0, %c0_i32_1 : i32, i32, i32
  }
  func.func @transform_5(%arg0: i32) -> (i32, i32) {
    %c0_i32 = arith.constant 0 : i32
    %c0_i32_0 = arith.constant 0 : i32
    %c0_i32_1 = arith.constant 0 : i32
    return %c0_i32, %c0_i32_0 : i32, i32
  }
  func.func @transform_6(%arg0: i32) -> (i32, i32) {
    %c0_i32 = arith.constant 0 : i32
    %c0_i32_0 = arith.constant 0 : i32
    %c0_i32_1 = arith.constant 0 : i32
    return %c0_i32, %c0_i32_0 : i32, i32
  }
  func.func @transform_7(%arg0: i32) -> (i32, i32) {
    %c0_i32 = arith.constant 0 : i32
    %c0_i32_0 = arith.constant 0 : i32
    %c0_i32_1 = arith.constant 0 : i32
    return %c0_i32, %c0_i32_0 : i32, i32
  }
  func.func @transform_8(%arg0: i32) -> (i32, i32, i32) {
    %c0_i32 = arith.constant 0 : i32
    %c0_i32_0 = arith.constant 0 : i32
    %c0_i32_1 = arith.constant 0 : i32
    %c0_i32_2 = arith.constant 0 : i32
    return %c0_i32, %c0_i32_0, %c0_i32_1 : i32, i32, i32
  }
  func.func @transform_9(%arg0: i32) -> (i32, i32, i32) {
    %c0_i32 = arith.constant 0 : i32
    %c0_i32_0 = arith.constant 0 : i32
    %c0_i32_1 = arith.constant 0 : i32
    %c0_i32_2 = arith.constant 0 : i32
    return %c0_i32, %c0_i32_0, %c0_i32_1 : i32, i32, i32
  }
  func.func @transform_10(%arg0: i32) -> (i32, i32) {
    %c0_i32 = arith.constant 0 : i32
    %c0_i32_0 = arith.constant 0 : i32
    %c0_i32_1 = arith.constant 0 : i32
    return %c0_i32, %c0_i32_0 : i32, i32
  }
  func.func @transform_11(%arg0: i32) -> (i32, i32, i32) {
    %c0_i32 = arith.constant 0 : i32
    %c0_i32_0 = arith.constant 0 : i32
    %c0_i32_1 = arith.constant 0 : i32
    %c0_i32_2 = arith.constant 0 : i32
    return %c0_i32, %c0_i32_0, %c0_i32_1 : i32, i32, i32
  }
  func.func @transform_12(%arg0: i32) -> (i32, i32) {
    %c0_i32 = arith.constant 0 : i32
    %c0_i32_0 = arith.constant 0 : i32
    %c0_i32_1 = arith.constant 0 : i32
    return %c0_i32, %c0_i32_0 : i32, i32
  }
  func.func @transform_13(%arg0: i32) -> (i32, i32, i32) {
    %c0_i32 = arith.constant 0 : i32
    %c0_i32_0 = arith.constant 0 : i32
    %c0_i32_1 = arith.constant 0 : i32
    %c0_i32_2 = arith.constant 0 : i32
    return %c0_i32, %c0_i32_0, %c0_i32_1 : i32, i32, i32
  }
  func.func @transform_14(%arg0: i32) -> (i32, i32) {
    %c0_i32 = arith.constant 0 : i32
    %c0_i32_0 = arith.constant 0 : i32
    %c0_i32_1 = arith.constant 0 : i32
    return %c0_i32, %c0_i32_0 : i32, i32
  }
  func.func @transform_15(%arg0: i32) -> (i32, i32) {
    %c0_i32 = arith.constant 0 : i32
    %c0_i32_0 = arith.constant 0 : i32
    %c0_i32_1 = arith.constant 0 : i32
    return %c0_i32, %c0_i32_0 : i32, i32
  }
  func.func @transform_16(%arg0: i32) -> (i32, i32) {
    %c0_i32 = arith.constant 0 : i32
    %c0_i32_0 = arith.constant 0 : i32
    %c0_i32_1 = arith.constant 0 : i32
    return %c0_i32, %c0_i32_0 : i32, i32
  }
  func.func @transform_17(%arg0: i32) -> (i32, i32, i32) {
    %c0_i32 = arith.constant 0 : i32
    %c0_i32_0 = arith.constant 0 : i32
    %c0_i32_1 = arith.constant 0 : i32
    %c0_i32_2 = arith.constant 0 : i32
    return %c0_i32, %c0_i32_0, %c0_i32_1 : i32, i32, i32
  }
  func.func @transform_18(%arg0: i32) -> (i32, i32, i32) {
    %c0_i32 = arith.constant 0 : i32
    %c0_i32_0 = arith.constant 0 : i32
    %c0_i32_1 = arith.constant 0 : i32
    %c0_i32_2 = arith.constant 0 : i32
    return %c0_i32, %c0_i32_0, %c0_i32_1 : i32, i32, i32
  }
  func.func @transform_19(%arg0: i32) -> (i32, i32) {
    %c0_i32 = arith.constant 0 : i32
    %c0_i32_0 = arith.constant 0 : i32
    %c0_i32_1 = arith.constant 0 : i32
    return %c0_i32, %c0_i32_0 : i32, i32
  }
  func.func @transform_20(%arg0: i32) -> (i32, i32) {
    %c0_i32 = arith.constant 0 : i32
    %c0_i32_0 = arith.constant 0 : i32
    %c0_i32_1 = arith.constant 0 : i32
    return %c0_i32, %c0_i32_0 : i32, i32
  }
  func.func @transform_21(%arg0: i32) -> (i32, i32, i32) {
    %c0_i32 = arith.constant 0 : i32
    %c0_i32_0 = arith.constant 0 : i32
    %c0_i32_1 = arith.constant 0 : i32
    %c0_i32_2 = arith.constant 0 : i32
    return %c0_i32, %c0_i32_0, %c0_i32_1 : i32, i32, i32
  }
  func.func @transform_22(%arg0: i32) -> (i32, i32, i32) {
    %c0_i32 = arith.constant 0 : i32
    %c0_i32_0 = arith.constant 0 : i32
    %c0_i32_1 = arith.constant 0 : i32
    %c0_i32_2 = arith.constant 0 : i32
    return %c0_i32, %c0_i32_0, %c0_i32_1 : i32, i32, i32
  }
  func.func @transform_23(%arg0: i32) -> (i32, i32) {
    %c0_i32 = arith.constant 0 : i32
    %c0_i32_0 = arith.constant 0 : i32
    %c0_i32_1 = arith.constant 0 : i32
    return %c0_i32, %c0_i32_0 : i32, i32
  }
  func.func @transform_24(%arg0: i32) -> (i32, i32) {
    %c0_i32 = arith.constant 0 : i32
    %c0_i32_0 = arith.constant 0 : i32
    %c0_i32_1 = arith.constant 0 : i32
    return %c0_i32, %c0_i32_0 : i32, i32
  }
  func.func @transform_25(%arg0: i32) -> (i32, i32, i32) {
    %c0_i32 = arith.constant 0 : i32
    %c0_i32_0 = arith.constant 0 : i32
    %c0_i32_1 = arith.constant 0 : i32
    %c0_i32_2 = arith.constant 0 : i32
    return %c0_i32, %c0_i32_0, %c0_i32_1 : i32, i32, i32
  }
  func.func @transform_26(%arg0: i32) -> (i32, i32, i32) {
    %c0_i32 = arith.constant 0 : i32
    %c0_i32_0 = arith.constant 0 : i32
    %c0_i32_1 = arith.constant 0 : i32
    %c0_i32_2 = arith.constant 0 : i32
    return %c0_i32, %c0_i32_0, %c0_i32_1 : i32, i32, i32
  }
  func.func @transform_27(%arg0: i32) -> (i32, i32, i32) {
    %c0_i32 = arith.constant 0 : i32
    %c0_i32_0 = arith.constant 0 : i32
    %c0_i32_1 = arith.constant 0 : i32
    %c0_i32_2 = arith.constant 0 : i32
    return %c0_i32, %c0_i32_0, %c0_i32_1 : i32, i32, i32
  }
  func.func @transform_28(%arg0: i32) -> (i32, i32) {
    %c0_i32 = arith.constant 0 : i32
    %c0_i32_0 = arith.constant 0 : i32
    %c0_i32_1 = arith.constant 0 : i32
    return %c0_i32, %c0_i32_0 : i32, i32
  }
  func.func @transform_29(%arg0: i32) -> (i32, i32, i32) {
    %c0_i32 = arith.constant 0 : i32
    %c0_i32_0 = arith.constant 0 : i32
    %c0_i32_1 = arith.constant 0 : i32
    %c0_i32_2 = arith.constant 0 : i32
    return %c0_i32, %c0_i32_0, %c0_i32_1 : i32, i32, i32
  }
  func.func @transform_30(%arg0: i32) -> (i32, i32) {
    %c0_i32 = arith.constant 0 : i32
    %c0_i32_0 = arith.constant 0 : i32
    %c0_i32_1 = arith.constant 0 : i32
    return %c0_i32, %c0_i32_0 : i32, i32
  }
  func.func @transform_31(%arg0: i32) -> (i32, i32, i32) {
    %c0_i32 = arith.constant 0 : i32
    %c0_i32_0 = arith.constant 0 : i32
    %c0_i32_1 = arith.constant 0 : i32
    return %arg0, %c0_i32, %c0_i32_0 : i32, i32, i32
  }
}

</mosaic_0001>

<bundles_post_ra>
// kernel: uorb_forward.1
= control target key start
LH: loop header
LB: loop body
LE: loop exit
PB: predicated region body
PF: predicated region fallthrough
CT: control target
= control target key end

     0   :  { %s11687_s6 = smov 1   ;;  %s11688_s10 = smov 2   ;;  %s12782_s0 = inlined_call_operand.smem [shape: u32[32], index: -1, kind: input, shape index: {}] }
   0x1   :  { %s11755_s5 = sld [smem:[%s12782_s0]]   ;;  %s11689_s14 = smov 3  }
   0x2   :  { %s11760_s9 = sld [smem:[%s12782_s0 + %s11687_s6]]   ;;  %s11690_s18 = smov 4  }
   0x3   :  { %s11765_s13 = sld [smem:[%s12782_s0 + %s11688_s10]]   ;;  %s11691_s22 = smov 5  }
   0x4   :  { %s11770_s17 = sld [smem:[%s12782_s0 + %s11689_s14]]   ;;  %s11692_s26 = smov 6  }
   0x5   :  { %s11775_s21 = sld [smem:[%s12782_s0 + %s11690_s18]]   ;;  %s11693_s30 = smov 7  }
   0x6   :  { %s11780_s25 = sld [smem:[%s12782_s0 + %s11691_s22]]   ;;  %s11694_s4 = smov 8  }
   0x7   :  { %12813 = sst [smem:[#allocation44_spill]] %s11755_s5  ;;  %s11695_s10 = smov 9  }
   0x8   :  { %12814 = sst [smem:[#allocation45_spill]] %s11760_s9  ;;  %s11696_s15 = smov 10  }
   0x9   :  { %12815 = sst [smem:[#allocation46_spill]] %s11765_s13  ;;  %s11697_s20 = smov 11  }
   0xa   :  { %12816 = sst [smem:[#allocation47_spill]] %s11770_s17  ;;  %s11699_s1 = smov 13  }
   0xb   :  { %12817 = sst [smem:[#allocation48_spill]] %s11775_s21  ;;  %s11700_s7 = smov 14  }
   0xc   :  { %s11785_s29 = sld [smem:[%s12782_s0 + %s11692_s26]]   ;;  %s11698_s26 = smov 12  }
   0xd   :  { %s11790_s3 = sld [smem:[%s12782_s0 + %s11693_s30]]   ;;  %s11702_s22 = smov 16  }
   0xe   :  { %s11795_s8 = sld [smem:[%s12782_s0 + %s11694_s4]]   ;;  %s11703_s28 = smov 17  }
   0xf   :  { %s11800_s14 = sld [smem:[%s12782_s0 + %s11695_s10]]  }
  0x10   :  { %s11805_s19 = sld [smem:[%s12782_s0 + %s11696_s15]]   ;;  %s11701_s15 = smov 15  }
  0x11   :  { %s11810_s24 = sld [smem:[%s12782_s0 + %s11697_s20]]  }
  0x12   :  { %s11815_s30 = sld [smem:[%s12782_s0 + %s11698_s26]]  }
  0x13   :  { %12818 = sst [smem:[#allocation49_spill]] %s11790_s3 }
  0x14   :  { %12819 = sst [smem:[#allocation50_spill]] %s11795_s8 }
  0x15   :  { %s11820_s6 = sld [smem:[%s12782_s0 + %s11699_s1]]  }
  0x16   :  { %12820 = sst [smem:[#allocation51_spill]] %s11805_s19 }
  0x17   :  { %s11825_s12 = sld [smem:[%s12782_s0 + %s11700_s7]]   ;;  %s11704_s7 = smov 18  }
  0x18   :  { %s11830_s20 = sld [smem:[%s12782_s0 + %s11701_s15]]   ;;  %s11705_s15 = smov 19  }
  0x19   :  { %s11835_s27 = sld [smem:[%s12782_s0 + %s11702_s22]]   ;;  %s11706_s22 = smov 20  }
  0x1a   :  { %s11840_s4 = sld [smem:[%s12782_s0 + %s11703_s28]]   ;;  %s11707_s28 = smov 21  }
  0x1b   :  { %12821 = sst [smem:[#allocation52_spill]] %s11820_s6 }
  0x1c   :  { %s11845_s13 = sld [smem:[%s12782_s0 + %s11704_s7]]   ;;  %s11708_s7 = smov 22  }
  0x1d   :  { %12822 = sst [smem:[#allocation53_spill]] %s11825_s12 }
  0x1e   :  { %12823 = sst [smem:[#allocation54_spill]] %s11830_s20 }
  0x1f   :  { %12824 = sst [smem:[#allocation55_spill]] %s11835_s27 }
  0x20   :  { %12825 = sst [smem:[#allocation56_spill]] %s11840_s4 }
  0x21   :  { %s11850_s21 = sld [smem:[%s12782_s0 + %s11705_s15]]   ;;  %s11709_s15 = smov 23  }
  0x22   :  { %12826 = sst [smem:[#allocation57_spill]] %s11845_s13 }
  0x23   :  { %s11855_s3 = sld [smem:[%s12782_s0 + %s11706_s22]]   ;;  %s11710_s22 = smov 24  }
  0x24   :  { %s11860_s8 = sld [smem:[%s12782_s0 + %s11707_s28]]   ;;  %s11711_s28 = smov 25  }
  0x25   :  { %s11865_s27 = sld [smem:[%s12782_s0 + %s11708_s7]]   ;;  %s11712_s7 = smov 26  }
  0x26   :  { %s11870_s5 = sld [smem:[%s12782_s0 + %s11709_s15]]   ;;  %s11713_s15 = smov 27  }
  0x27   :  { %s11885_s13 = sld [smem:[%s12782_s0 + %s11712_s7]]   ;;  %s11716_s7 = smov 30  }
  0x29   :  { %12827 = sst [smem:[#allocation58_spill]] %s11855_s3 }
  0x2a   :  { %12828 = sst [smem:[#allocation59_spill]] %s11860_s8 }
  0x2b   :  { %s11875_s3 = sld [smem:[%s12782_s0 + %s11710_s22]]   ;;  %s11714_s22 = smov 28  }
  0x2c   :  { %12829 = sst [smem:[#allocation60_spill]] %s11870_s5 }
  0x2d   :  { %s11880_s8 = sld [smem:[%s12782_s0 + %s11711_s28]]   ;;  %s11715_s28 = smov 29  }
  0x2e   :  { %12832 = sst [smem:[#allocation63_spill]] %s11885_s13 }
  0x2f   :  { %s11890_s5 = sld [smem:[%s12782_s0 + %s11713_s15]]   ;;  %s11717_s15 = smov 31  }
  0x30   :  { %s11900_s20 = sld [smem:[%s12782_s0 + %s11715_s28]]  }
  0x31   :  { %12830 = sst [smem:[#allocation61_spill]] %s11875_s3 }
  0x32   :  { %s11895_s3 = sld [smem:[%s12782_s0 + %s11714_s22]]  }
  0x33   :  { %12831 = sst [smem:[#allocation62_spill]] %s11880_s8 }
  0x34   :  { %s11905_s13 = sld [smem:[%s12782_s0 + %s11716_s7]]  }
  0x35   :  { %12833 = sst [smem:[#allocation64_spill]] %s11890_s5 }
  0x36   :  { %s11910_s5 = sld [smem:[%s12782_s0 + %s11717_s15]]  }
  0x37   :  { %68 = vsyncpa [#allocation3], 0 }
  0x38   :  { %69 = vsyncpa [#allocation5], 0 }
  0x39   :  { %70 = vsyncpa [#allocation8], 0 }
  0x3a   :  { %71 = vsyncpa [#allocation11], 0 }
  0x3b   :  { %72 = vsyncpa [#allocation14], 0 }
  0x3c   :  { %73 = vsyncpa [#allocation17], 0 }
  0x3d   :  { %74 = vsyncpa [#allocation20], 0 }
  0x3e   :  { %75 = vsyncpa [#allocation23], 0 }
  0x3f   :  { %76 = vsyncpa [#allocation26], 0 }
  0x40   :  { %77 = vsyncpa [#allocation29], 0 }
  0x41   :  { %78 = vsyncpa [#allocation32], 0  ;;  %s11912_s22 = smov 0  }
  0x42 LB: > { %s12834_s6 = sld [smem:[#allocation52_spill]]  ;;  %s12835_s9 = sld [smem:[#allocation45_spill]]  ;;  %s11685_s22 = sphi %s11912_s22, %s84_s22  }
  0x43   : > { %s12836_s19 = sld [smem:[#allocation51_spill]]  ;;  %s12837_s8 = sld [smem:[#allocation62_spill]] }
  0x44   : > { %s12838_s12 = sld [smem:[#allocation53_spill]]  ;;  %s12839_s4 = sld [smem:[#allocation56_spill]] }
  0x45   : > { %s12840_s17 = sld [smem:[#allocation47_spill]]  ;;  %s11718_s0 = smov [#allocation4]  }
  0x46   : > { %s797_s23 = sshll.u32 %s11718_s0, 4  ;;  %s11918_s26 = sadd.s32 4294967295, %s11685_s22   ;;  %s11923_s23 = int_to_ptr.vmem [resolvable:$true] %s797_s23 }
  0x47   : > { %p8448_p0 = scmp.ge.s32.totalorder %s11685_s22, 1  ;;  %p771_p1 = scmp.lt.s32.totalorder %s11685_s22, 3 }
  0x48   : > { %p12791_p2 = scmp.eq.s32.totalorder %s11918_s26, 0  ;;  %s11719_s1 = smov [#allocation7]  }
  0x49   : > { %p11925_p3 = pnand %p8448_p0, %p771_p1  ;;  %s827_s2 = sshll.u32 %s11719_s1, 4  ;;  %s11931_s2 = int_to_ptr.vmem [resolvable:$true] %s827_s2 }
  0x4a   : > { %s11720_s10 = smov [#allocation10]  }
  0x4b   : > { %s12841_s28 = scalar_select %p11925_p3, 1, 0 }
  0x4c   : > { %p10198_p4 = pneg %p11925_p3  ;;  %s11939_s11 = sshll.u32 %s11720_s10, 4  ;;  %s857_s11 = int_to_ptr.vmem [resolvable:$true] %s11939_s11 }
  0x4d   : > { %s11075_s15 = scalar_lea.hbm %s12840_s17, 64 }
  0x4e   : > { %p11935_p5 = pnand %p12791_p2, %p10198_p4  ;;  %p11076_p6 = scmp.ne.s32.totalorder %s12840_s17, %s11075_s15 }
  0x4f   : > { %p11082_p10 = scmp.lt.u32.totalorder %s11075_s15, %s12840_s17 }
  0x50   : > { %p11945_p7 = pneg %p11935_p5 }
  0x52   : > { %p11078_p8 = pnand %p11945_p7, %p11076_p6 }
  0x54   : > { %p11079_p9 = pneg %p11078_p8 }
  0x56   : > { %p11084_p11 = pnand %p11082_p10, %p11079_p9 }
  0x58   : > { %11087 = shalt.err (!%p11084_p11)
}
  0x59   : > { %s11088_s18 = scalar_lea.vmem %s11923_s23, 64  ;;  %p11096_p1 = scmp.lt.s32.totalorder %s11923_s23, %s11923_s23 }
  0x5a   : > { %p11089_p12 = scmp.ne.s32.totalorder %s11923_s23, %s11088_s18  ;;  %p11097_p4 = scmp.lt.s32.totalorder %s11088_s18, %s11088_s18 }
  0x5c   : > { %p11091_p13 = pnand %p11089_p12, %p11945_p7  ;;  %p11098_p2 = por %p11097_p4, %p11096_p1 }
  0x5e   : > { %p11092_p0 = pneg %p11091_p13 }
  0x60   : > { %p11099_p3 = pnand %p11098_p2, %p11092_p0 }
  0x62   : > { %11102 = shalt.err (!%p11099_p3)
}
  0x63   : > { %s12797_s0 = smov 32   ;;  %s12799_s1 = smov 2  }
  0x64   : > { %10204 = dma.hbm_to_vmem [thread:$0]  (!%p11935_p5), %s12840_s17, 64, %s11923_s23, [#allocation5], %s12797_s0, %s12797_s0, %s12799_s1  }
  0x65   : > { %s11103_s10 = scalar_lea.hbm %s11785_s29, 64 }
  0x66   : > { %p11104_p6 = scmp.ne.s32.totalorder %s11785_s29, %s11103_s10  ;;  %p11110_p3 = scmp.lt.u32.totalorder %s11103_s10, %s11785_s29 }
  0x68   : > { %p11106_p8 = pnand %p11104_p6, %p11945_p7 }
  0x6a   : > { %p11107_p2 = pneg %p11106_p8 }
  0x6c   : > { %p11112_p9 = pnand %p11110_p3, %p11107_p2 }
  0x6e   : > { %11115 = shalt.err (!%p11112_p9)
}
  0x6f   : > { %s11116_s15 = scalar_lea.vmem %s11931_s2, 64  ;;  %p11124_p13 = scmp.lt.s32.totalorder %s11931_s2, %s11931_s2 }
  0x70   : > { %p11117_p10 = scmp.ne.s32.totalorder %s11931_s2, %s11116_s15  ;;  %p11125_p0 = scmp.lt.s32.totalorder %s11116_s15, %s11116_s15 }
  0x72   : > { %p11119_p11 = pnand %p11117_p10, %p11945_p7  ;;  %p11126_p1 = por %p11125_p0, %p11124_p13 }
  0x74   : > { %p11120_p12 = pneg %p11119_p11 }
  0x76   : > { %p11127_p4 = pnand %p11126_p1, %p11120_p12 }
  0x78   : > { %11130 = shalt.err (!%p11127_p4)
}
  0x79   : > { %10210 = dma.hbm_to_vmem [thread:$0]  (!%p11935_p5), %s11785_s29, 64, %s11931_s2, [#allocation8]  }
  0x7a   : > { %s11723_s23 = smov [#allocation13]   ;;  %s11131_s10 = scalar_lea.hbm %s12836_s19, 2048 }
  0x7b   : > { %s882_s18 = sshll.u32 %s11723_s23, 4  ;;  %p11132_p6 = scmp.ne.s32.totalorder %s12836_s19, %s11131_s10  ;;  %s883_s18 = int_to_ptr.vmem [resolvable:$true] %s882_s18 }
  0x7c   : > { %p11138_p3 = scmp.lt.u32.totalorder %s11131_s10, %s12836_s19 }
  0x7d   : > { %p11134_p8 = pnand %p11132_p6, %p11945_p7 }
  0x7f   : > { %p11135_p2 = pneg %p11134_p8 }
  0x81   : > { %p11140_p9 = pnand %p11138_p3, %p11135_p2 }
  0x83   : > { %11143 = shalt.err (!%p11140_p9)
}
  0x84   : > { %s11144_s15 = scalar_lea.vmem %s857_s11, 2048  ;;  %p11152_p13 = scmp.lt.s32.totalorder %s857_s11, %s857_s11 }
  0x85   : > { %p11145_p10 = scmp.ne.s32.totalorder %s857_s11, %s11144_s15  ;;  %p11153_p0 = scmp.lt.s32.totalorder %s11144_s15, %s11144_s15 }
  0x87   : > { %p11147_p11 = pnand %p11145_p10, %p11945_p7  ;;  %p11154_p1 = por %p11153_p0, %p11152_p13 }
  0x89   : > { %p11148_p12 = pneg %p11147_p11 }
  0x8b   : > { %p11155_p4 = pnand %p11154_p1, %p11148_p12 }
  0x8d   : > { %11158 = shalt.err (!%p11155_p4)
}
  0x8e   : > { %s12793_s2 = smov 64   ;;  %s12795_s23 = smov 4  }
  0x8f   : > { %10216 = dma.hbm_to_vmem [thread:$0]  (!%p11935_p5), %s12836_s19, 2048, %s857_s11, [#allocation11], %s12793_s2, %s12793_s2, %s12795_s23  }
  0x90   : > { %s11159_s10 = scalar_lea.hbm %s11815_s30, 6144 }
  0x91   : > { %p11160_p6 = scmp.ne.s32.totalorder %s11815_s30, %s11159_s10  ;;  %p11166_p3 = scmp.lt.u32.totalorder %s11159_s10, %s11815_s30 }
  0x93   : > { %p11162_p8 = pnand %p11160_p6, %p11945_p7 }
  0x95   : > { %p11163_p2 = pneg %p11162_p8 }
  0x97   : > { %p11168_p9 = pnand %p11166_p3, %p11163_p2 }
  0x99   : > { %11171 = shalt.err (!%p11168_p9)
}
  0x9a   : > { %s11172_s15 = scalar_lea.vmem %s883_s18, 6144  ;;  %p11180_p13 = scmp.lt.s32.totalorder %s883_s18, %s883_s18 }
  0x9b   : > { %p11173_p10 = scmp.ne.s32.totalorder %s883_s18, %s11172_s15  ;;  %p11181_p0 = scmp.lt.s32.totalorder %s11172_s15, %s11172_s15 }
  0x9d   : > { %p11175_p11 = pnand %p11173_p10, %p11945_p7  ;;  %p11182_p1 = por %p11181_p0, %p11180_p13 }
  0x9f   : > { %p11176_p12 = pneg %p11175_p11 }
  0xa1   : > { %p11183_p4 = pnand %p11182_p1, %p11176_p12 }
  0xa3   : > { %11186 = shalt.err (!%p11183_p4)
}
  0xa4   : > { %s12802_s11 = smov 128   ;;  %s12804_s10 = smov 8  }
  0xa5   : > { %10222 = dma.hbm_to_vmem [thread:$0]  (!%p11935_p5), %s11815_s30, 6144, %s883_s18, [#allocation14], %s12802_s11, %s12802_s11, %s12804_s10  }
  0xa6   : > { %s11728_s2 = smov [#allocation16]   ;;  %s11729_s15 = smov [#allocation19]  }
  0xa7   : > { %s908_s23 = sshll.u32 %s11728_s2, 4  ;;  %s935_s0 = sshll.u32 %s11729_s15, 4  ;;  %s909_s23 = int_to_ptr.vmem [resolvable:$true] %s908_s23  ;;  %s936_s0 = int_to_ptr.vmem [resolvable:$true] %s935_s0 }
  0xa8   : > { %s11187_s1 = scalar_lea.hbm %s12838_s12, 6144 }
  0xa9   : > { %p11188_p6 = scmp.ne.s32.totalorder %s12838_s12, %s11187_s1  ;;  %p11194_p3 = scmp.lt.u32.totalorder %s11187_s1, %s12838_s12 }
  0xab   : > { %p11190_p8 = pnand %p11188_p6, %p11945_p7 }
  0xad   : > { %p11191_p2 = pneg %p11190_p8 }
  0xaf   : > { %p11196_p9 = pnand %p11194_p3, %p11191_p2 }
  0xb1   : > { %11199 = shalt.err (!%p11196_p9)
}
  0xb2   : > { %s11200_s17 = scalar_lea.vmem %s909_s23, 6144  ;;  %p11208_p13 = scmp.lt.s32.totalorder %s909_s23, %s909_s23 }
  0xb3   : > { %p11201_p10 = scmp.ne.s32.totalorder %s909_s23, %s11200_s17  ;;  %p11209_p0 = scmp.lt.s32.totalorder %s11200_s17, %s11200_s17 }
  0xb5   : > { %p11203_p11 = pnand %p11201_p10, %p11945_p7  ;;  %p11210_p1 = por %p11209_p0, %p11208_p13 }
  0xb7   : > { %p11204_p12 = pneg %p11203_p11 }
  0xb9   : > { %p11211_p4 = pnand %p11210_p1, %p11204_p12 }
  0xbb   : > { %11214 = shalt.err (!%p11211_p4)
}
  0xbc   : > { %10228 = dma.hbm_to_vmem [thread:$0]  (!%p11935_p5), %s12838_s12, 6144, %s909_s23, [#allocation17], %s12802_s11, %s12802_s11, %s12804_s10  }
  0xbd   : > { %s11215_s1 = scalar_lea.hbm %s12839_s4, 64 }
  0xbe   : > { %p11216_p6 = scmp.ne.s32.totalorder %s12839_s4, %s11215_s1  ;;  %p11222_p3 = scmp.lt.u32.totalorder %s11215_s1, %s12839_s4 }
  0xc0   : > { %p11218_p8 = pnand %p11216_p6, %p11945_p7 }
  0xc2   : > { %p11219_p2 = pneg %p11218_p8 }
  0xc4   : > { %p11224_p9 = pnand %p11222_p3, %p11219_p2 }
  0xc6   : > { %11227 = shalt.err (!%p11224_p9)
}
  0xc7   : > { %s11228_s17 = scalar_lea.vmem %s936_s0, 64  ;;  %p11236_p13 = scmp.lt.s32.totalorder %s936_s0, %s936_s0 }
  0xc8   : > { %p11229_p10 = scmp.ne.s32.totalorder %s936_s0, %s11228_s17  ;;  %p11237_p0 = scmp.lt.s32.totalorder %s11228_s17, %s11228_s17 }
  0xca   : > { %p11231_p11 = pnand %p11229_p10, %p11945_p7  ;;  %p11238_p1 = por %p11237_p0, %p11236_p13 }
  0xcc   : > { %p11232_p12 = pneg %p11231_p11 }
  0xce   : > { %p11239_p4 = pnand %p11238_p1, %p11232_p12 }
  0xd0   : > { %11242 = shalt.err (!%p11239_p4)
}
  0xd1   : > { %s12844_s18 = smov 2   ;;  %s12845_s2 = smov 32  }
  0xd2   : > { %10234 = dma.hbm_to_vmem [thread:$0]  (!%p11935_p5), %s12839_s4, 64, %s936_s0, [#allocation20], %s12845_s2, %s12845_s2, %s12844_s18  }
  0xd3   : > { %s11730_s23 = smov [#allocation22]   ;;  %s11731_s1 = smov [#allocation25]  }
  0xd4   : > { %s962_s15 = sshll.u32 %s11730_s23, 4  ;;  %s988_s11 = sshll.u32 %s11731_s1, 4  ;;  %s963_s15 = int_to_ptr.vmem [resolvable:$true] %s962_s15  ;;  %s989_s11 = int_to_ptr.vmem [resolvable:$true] %s988_s11 }
  0xd5   : > { %s11243_s17 = scalar_lea.hbm %s11850_s21, 64 }
  0xd6   : > { %p11244_p6 = scmp.ne.s32.totalorder %s11850_s21, %s11243_s17  ;;  %p11250_p3 = scmp.lt.u32.totalorder %s11243_s17, %s11850_s21 }
  0xd8   : > { %p11246_p8 = pnand %p11244_p6, %p11945_p7 }
  0xda   : > { %p11247_p2 = pneg %p11246_p8 }
  0xdc   : > { %p11252_p9 = pnand %p11250_p3, %p11247_p2 }
  0xde   : > { %11255 = shalt.err (!%p11252_p9)
}
  0xdf   : > { %s11256_s10 = scalar_lea.vmem %s963_s15, 64  ;;  %p11264_p13 = scmp.lt.s32.totalorder %s963_s15, %s963_s15 }
  0xe0   : > { %p11257_p10 = scmp.ne.s32.totalorder %s963_s15, %s11256_s10  ;;  %p11265_p0 = scmp.lt.s32.totalorder %s11256_s10, %s11256_s10 }
  0xe2   : > { %p11259_p11 = pnand %p11257_p10, %p11945_p7  ;;  %p11266_p1 = por %p11265_p0, %p11264_p13 }
  0xe4   : > { %p11260_p12 = pneg %p11259_p11 }
  0xe6   : > { %p11267_p4 = pnand %p11266_p1, %p11260_p12 }
  0xe8   : > { %11270 = shalt.err (!%p11267_p4)
}
  0xe9   : > { %10240 = dma.hbm_to_vmem [thread:$0]  (!%p11935_p5), %s11850_s21, 64, %s963_s15, [#allocation23]  }
  0xea   : > { %s11271_s0 = scalar_lea.hbm %s11865_s27, 9216 }
  0xeb   : > { %p11272_p6 = scmp.ne.s32.totalorder %s11865_s27, %s11271_s0  ;;  %p11278_p3 = scmp.lt.u32.totalorder %s11271_s0, %s11865_s27 }
  0xed   : > { %p11274_p8 = pnand %p11272_p6, %p11945_p7 }
  0xef   : > { %p11275_p2 = pneg %p11274_p8 }
  0xf1   : > { %p11280_p9 = pnand %p11278_p3, %p11275_p2 }
  0xf3   : > { %11283 = shalt.err (!%p11280_p9)
}
  0xf4   : > { %s11284_s10 = scalar_lea.vmem %s989_s11, 9216  ;;  %p11292_p13 = scmp.lt.s32.totalorder %s989_s11, %s989_s11 }
  0xf5   : > { %p11285_p10 = scmp.ne.s32.totalorder %s989_s11, %s11284_s10  ;;  %p11293_p0 = scmp.lt.s32.totalorder %s11284_s10, %s11284_s10 }
  0xf7   : > { %p11287_p11 = pnand %p11285_p10, %p11945_p7  ;;  %p11294_p1 = por %p11293_p0, %p11292_p13 }
  0xf9   : > { %p11288_p12 = pneg %p11287_p11 }
  0xfb   : > { %p11295_p4 = pnand %p11294_p1, %p11288_p12 }
  0xfd   : > { %11298 = shalt.err (!%p11295_p4)
}
  0xfe   : > { %s12846_s23 = smov 4   ;;  %s12847_s15 = smov 64  }
  0xff   : > { %10246 = dma.hbm_to_vmem [thread:$0]  (!%p11935_p5), %s11865_s27, 9216, %s989_s11, [#allocation26], %s12847_s15, %s12847_s15, %s12846_s23  }
 0x100   : > { %s11732_s1 = smov [#allocation28]   ;;  %s11733_s0 = smov [#allocation2]  }
 0x101   : > { %s1015_s17 = sshll.u32 %s11732_s1, 4  ;;  %s784_s4 = sshll.u32 %s11733_s0, 4  ;;  %s1016_s17 = int_to_ptr.vmem [resolvable:$true] %s1015_s17  ;;  %s785_s4 = int_to_ptr.vmem [resolvable:$true] %s784_s4 }
 0x102   : > { %s11299_s10 = scalar_lea.hbm %s12837_s8, 256 }
 0x103   : > { %p11300_p6 = scmp.ne.s32.totalorder %s12837_s8, %s11299_s10  ;;  %p11306_p3 = scmp.lt.u32.totalorder %s11299_s10, %s12837_s8 }
 0x105   : > { %p11302_p8 = pnand %p11300_p6, %p11945_p7 }
 0x107   : > { %p11303_p2 = pneg %p11302_p8 }
 0x109   : > { %p11308_p9 = pnand %p11306_p3, %p11303_p2 }
 0x10b   : > { %11311 = shalt.err (!%p11308_p9)
}
 0x10c   : > { %s11312_s12 = scalar_lea.vmem %s1016_s17, 256  ;;  %p11320_p13 = scmp.lt.s32.totalorder %s1016_s17, %s1016_s17 }
 0x10d   : > { %p11313_p10 = scmp.ne.s32.totalorder %s1016_s17, %s11312_s12  ;;  %p11321_p0 = scmp.lt.s32.totalorder %s11312_s12, %s11312_s12 }
 0x10f   : > { %p11315_p11 = pnand %p11313_p10, %p11945_p7  ;;  %p11322_p1 = por %p11321_p0, %p11320_p13 }
 0x111   : > { %p11316_p12 = pneg %p11315_p11 }
 0x113   : > { %p11323_p4 = pnand %p11322_p1, %p11316_p12 }
 0x115   : > { %11326 = shalt.err (!%p11323_p4)
}
 0x116   : > { %s12848_s11 = smov 8   ;;  %s12849_s1 = smov 128  }
 0x117   : > { %10252 = dma.hbm_to_vmem [thread:$0]  (!%p11935_p5), %s12837_s8, 256, %s1016_s17, [#allocation29], %s12849_s1, %s12849_s1, %s12848_s11  }
 0x118   : > { %s11327_s0 = scalar_lea.hbm %s12835_s9, 64 }
 0x119   : > { %p11328_p6 = scmp.ne.s32.totalorder %s12835_s9, %s11327_s0  ;;  %p11334_p3 = scmp.lt.u32.totalorder %s11327_s0, %s12835_s9 }
 0x11b   : > { %p11330_p8 = pnand %p11328_p6, %p11945_p7 }
 0x11d   : > { %p11331_p2 = pneg %p11330_p8 }
 0x11f   : > { %p11336_p9 = pnand %p11334_p3, %p11331_p2 }
 0x121   : > { %11339 = shalt.err (!%p11336_p9)
}
 0x122   : > { %s11340_s12 = scalar_lea.vmem %s785_s4, 64  ;;  %p11348_p13 = scmp.lt.s32.totalorder %s785_s4, %s785_s4 }
 0x123   : > { %p11341_p10 = scmp.ne.s32.totalorder %s785_s4, %s11340_s12  ;;  %p11349_p0 = scmp.lt.s32.totalorder %s11340_s12, %s11340_s12 }
 0x125   : > { %p11343_p11 = pnand %p11341_p10, %p11945_p7  ;;  %p11350_p1 = por %p11349_p0, %p11348_p13 }
 0x127   : > { %p11344_p12 = pneg %p11343_p11 }
 0x129   : > { %p11351_p4 = pnand %p11350_p1, %p11344_p12 }
 0x12b   : > { %11354 = shalt.err (!%p11351_p4)
}
 0x12c   : > { %10201 = dma.hbm_to_vmem [thread:$0]  (!%p11935_p5), %s12835_s9, 64, %s785_s4, [#allocation3]  }
 0x12d   : > { %s11734_s17 = smov [#allocation6]   ;;  %s11735_s0 = smov [#allocation9]  }
 0x12e   : > { %s813_s10 = sshll.u32 %s11734_s17, 4  ;;  %s843_s8 = sshll.u32 %s11735_s0, 4  ;;  %s814_s10 = int_to_ptr.vmem [resolvable:$true] %s813_s10  ;;  %s844_s8 = int_to_ptr.vmem [resolvable:$true] %s843_s8 }
 0x12f   : > { %s11355_s19 = scalar_lea.hbm %s11780_s25, 2048 }
 0x130   : > { %p11356_p6 = scmp.ne.s32.totalorder %s11780_s25, %s11355_s19  ;;  %p11362_p3 = scmp.lt.u32.totalorder %s11355_s19, %s11780_s25 }
 0x132   : > { %p11358_p8 = pnand %p11356_p6, %p11945_p7 }
 0x134   : > { %p11359_p2 = pneg %p11358_p8 }
 0x136   : > { %p11364_p9 = pnand %p11362_p3, %p11359_p2 }
 0x138   : > { %11367 = shalt.err (!%p11364_p9)
}
 0x139   : > { %s11368_s12 = scalar_lea.vmem %s814_s10, 2048  ;;  %p11376_p13 = scmp.lt.s32.totalorder %s814_s10, %s814_s10 }
 0x13a   : > { %p11369_p10 = scmp.ne.s32.totalorder %s814_s10, %s11368_s12  ;;  %p11377_p0 = scmp.lt.s32.totalorder %s11368_s12, %s11368_s12 }
 0x13c   : > { %p11371_p11 = pnand %p11369_p10, %p11945_p7  ;;  %p11378_p1 = por %p11377_p0, %p11376_p13 }
 0x13e   : > { %p11372_p12 = pneg %p11371_p11 }
 0x140   : > { %p11379_p4 = pnand %p11378_p1, %p11372_p12 }
 0x142   : > { %11382 = shalt.err (!%p11379_p4)
}
 0x143   : > { %10207 = dma.hbm_to_vmem [thread:$0]  (!%p11935_p5), %s11780_s25, 2048, %s814_s10, [#allocation5], %s12847_s15, %s12847_s15, %s12846_s23  }
 0x144   : > { %s11383_s19 = scalar_lea.hbm %s11800_s14, 9216 }
 0x145   : > { %p11384_p6 = scmp.ne.s32.totalorder %s11800_s14, %s11383_s19  ;;  %p11390_p3 = scmp.lt.u32.totalorder %s11383_s19, %s11800_s14 }
 0x147   : > { %p11386_p8 = pnand %p11384_p6, %p11945_p7 }
 0x149   : > { %p11387_p2 = pneg %p11386_p8 }
 0x14b   : > { %p11392_p9 = pnand %p11390_p3, %p11387_p2 }
 0x14d   : > { %11395 = shalt.err (!%p11392_p9)
}
 0x14e   : > { %s11396_s4 = scalar_lea.vmem %s844_s8, 9216  ;;  %p11404_p13 = scmp.lt.s32.totalorder %s844_s8, %s844_s8 }
 0x14f   : > { %p11397_p10 = scmp.ne.s32.totalorder %s844_s8, %s11396_s4  ;;  %p11405_p0 = scmp.lt.s32.totalorder %s11396_s4, %s11396_s4 }
 0x151   : > { %p11399_p11 = pnand %p11397_p10, %p11945_p7  ;;  %p11406_p1 = por %p11405_p0, %p11404_p13 }
 0x153   : > { %p11400_p12 = pneg %p11399_p11 }
 0x155   : > { %p11407_p4 = pnand %p11406_p1, %p11400_p12 }
 0x157   : > { %11410 = shalt.err (!%p11407_p4)
}
 0x158   : > { %10213 = dma.hbm_to_vmem [thread:$0]  (!%p11935_p5), %s11800_s14, 9216, %s844_s8, [#allocation8], %s12847_s15, %s12847_s15, %s12846_s23  }
 0x159   : > { %s11736_s17 = smov [#allocation12]   ;;  %s11737_s0 = smov [#allocation15]  }
 0x15a   : > { %s869_s10 = sshll.u32 %s11736_s17, 4  ;;  %s895_s12 = sshll.u32 %s11737_s0, 4  ;;  %s870_s10 = int_to_ptr.vmem [resolvable:$true] %s869_s10  ;;  %s896_s12 = int_to_ptr.vmem [resolvable:$true] %s895_s12 }
 0x15b   : > { %s11411_s19 = scalar_lea.hbm %s11810_s24, 128 }
 0x15c   : > { %p11412_p6 = scmp.ne.s32.totalorder %s11810_s24, %s11411_s19  ;;  %p11418_p3 = scmp.lt.u32.totalorder %s11411_s19, %s11810_s24 }
 0x15e   : > { %p11414_p8 = pnand %p11412_p6, %p11945_p7 }
 0x160   : > { %p11415_p2 = pneg %p11414_p8 }
 0x162   : > { %p11420_p9 = pnand %p11418_p3, %p11415_p2 }
 0x164   : > { %11423 = shalt.err (!%p11420_p9)
}
 0x165   : > { %s11424_s4 = scalar_lea.vmem %s870_s10, 128  ;;  %p11432_p13 = scmp.lt.s32.totalorder %s870_s10, %s870_s10 }
 0x166   : > { %p11425_p10 = scmp.ne.s32.totalorder %s870_s10, %s11424_s4  ;;  %p11433_p0 = scmp.lt.s32.totalorder %s11424_s4, %s11424_s4 }
 0x168   : > { %p11427_p11 = pnand %p11425_p10, %p11945_p7  ;;  %p11434_p1 = por %p11433_p0, %p11432_p13 }
 0x16a   : > { %p11428_p12 = pneg %p11427_p11 }
 0x16c   : > { %p11435_p4 = pnand %p11434_p1, %p11428_p12 }
 0x16e   : > { %11438 = shalt.err (!%p11435_p4)
}
 0x16f   : > { %10219 = dma.hbm_to_vmem [thread:$0]  (!%p11935_p5), %s11810_s24, 128, %s870_s10, [#allocation11], %s12847_s15, %s12847_s15, %s12846_s23  }
 0x170   : > { %s11439_s8 = scalar_lea.hbm %s12834_s6, 64 }
 0x171   : > { %p11440_p6 = scmp.ne.s32.totalorder %s12834_s6, %s11439_s8  ;;  %p11446_p3 = scmp.lt.u32.totalorder %s11439_s8, %s12834_s6 }
 0x173   : > { %p11442_p8 = pnand %p11440_p6, %p11945_p7 }
 0x175   : > { %p11443_p2 = pneg %p11442_p8 }
 0x177   : > { %p11448_p9 = pnand %p11446_p3, %p11443_p2 }
 0x179   : > { %11451 = shalt.err (!%p11448_p9)
}
 0x17a   : > { %s11452_s17 = scalar_lea.vmem %s896_s12, 64  ;;  %p11460_p13 = scmp.lt.s32.totalorder %s896_s12, %s896_s12 }
 0x17b   : > { %p11453_p10 = scmp.ne.s32.totalorder %s896_s12, %s11452_s17  ;;  %p11461_p0 = scmp.lt.s32.totalorder %s11452_s17, %s11452_s17 }
 0x17d   : > { %p11455_p11 = pnand %p11453_p10, %p11945_p7  ;;  %p11462_p1 = por %p11461_p0, %p11460_p13 }
 0x17f   : > { %p11456_p12 = pneg %p11455_p11 }
 0x181   : > { %p11463_p4 = pnand %p11462_p1, %p11456_p12 }
 0x183   : > { %11466 = shalt.err (!%p11463_p4)
}
 0x184   : > { %s12850_s10 = sld [smem:[#allocation54_spill]]  ;;  %s11738_s0 = smov [#allocation18]  }
 0x185   : > { %10225 = dma.hbm_to_vmem [thread:$0]  (!%p11935_p5), %s12834_s6, 64, %s896_s12, [#allocation14], %s12845_s2, %s12845_s2, %s12844_s18  }
 0x186   : > { %s922_s19 = sshll.u32 %s11738_s0, 4  ;;  %s11739_s4 = smov [#allocation21]   ;;  %s923_s19 = int_to_ptr.vmem [resolvable:$true] %s922_s19 }
 0x187   : > { %s948_s8 = sshll.u32 %s11739_s4, 4  ;;  %s949_s8 = int_to_ptr.vmem [resolvable:$true] %s948_s8 }
 0x18a   : > { %s11467_s17 = scalar_lea.hbm %s12850_s10, 64 }
 0x18b   : > { %p11468_p6 = scmp.ne.s32.totalorder %s12850_s10, %s11467_s17  ;;  %p11474_p3 = scmp.lt.u32.totalorder %s11467_s17, %s12850_s10 }
 0x18d   : > { %p11470_p8 = pnand %p11468_p6, %p11945_p7 }
 0x18f   : > { %p11471_p2 = pneg %p11470_p8 }
 0x191   : > { %p11476_p9 = pnand %p11474_p3, %p11471_p2 }
 0x193   : > { %11479 = shalt.err (!%p11476_p9)
}
 0x194   : > { %s11480_s9 = scalar_lea.vmem %s923_s19, 64  ;;  %p11488_p13 = scmp.lt.s32.totalorder %s923_s19, %s923_s19 }
 0x195   : > { %p11481_p10 = scmp.ne.s32.totalorder %s923_s19, %s11480_s9  ;;  %p11489_p0 = scmp.lt.s32.totalorder %s11480_s9, %s11480_s9 }
 0x197   : > { %p11483_p11 = pnand %p11481_p10, %p11945_p7  ;;  %p11490_p1 = por %p11489_p0, %p11488_p13 }
 0x199   : > { %p11484_p12 = pneg %p11483_p11 }
 0x19b   : > { %p11491_p4 = pnand %p11490_p1, %p11484_p12 }
 0x19d   : > { %11494 = shalt.err (!%p11491_p4)
}
 0x19e   : > { %s12851_s18 = sld [smem:[#allocation57_spill]] }
 0x19f   : > { %10231 = dma.hbm_to_vmem [thread:$0]  (!%p11935_p5), %s12850_s10, 64, %s923_s19, [#allocation17]  }
 0x1a4   : > { %s11495_s2 = scalar_lea.hbm %s12851_s18, 9216 }
 0x1a5   : > { %p11496_p6 = scmp.ne.s32.totalorder %s12851_s18, %s11495_s2  ;;  %p11502_p3 = scmp.lt.u32.totalorder %s11495_s2, %s12851_s18 }
 0x1a7   : > { %p11498_p8 = pnand %p11496_p6, %p11945_p7 }
 0x1a9   : > { %p11499_p2 = pneg %p11498_p8 }
 0x1ab   : > { %p11504_p9 = pnand %p11502_p3, %p11499_p2 }
 0x1ad   : > { %11507 = shalt.err (!%p11504_p9)
}
 0x1ae   : > { %s11508_s9 = scalar_lea.vmem %s949_s8, 9216  ;;  %p11516_p13 = scmp.lt.s32.totalorder %s949_s8, %s949_s8 }
 0x1af   : > { %p11509_p10 = scmp.ne.s32.totalorder %s949_s8, %s11508_s9  ;;  %p11517_p0 = scmp.lt.s32.totalorder %s11508_s9, %s11508_s9 }
 0x1b1   : > { %p11511_p11 = pnand %p11509_p10, %p11945_p7  ;;  %p11518_p1 = por %p11517_p0, %p11516_p13 }
 0x1b3   : > { %p11512_p12 = pneg %p11511_p11 }
 0x1b5   : > { %p11519_p4 = pnand %p11518_p1, %p11512_p12 }
 0x1b7   : > { %11522 = shalt.err (!%p11519_p4)
}
 0x1b8   : > { %s12852_s12 = sld [smem:[#allocation59_spill]]  ;;  %s11740_s0 = smov [#allocation24]  }
 0x1b9   : > { %10237 = dma.hbm_to_vmem [thread:$0]  (!%p11935_p5), %s12851_s18, 9216, %s949_s8, [#allocation20], %s12847_s15, %s12847_s15, %s12846_s23  }
 0x1ba   : > { %s975_s19 = sshll.u32 %s11740_s0, 4  ;;  %s11741_s4 = smov [#allocation27]   ;;  %s976_s19 = int_to_ptr.vmem [resolvable:$true] %s975_s19 }
 0x1bb   : > { %s1002_s17 = sshll.u32 %s11741_s4, 4  ;;  %s1003_s17 = int_to_ptr.vmem [resolvable:$true] %s1002_s17 }
 0x1be   : > { %s11523_s2 = scalar_lea.hbm %s12852_s12, 128 }
 0x1bf   : > { %p11524_p6 = scmp.ne.s32.totalorder %s12852_s12, %s11523_s2  ;;  %p11530_p3 = scmp.lt.u32.totalorder %s11523_s2, %s12852_s12 }
 0x1c1   : > { %p11526_p8 = pnand %p11524_p6, %p11945_p7 }
 0x1c3   : > { %p11527_p2 = pneg %p11526_p8 }
 0x1c5   : > { %p11532_p9 = pnand %p11530_p3, %p11527_p2 }
 0x1c7   : > { %11535 = shalt.err (!%p11532_p9)
}
 0x1c8   : > { %s11536_s9 = scalar_lea.vmem %s976_s19, 128  ;;  %p11544_p13 = scmp.lt.s32.totalorder %s976_s19, %s976_s19 }
 0x1c9   : > { %p11537_p10 = scmp.ne.s32.totalorder %s976_s19, %s11536_s9  ;;  %p11545_p0 = scmp.lt.s32.totalorder %s11536_s9, %s11536_s9 }
 0x1cb   : > { %p11539_p11 = pnand %p11537_p10, %p11945_p7  ;;  %p11546_p1 = por %p11545_p0, %p11544_p13 }
 0x1cd   : > { %p11540_p12 = pneg %p11539_p11 }
 0x1cf   : > { %p11547_p4 = pnand %p11546_p1, %p11540_p12 }
 0x1d1   : > { %11550 = shalt.err (!%p11547_p4)
}
 0x1d2   : > { %s12853_s8 = sld [smem:[#allocation60_spill]] }
 0x1d3   : > { %10243 = dma.hbm_to_vmem [thread:$0]  (!%p11935_p5), %s12852_s12, 128, %s976_s19, [#allocation23], %s12847_s15, %s12847_s15, %s12846_s23  }
 0x1d8   : > { %s11551_s0 = scalar_lea.hbm %s12853_s8, 64 }
 0x1d9   : > { %p11552_p6 = scmp.ne.s32.totalorder %s12853_s8, %s11551_s0  ;;  %p11558_p3 = scmp.lt.u32.totalorder %s11551_s0, %s12853_s8 }
 0x1db   : > { %p11554_p8 = pnand %p11552_p6, %p11945_p7 }
 0x1dd   : > { %p11555_p2 = pneg %p11554_p8 }
 0x1df   : > { %p11560_p9 = pnand %p11558_p3, %p11555_p2 }
 0x1e1   : > { %11563 = shalt.err (!%p11560_p9)
}
 0x1e2   : > { %s11564_s4 = scalar_lea.vmem %s1003_s17, 64  ;;  %p11572_p13 = scmp.lt.s32.totalorder %s1003_s17, %s1003_s17 }
 0x1e3   : > { %p11565_p10 = scmp.ne.s32.totalorder %s1003_s17, %s11564_s4  ;;  %p11573_p0 = scmp.lt.s32.totalorder %s11564_s4, %s11564_s4 }
 0x1e5   : > { %p11567_p11 = pnand %p11565_p10, %p11945_p7  ;;  %p11574_p1 = por %p11573_p0, %p11572_p13 }
 0x1e7   : > { %p11568_p12 = pneg %p11567_p11 }
 0x1e9   : > { %p11575_p4 = pnand %p11574_p1, %p11568_p12 }
 0x1eb   : > { %11578 = shalt.err (!%p11575_p4)
}
 0x1ec   : > { %s12854_s19 = sld [smem:[#allocation63_spill]]  ;;  %s11742_s2 = smov [#allocation30]  }
 0x1ed   : > { %10249 = dma.hbm_to_vmem [thread:$0]  (!%p11935_p5), %s12853_s8, 64, %s1003_s17, [#allocation26]  }
 0x1ee   : > { %s1028_s9 = sshll.u32 %s11742_s2, 4  ;;  %s11743_s0 = smov [#allocation31]   ;;  %s1029_s9 = int_to_ptr.vmem [resolvable:$true] %s1028_s9 }
 0x1ef   : > { %s1050_s6 = sshll.u32 %s11743_s0, 4  ;;  %s1051_s6 = int_to_ptr.vmem [resolvable:$true] %s1050_s6 }
 0x1f2   : > { %s11579_s10 = scalar_lea.hbm %s12854_s19, 9216 }
 0x1f3   : > { %p11580_p6 = scmp.ne.s32.totalorder %s12854_s19, %s11579_s10  ;;  %p11586_p3 = scmp.lt.u32.totalorder %s11579_s10, %s12854_s19 }
 0x1f5   : > { %p11582_p8 = pnand %p11580_p6, %p11945_p7 }
 0x1f7   : > { %p11583_p2 = pneg %p11582_p8 }
 0x1f9   : > { %p11588_p9 = pnand %p11586_p3, %p11583_p2 }
 0x1fb   : > { %11591 = shalt.err (!%p11588_p9)
}
 0x1fc   : > { %s11592_s4 = scalar_lea.vmem %s1029_s9, 9216  ;;  %p11600_p13 = scmp.lt.s32.totalorder %s1029_s9, %s1029_s9 }
 0x1fd   : > { %p11593_p10 = scmp.ne.s32.totalorder %s1029_s9, %s11592_s4  ;;  %p11601_p0 = scmp.lt.s32.totalorder %s11592_s4, %s11592_s4 }
 0x1ff   : > { %p11595_p11 = pnand %p11593_p10, %p11945_p7  ;;  %p11602_p1 = por %p11601_p0, %p11600_p13 }
 0x201   : > { %p11596_p12 = pneg %p11595_p11 }
 0x203   : > { %p11603_p4 = pnand %p11602_p1, %p11596_p12 }
 0x205   : > { %11606 = shalt.err (!%p11603_p4)
}
 0x206   : > { %10255 = dma.hbm_to_vmem [thread:$0]  (!%p11935_p5), %s12854_s19, 9216, %s1029_s9, [#allocation29], %s12847_s15, %s12847_s15, %s12846_s23  }
 0x207   : > { %s11607_s10 = scalar_lea.hbm %s11905_s13, 6144 }
 0x208   : > { %p11608_p6 = scmp.ne.s32.totalorder %s11905_s13, %s11607_s10  ;;  %p11614_p3 = scmp.lt.u32.totalorder %s11607_s10, %s11905_s13 }
 0x20a   : > { %p11610_p8 = pnand %p11608_p6, %p11945_p7 }
 0x20c   : > { %p11611_p2 = pneg %p11610_p8 }
 0x20e   : > { %p11616_p9 = pnand %p11614_p3, %p11611_p2 }
 0x210   : > { %11619 = shalt.err (!%p11616_p9)
}
 0x211   : > { %s11620_s17 = scalar_lea.vmem %s1051_s6, 6144  ;;  %p11628_p13 = scmp.lt.s32.totalorder %s1051_s6, %s1051_s6 }
 0x212   : > { %p11621_p10 = scmp.ne.s32.totalorder %s1051_s6, %s11620_s17  ;;  %p11629_p0 = scmp.lt.s32.totalorder %s11620_s17, %s11620_s17 }
 0x214   : > { %p11623_p11 = pnand %p11621_p10, %p11945_p7  ;;  %p11630_p1 = por %p11629_p0, %p11628_p13 }
 0x216   : > { %p11624_p12 = pneg %p11623_p11 }
 0x218   : > { %p11631_p4 = pnand %p11630_p1, %p11624_p12 }
 0x21a   : > { %11634 = shalt.err (!%p11631_p4)
}
 0x21b   : > { %10258 = dma.hbm_to_vmem [thread:$0]  (!%p11935_p5), %s11905_s13, 6144, %s1051_s6, [#allocation32], %s12849_s1, %s12849_s1, %s12848_s11  }
 0x21c   : > { %p12855_p6 = scmp.ne.s32.totalorder %s12841_s28, 0 }
 0x21d   : > { %p12856_p8 = scmp.eq.s32.totalorder (!%p12855_p6), %s11918_s26, 0 }
 0x21e   : > { %1074 = sbr.rel (%p12855_p6) target bundleno = 8205 (0x200d), region = 144 }
 0x225   : > { %11640 = dma.done.wait (%p12856_p8), [#allocation3], 64   ;;  %p12857_p7 = pmov %p12856_p8 }
 0x227   : > { %11642 = vsyncadd (%p12857_p7), [#allocation3], 4294967232  ;;  %p12858_p2 = pmov %p12857_p7 }
 0x229   : > { %11644 = dma.done.wait (%p12858_p2), [#allocation5], 2112   ;;  %p12859_p3 = pmov %p12858_p2 }
 0x22a   : > { %p12860_p9 = pmov %p12858_p2 }
 0x22b   : > { %11646 = vsyncadd (%p12859_p3), [#allocation5], 4294965184 }
 0x22c   : > { %11648 = dma.done.wait (%p12860_p9), [#allocation8], 9280   ;;  %p12861_p5 = pmov %p12858_p2 }
 0x22d   : > { %p12862_p10 = pmov %p12858_p2 }
 0x22e   : > { %11650 = vsyncadd (%p12861_p5), [#allocation8], 4294958016 }
 0x22f   : > { %11652 = dma.done.wait (%p12862_p10), [#allocation11], 2176   ;;  %p12863_p11 = pmov %p12858_p2 }
 0x230   : > { %p12864_p12 = pmov %p12858_p2 }
 0x231   : > { %11654 = vsyncadd (%p12863_p11), [#allocation11], 4294965120 }
 0x232   : > { %11656 = dma.done.wait (%p12864_p12), [#allocation14], 6208   ;;  %p12865_p13 = pmov %p12858_p2 }
 0x233   : > { %p12866_p0 = pmov %p12858_p2 }
 0x234   : > { %11658 = vsyncadd (%p12865_p13), [#allocation14], 4294961088 }
 0x235   : > { %11660 = dma.done.wait (%p12866_p0), [#allocation17], 6208   ;;  %p12867_p1 = pmov %p12866_p0 }
 0x236   : > { %p12868_p4 = pmov %p12866_p0 }
 0x237   : > { %11662 = vsyncadd (%p12867_p1), [#allocation17], 4294961088 }
 0x238   : > { %11664 = dma.done.wait (%p12868_p4), [#allocation20], 9280   ;;  %p12869_p6 = pmov %p12866_p0 }
 0x239   : > { %p12870_p8 = pmov %p12866_p0 }
 0x23a   : > { %11666 = vsyncadd (%p12869_p6), [#allocation20], 4294958016 }
 0x23b   : > { %11668 = dma.done.wait (%p12870_p8), [#allocation23], 192   ;;  %p12871_p7 = pmov %p12866_p0 }
 0x23c   : > { %p12872_p2 = pmov %p12866_p0 }
 0x23d   : > { %11670 = vsyncadd (%p12871_p7), [#allocation23], 4294967104 }
 0x23e   : > { %11672 = dma.done.wait (%p12872_p2), [#allocation26], 9280   ;;  %p12873_p3 = pmov %p12866_p0 }
 0x23f   : > { %p12874_p9 = pmov %p12866_p0 }
 0x240   : > { %11674 = vsyncadd (%p12873_p3), [#allocation26], 4294958016 }
 0x241   : > { %11676 = dma.done.wait (%p12874_p9), [#allocation29], 9472   ;;  %p12875_p5 = pmov %p12866_p0 }
 0x242   : > { %p12876_p10 = pmov %p12866_p0 }
 0x243   : > { %11678 = vsyncadd (%p12875_p5), [#allocation29], 4294957824 }
 0x244   : > { %11680 = dma.done.wait (%p12876_p10), [#allocation32], 6144   ;;  %p12877_p11 = pmov %p12866_p0 }
 0x245   : > { %v11744_v0 = vmov 0.0   ;;  %vm11745_vm0 = vmmov 0   ;;  %v10369_v1 = vld [vmem:[#allocation21 + $0x40] sm:$0xff]   ;;  %v10372_v4 = vld [vmem:[#allocation21 + $0x48] sm:$0xff]   ;;  %v10375_v7 = vld [vmem:[#allocation21 + $0x50] sm:$0xff]   ;;  %p1230_p12 = scmp.lt.s32.totalorder %s11918_s26, 1 }
 0x246   : > { %11682 = vsyncadd (%p12877_p11), [#allocation32], 4294961152  ;;  %9738 = vmatprep.subr.bf16.mxu1 %v11744_v0  ;;  %9754 = vmatprep.mubr.msk.bf16.mxu1 %vm11745_vm0, %v11744_v0  ;;  %v10370_v2 = vld [vmem:[#allocation21] sm:$0xff]   ;;  %v10373_v5 = vld [vmem:[#allocation21 + $0x8] sm:$0xff]   ;;  %s12878_s6 = sld [smem:[#allocation44_spill]]  ;;  %vm1300_vm2 = vcmask 1040384  }
 0x247   : > { %9213 = vmatprep.subr.bf16.mxu0 %v10369_v1  ;;  %v10371_v3 = vld [vmem:[#allocation21 + $0x80] sm:$0xff]   ;;  %v10374_v6 = vld [vmem:[#allocation21 + $0x88] sm:$0xff]   ;;  %v10376_v8 = vld [vmem:[#allocation21 + $0x10] sm:$0xff]   ;;  %s12896_s26 = smov (!%p1230_p12, %s11918_s26), 1  ;;  %vm1301_vm1 = vsmask.f32 256 }
 0x248   : > { %9214 = vmatpush3.bf16.msra.mxu0 %v10370_v2  ;;  %9739 = vmatpush3.bf16.msra.mxu1 %v10371_v3  ;;  %v10377_v9 = vld [vmem:[#allocation21 + $0x90] sm:$0xff]   ;;  %v10378_v10 = vld [vmem:[#allocation21 + $0x58] sm:$0xff]   ;;  %v10381_v13 = vld [vmem:[#allocation21 + $0x60] sm:$0xff]   ;;  %s9211_s28 = sshll.u32 %s12896_s26, 4  ;;  %vm1307_vm3 = vcmask 1047552   ;;  %s12883_s16 = sld [smem:[#allocation55_spill]] }
 0x249   : > { %9215 = vmatprep.subr.bf16.mxu0 %v10372_v4  ;;  %9740 = vmatprep.subr.bf16.mxu1 %v11744_v0  ;;  %v10379_v11 = vld [vmem:[#allocation21 + $0x18] sm:$0xff]   ;;  %v10382_v14 = vld [vmem:[#allocation21 + $0x20] sm:$0xff]   ;;  %v10384_v16 = vld [vmem:[#allocation21 + $0x68] sm:$0xff]   ;;  %vm1308_vm4 = vsmask.f32 7424  ;;  %vm1856_vm9 = vcmask 1041408   ;;  %s1239_s4 = scalar_lea.vmem %s11910_s5, %s9211_s28 }
 0x24a   : > { %v10380_v12 = vld [vmem:[#allocation21 + $0x98] sm:$0xff]   ;;  %v10383_v15 = vld [vmem:[#allocation21 + $0xa0] sm:$0xff]   ;;  %v10385_v17 = vld [vmem:[#allocation21 + $0x28] sm:$0xff]   ;;  %vm2576_vm10 = vcmask 130048   ;;  %vm2724_vm11 = vcmask 1043456   ;;  %s12886_s23 = sld [smem:[#allocation58_spill]] }
 0x24b   : > { %v10386_v18 = vld [vmem:[#allocation21 + $0xa8] sm:$0xff]   ;;  %v10387_v19 = vld [vmem:[#allocation21 + $0x70] sm:$0xff]   ;;  %v10390_v24 = vld [vmem:[#allocation21 + $0x78] sm:$0xff]   ;;  %vm2725_vm12 = vsmask.f32 3328  ;;  %vm3977_vm15 = vcmask 64512  }
 0x24c   : > { %9216 = vmatpush3.bf16.msra.mxu0 %v10373_v5  ;;  %9741 = vmatpush3.bf16.msra.mxu1 %v10374_v6  ;;  %s12264_s7 = scalar_lea.vmem %s12878_s6, %s9211_s28  ;;  %v10388_v20 = vld [vmem:[#allocation21 + $0x30] sm:$0xff]   ;;  %vm12271_vm5 = vmand %vm1300_vm2, %vm1301_vm1  ;;  %v10391_v27 = vld [vmem:[#allocation21 + $0x38] sm:$0xff]   ;;  %vm4132_vm1 = vsmask.f32 1280  ;;  %s12889_s15 = sld [smem:[#allocation61_spill]] }
 0x24d   : > { %9217 = vmatprep.subr.bf16.mxu0 %v10375_v7  ;;  %9742 = vmatprep.subr.bf16.mxu1 %v11744_v0  ;;  %v10389_v21 = vld [vmem:[#allocation21 + $0xb0] sm:$0xff]   ;;  %v1241_v22 = vld [vmem:[%s12264_s7] sm:$0xff]  ;;  %v1242_v23 = vld [vmem:[%s12264_s7 + $0x8] sm:$0xff]  ;;  %s12890_s11 = sld [smem:[#allocation50_spill]]  ;;  %s12891_s1 = sld [smem:[#allocation49_spill]] }
 0x24e   : > { %v1291_v25 = vpack.c.bf16 %v1242_v23, %v1241_v22  ;;  %vm12276_vm6 = vmand %vm1307_vm3, %vm1308_vm4  ;;  %v10392_v31 = vld [vmem:[#allocation21 + $0xb8] sm:$0xff]   ;;  %v10393_v34 = vld [vmem:[#allocation21 + $0x100] sm:$0xff]   ;;  %vm5382_vm4 = vcmask 31744   ;;  %s12892_s2 = sld [smem:[#allocation64_spill]]  ;;  %s12894_s0 = sld [smem:[#allocation46_spill]] }
 0x24f   : > { %v10394_v37 = vld [vmem:[#allocation21 + $0xc0] sm:$0xff]   ;;  %v10396_v41 = vld [vmem:[#allocation21 + $0x108] sm:$0xff]   ;;  %v10399_v44 = vld [vmem:[#allocation21 + $0x110] sm:$0xff]   ;;  %s12893_s9 = sld [smem:[#allocation48_spill]] }
 0x250   : > { %9218 = vmatpush3.bf16.msra.mxu0 %v10376_v8  ;;  %9743 = vmatpush3.bf16.msra.mxu1 %v10377_v9  ;;  %v1293_v28 = vshrl.u32 %v1291_v25, 16  ;;  %v1296_v29 = vshll.u32 %v1291_v25, 16  ;;  %v10395_v40 = vld [vmem:[#allocation21 + $0x140] sm:$0xff]   ;;  %v10397_v42 = vld [vmem:[#allocation21 + $0xc8] sm:$0xff]   ;;  %v10400_v45 = vld [vmem:[#allocation21 + $0xd0] sm:$0xff]  }
 0x251   : > { %9219 = vmatprep.subr.bf16.mxu0 %v10378_v10  ;;  %9744 = vmatprep.subr.bf16.mxu1 %v11744_v0  ;;  %v10398_v43 = vld [vmem:[#allocation21 + $0x148] sm:$0xff]   ;;  %v10401_v46 = vld [vmem:[#allocation21 + $0x150] sm:$0xff]   ;;  %v10402_v47 = vld [vmem:[#allocation21 + $0x118] sm:$0xff]  }
 0x252   : > { %1492 = vmatprep.mubr.bf16.mxu0 %v1291_v25  ;;  %v1295_v32 = vrot.slane %v1293_v28, 7  ;;  %v1304_v33 = vrot.slane %v1296_v29, 1  ;;  %v10403_v48 = vld [vmem:[#allocation21 + $0xd8] sm:$0xff]   ;;  %v10405_v50 = vld [vmem:[#allocation21 + $0x120] sm:$0xff]   ;;  %v10408_v53 = vld [vmem:[#allocation21 + $0x128] sm:$0xff]  }
 0x253   : > { %v10404_v49 = vld [vmem:[#allocation21 + $0x158] sm:$0xff]   ;;  %v10406_v51 = vld [vmem:[#allocation21 + $0xe0] sm:$0xff]   ;;  %v10409_v54 = vld [vmem:[#allocation21 + $0xe8] sm:$0xff]  }
 0x254   : > { %9220 = vmatpush3.bf16.msra.mxu0 %v10379_v11  ;;  %9745 = vmatpush3.bf16.msra.mxu1 %v10380_v12  ;;  %v1298_v35 = vor.u32 %v1296_v29, %v1295_v32  ;;  %v1305_v36 = vor.u32 %v1304_v33, %v1293_v28  ;;  %v10407_v52 = vld [vmem:[#allocation21 + $0x160] sm:$0xff]   ;;  %v10410_v55 = vld [vmem:[#allocation21 + $0x168] sm:$0xff]   ;;  %v10411_v56 = vld [vmem:[#allocation21 + $0x130] sm:$0xff]  }
 0x255   : > { %9221 = vmatprep.subr.bf16.mxu0 %v10381_v13  ;;  %9746 = vmatprep.subr.bf16.mxu1 %v11744_v0  ;;  %v10412_v57 = vld [vmem:[#allocation21 + $0xf0] sm:$0xff]   ;;  %v10414_v59 = vld [vmem:[#allocation21 + $0x138] sm:$0xff]   ;;  %vm12375_vm13 = vmand %vm2724_vm11, %vm2725_vm12 }
 0x256   : > { %v1303_v38 = vsel %vm12271_vm5, 0, %v1298_v35  ;;  %v1310_v39 = vsel %vm12276_vm6, %v1305_v36, 0  ;;  %v10413_v58 = vld [vmem:[#allocation21 + $0x170] sm:$0xff]   ;;  %v10415_v60 = vld [vmem:[#allocation21 + $0xf8] sm:$0xff]   ;;  %vm12457_vm2 = vmand %vm1856_vm9, %vm4132_vm1 }
 0x257   : > { %v10416_v61 = vld [vmem:[#allocation21 + $0x178] sm:$0xff]  }
 0x258   : > { %9222 = vmatpush3.bf16.msra.mxu0 %v10382_v14  ;;  %9747 = vmatpush3.bf16.msra.mxu1 %v10383_v15  ;;  %v8495_v62 = vld [vmem:[#allocation18] ss:$0 sm:$0xff]  ;;  %v8520_v6 = vld [vmem:[#allocation18 + $0x3] ss:$0 sm:$0xff]  ;;  %v8521_v32 = vld [vmem:[#allocation18 + $0x1] ss:$0 sm:$0xff] }
 0x259   : > { %9223 = vmatprep.subr.bf16.mxu0 %v10384_v16  ;;  %9748 = vmatprep.subr.bf16.mxu1 %v11744_v0 }
 0x25c   : > { %9224 = vmatpush3.bf16.msra.mxu0 %v10385_v17  ;;  %9749 = vmatpush3.bf16.msra.mxu1 %v10386_v18 }
 0x25d   : > { %9225 = vmatprep.subr.bf16.mxu0 %v10387_v19  ;;  %9750 = vmatprep.subr.bf16.mxu1 %v11744_v0 }
 0x260   : > { %9226 = vmatpush3.bf16.msra.mxu0 %v10388_v20  ;;  %9751 = vmatpush3.bf16.msra.mxu1 %v10389_v21 }
 0x261   : > { %9227 = vmatprep.subr.bf16.mxu0 %v10390_v24  ;;  %9752 = vmatprep.subr.bf16.mxu1 %v11744_v0 }
 0x264   : > { %9228 = vmatpush3.bf16.msra.mxu0 %v10391_v27  ;;  %9753 = vmatpush3.bf16.msra.mxu1 %v10392_v31 }
 0x265   : > { %9244 = vmatprep.subr.bf16.mxu0 %v10393_v34  ;;  %9758 = vmatprep.subr.bf16.mxu1 %v11744_v0 }
 0x267   : > { %1493 = vmatmul.mubr.bf16.vlgmr.msra.gmra.mrb[0].mxu0 %v1303_v38  ;;  %9755 = vmatmul.mubr.bf16.vlgmr.msra.gmra.mrb[0].mxu1 %v1310_v39 }
 0x268   : > { %9245 = vmatpush3.bf16.msra.mxu0 %v10394_v37  ;;  %9759 = vmatpush3.bf16.msra.mxu1 %v10395_v40 }
 0x269   : > { %9246 = vmatprep.subr.bf16.mxu0 %v10396_v41  ;;  %9760 = vmatprep.subr.bf16.mxu1 %v11744_v0 }
 0x26a   : > { %9774 = vmatprep.mubr.msk.bf16.mxu1 %vm11745_vm0, %v11744_v0 }
 0x26c   : > { %9247 = vmatpush3.bf16.msra.mxu0 %v10397_v42  ;;  %9761 = vmatpush3.bf16.msra.mxu1 %v10398_v43 }
 0x26d   : > { %9248 = vmatprep.subr.bf16.mxu0 %v10399_v44  ;;  %9762 = vmatprep.subr.bf16.mxu1 %v11744_v0 }
 0x270   : > { %9249 = vmatpush3.bf16.msra.mxu0 %v10400_v45  ;;  %9763 = vmatpush3.bf16.msra.mxu1 %v10401_v46 }
 0x271   : > { %9764 = vmatprep.subr.bf16.mxu1 %v11744_v0  ;;  %9250 = vmatprep.subr.bf16.mxu0 %v10402_v47 }
 0x274   : > { %9251 = vmatpush3.bf16.msra.mxu0 %v10403_v48  ;;  %9765 = vmatpush3.bf16.msra.mxu1 %v10404_v49 }
 0x275   : > { %9766 = vmatprep.subr.bf16.mxu1 %v11744_v0  ;;  %9252 = vmatprep.subr.bf16.mxu0 %v10405_v50 }
 0x278   : > { %9253 = vmatpush3.bf16.msra.mxu0 %v10406_v51  ;;  %9767 = vmatpush3.bf16.msra.mxu1 %v10407_v52  ;;  %v1854_v51 = vld [vmem:[#allocation19] sm:$0x3] }
 0x279   : > { %9768 = vmatprep.subr.bf16.mxu1 %v11744_v0  ;;  %9254 = vmatprep.subr.bf16.mxu0 %v10408_v53 }
 0x27c   : > { %9255 = vmatpush3.bf16.msra.mxu0 %v10409_v54  ;;  %9769 = vmatpush3.bf16.msra.mxu1 %v10410_v55  ;;  %v11746_v55 = vmov 0  }
 0x27d   : > { %9256 = vmatprep.subr.bf16.mxu0 %v10411_v56  ;;  %9770 = vmatprep.subr.bf16.mxu1 %v11744_v0  ;;  %v1860_v56 = vld [vmem:[%s12883_s16] sm:$0x3] }
 0x27e   : > { %10367 = vset.pattern.permute.xlu0 %v11746_v55  ;;  %10368 = vset.pattern.permute.xlu1 %v11746_v55 }
 0x280   : > { %9257 = vmatpush3.bf16.msra.mxu0 %v10412_v57  ;;  %9771 = vmatpush3.bf16.msra.mxu1 %v10413_v58 }
 0x281   : > { %9772 = vmatprep.subr.bf16.mxu1 %v11744_v0  ;;  %9258 = vmatprep.subr.bf16.mxu0 %v10414_v59 }
 0x284   : > { %9259 = vmatpush3.bf16.msra.mxu0 %v10415_v60  ;;  %9773 = vmatpush3.bf16.msra.mxu1 %v10416_v61  ;;  %v10417_v60 = vld [vmem:[#allocation21 + $0x1c0] sm:$0xff]  }
 0x285   : > { %9778 = vmatprep.subr.bf16.mxu1 %v11744_v0  ;;  %v10418_v61 = vld [vmem:[#allocation21 + $0x180] sm:$0xff]   ;;  %9275 = vmatprep.subr.bf16.mxu0 %v10417_v60  ;;  %v10441_v60 = vld [vmem:[#allocation13] ss:$8 sps:$4 sm:$0xff]  }
 0x33a   : > { %v9229_v63 = vpop.f32.mrb[0].mxu0  ;;  %v1535_v2 = vpop.f32.mrb[0].mxu1 }
 0x33b   : > { %v9230_v1 = vpop.f32.mrb[1].mxu0  ;;  %v9756_v5 = vpop.f32.mrb[1].mxu1 }
 0x33c   : > { %v9231_v3 = vadd.f32 %v9230_v1, %v9229_v63  ;;  %v9232_v4 = vpop.f32.mrb[2].mxu0  ;;  %v1538_v8 = vpop.f32.mrb[2].mxu1  ;;  %v10420_v63 = vld [vmem:[#allocation21 + $0x1c8] sm:$0xff]   ;;  %v10425_v5 = vld [vmem:[#allocation21 + $0x210] sm:$0xff]  }
 0x33d   : > { %v9233_v7 = vpop.f32.mrb[3].mxu0  ;;  %v9757_v11 = vpop.f32.mrb[3].mxu1  ;;  %v10421_v1 = vld [vmem:[#allocation21 + $0x188] sm:$0xff]  }
 0x33e   : > { %v1495_v9 = vadd.f32 %v9231_v3, %v8495_v62  ;;  %v9234_v10 = vadd.f32 %v9233_v7, %v9232_v4  ;;  %v10423_v3 = vld [vmem:[#allocation21 + $0x1d0] sm:$0xff]   ;;  %v10427_v7 = vld [vmem:[#allocation21 + $0x198] sm:$0xff]   ;;  %v10431_v11 = vld [vmem:[#allocation21 + $0x220] sm:$0xff]  }
 0x33f   : > { %v10424_v4 = vld [vmem:[#allocation21 + $0x190] sm:$0xff]  }
 0x340   : > { %v1536_v12 = vadd.f32 %v1535_v2, %v1495_v9  ;;  %v1498_v13 = vadd.f32 %v9234_v10, %v8495_v62  ;;  %v10419_v62 = vld [vmem:[#allocation21 + $0x200] sm:$0xff]   ;;  %v10422_v2 = vld [vmem:[#allocation21 + $0x208] sm:$0xff]  }
 0x341   : > { %v10429_v9 = vld [vmem:[#allocation21 + $0x1e0] sm:$0xff]  }
 0x342   : > { %vm1542_vm7 = vcmp.ge.f32.partialorder %v1536_v12, 0.0  ;;  %v1549_v14 = vmul.f32 %v8520_v6, %v1536_v12  ;;  %v1539_v15 = vadd.f32 %v1538_v8, %v1498_v13  ;;  %v10428_v8 = vld [vmem:[#allocation21 + $0x218] sm:$0xff]   ;;  %v10430_v10 = vld [vmem:[#allocation21 + $0x1a0] sm:$0xff]   ;;  %v10433_v13 = vld [vmem:[#allocation21 + $0x1a8] sm:$0xff]  }
 0x344   : > { %vm1543_vm8 = vcmp.ge.f32.partialorder %v1539_v15, 0.0  ;;  %v1550_v16 = vmul.f32 %v8520_v6, %v1539_v15  ;;  %v1551_v17 = vsel %vm1542_vm7, %v1536_v12, %v1549_v14  ;;  %v10426_v6 = vld [vmem:[#allocation21 + $0x1d8] sm:$0xff]   ;;  %v10432_v12 = vld [vmem:[#allocation21 + $0x1e8] sm:$0xff]  }
 0x345   : > { %v10434_v14 = vld [vmem:[#allocation21 + $0x228] sm:$0xff]  }
 0x346   : > { %v1552_v18 = vsel %vm1543_vm8, %v1539_v15, %v1550_v16  ;;  %v10435_v15 = vld [vmem:[#allocation21 + $0x1f0] sm:$0xff]  }
 0x347   : > { %v1602_v19 = vpack.c.bf16 %v1552_v18, %v1551_v17  ;;  %v10436_v16 = vld [vmem:[#allocation21 + $0x1b0] sm:$0xff]   ;;  %v10438_v18 = vld [vmem:[#allocation21 + $0x1f8] sm:$0xff]  }
 0x348   : > { %v10437_v17 = vld [vmem:[#allocation21 + $0x230] sm:$0xff]  }
 0x349   : > { %v1604_v20 = vshrl.u32 %v1602_v19, 16  ;;  %1797 = vmatprep.mubr.bf16.mxu0 %v1602_v19  ;;  %v1607_v21 = vshll.u32 %v1602_v19, 16  ;;  %v10439_v19 = vld [vmem:[#allocation21 + $0x1b8] sm:$0xff]  }
 0x34b   : > { %v1606_v22 = vrot.slane %v1604_v20, 7  ;;  %v1612_v23 = vrot.slane %v1607_v21, 1 }
 0x34d   : > { %v1609_v24 = vor.u32 %v1607_v21, %v1606_v22  ;;  %v1613_v25 = vor.u32 %v1612_v23, %v1604_v20  ;;  %v10440_v20 = vld [vmem:[#allocation21 + $0x238] sm:$0xff]  }
 0x34e   : > { %v10443_v21 = vld [vmem:[#allocation13 + $0x4] ss:$8 sps:$4 sm:$0xff]   ;;  %v1864_v22 = vld [vmem:[#allocation19 + $0x2] sm:$0x3] }
 0x34f   : > { %v1611_v27 = vsel %vm12271_vm5, 0, %v1609_v24  ;;  %v1615_v28 = vsel %vm12276_vm6, %v1613_v25, 0 }
 0x350   : > { %1798 = vmatmul.mubr.bf16.vlgmr.msra.gmra.mrb[4].mxu0 %v1611_v27  ;;  %9775 = vmatmul.mubr.bf16.vlgmr.msra.gmra.mrb[4].mxu1 %v1615_v28 }
 0x351   : > { %9794 = vmatprep.mubr.msk.bf16.mxu1 %vm11745_vm0, %v11744_v0  ;;  %9276 = vmatpush3.bf16.msra.mxu0 %v10418_v61 }
 0x352   : > { %9779 = vmatpush3.bf16.msra.mxu1 %v10419_v62  ;;  %9277 = vmatprep.subr.bf16.mxu0 %v10420_v63  ;;  %v10444_v62 = vld [vmem:[#allocation13 + $0x10] ss:$8 sps:$4 sm:$0xff]   ;;  %v10449_v63 = vld [vmem:[#allocation13 + $0x24] ss:$8 sps:$4 sm:$0xff]  }
 0x353   : > { %9780 = vmatprep.subr.bf16.mxu1 %v11744_v0 }
 0x355   : > { %9278 = vmatpush3.bf16.msra.mxu0 %v10421_v1  ;;  %v10447_v1 = vld [vmem:[#allocation13 + $0x20] ss:$8 sps:$4 sm:$0xff]  }
 0x356   : > { %9781 = vmatpush3.bf16.msra.mxu1 %v10422_v2  ;;  %9279 = vmatprep.subr.bf16.mxu0 %v10423_v3  ;;  %v10452_v2 = vld [vmem:[#allocation13 + $0x34] ss:$8 sps:$4 sm:$0xff]   ;;  %v10450_v3 = vld [vmem:[#allocation13 + $0x30] ss:$8 sps:$4 sm:$0xff]  }
 0x357   : > { %9782 = vmatprep.subr.bf16.mxu1 %v11744_v0 }
 0x359   : > { %9280 = vmatpush3.bf16.msra.mxu0 %v10424_v4  ;;  %v10455_v4 = vld [vmem:[#allocation13 + $0x44] ss:$8 sps:$4 sm:$0xff]  }
 0x35a   : > { %9783 = vmatpush3.bf16.msra.mxu1 %v10425_v5  ;;  %9281 = vmatprep.subr.bf16.mxu0 %v10426_v6  ;;  %v10453_v5 = vld [vmem:[#allocation13 + $0x40] ss:$8 sps:$4 sm:$0xff]   ;;  %v10458_v6 = vld [vmem:[#allocation13 + $0x54] ss:$8 sps:$4 sm:$0xff]  }
 0x35b   : > { %9784 = vmatprep.subr.bf16.mxu1 %v11744_v0 }
 0x35d   : > { %9282 = vmatpush3.bf16.msra.mxu0 %v10427_v7  ;;  %v10456_v7 = vld [vmem:[#allocation13 + $0x50] ss:$8 sps:$4 sm:$0xff]  }
 0x35e   : > { %9785 = vmatpush3.bf16.msra.mxu1 %v10428_v8  ;;  %9283 = vmatprep.subr.bf16.mxu0 %v10429_v9  ;;  %v10461_v8 = vld [vmem:[#allocation13 + $0x64] ss:$8 sps:$4 sm:$0xff]   ;;  %v10459_v9 = vld [vmem:[#allocation13 + $0x60] ss:$8 sps:$4 sm:$0xff]  }
 0x35f   : > { %9786 = vmatprep.subr.bf16.mxu1 %v11744_v0 }
 0x361   : > { %9284 = vmatpush3.bf16.msra.mxu0 %v10430_v10  ;;  %v10464_v10 = vld [vmem:[#allocation13 + $0x74] ss:$8 sps:$4 sm:$0xff]  }
 0x362   : > { %9787 = vmatpush3.bf16.msra.mxu1 %v10431_v11  ;;  %9285 = vmatprep.subr.bf16.mxu0 %v10432_v12  ;;  %v10462_v11 = vld [vmem:[#allocation13 + $0x70] ss:$8 sps:$4 sm:$0xff]   ;;  %v10467_v12 = vld [vmem:[#allocation13 + $0x84] ss:$8 sps:$4 sm:$0xff]  }
 0x363   : > { %9788 = vmatprep.subr.bf16.mxu1 %v11744_v0 }
 0x365   : > { %9286 = vmatpush3.bf16.msra.mxu0 %v10433_v13  ;;  %v10465_v13 = vld [vmem:[#allocation13 + $0x80] ss:$8 sps:$4 sm:$0xff]  }
 0x366   : > { %9789 = vmatpush3.bf16.msra.mxu1 %v10434_v14  ;;  %9287 = vmatprep.subr.bf16.mxu0 %v10435_v15  ;;  %v10470_v14 = vld [vmem:[#allocation13 + $0x94] ss:$8 sps:$4 sm:$0xff]   ;;  %v10468_v15 = vld [vmem:[#allocation13 + $0x90] ss:$8 sps:$4 sm:$0xff]  }
 0x367   : > { %9790 = vmatprep.subr.bf16.mxu1 %v11744_v0 }
 0x369   : > { %9288 = vmatpush3.bf16.msra.mxu0 %v10436_v16  ;;  %v10473_v16 = vld [vmem:[#allocation13 + $0xa4] ss:$8 sps:$4 sm:$0xff]  }
 0x36a   : > { %9791 = vmatpush3.bf16.msra.mxu1 %v10437_v17  ;;  %9289 = vmatprep.subr.bf16.mxu0 %v10438_v18  ;;  %v10471_v17 = vld [vmem:[#allocation13 + $0xa0] ss:$8 sps:$4 sm:$0xff]   ;;  %v10476_v18 = vld [vmem:[#allocation13 + $0xb4] ss:$8 sps:$4 sm:$0xff]  }
 0x36b   : > { %9792 = vmatprep.subr.bf16.mxu1 %v11744_v0 }
 0x36d   : > { %9290 = vmatpush3.bf16.msra.mxu0 %v10439_v19  ;;  %v10474_v19 = vld [vmem:[#allocation13 + $0xb0] ss:$8 sps:$4 sm:$0xff]  }
 0x36e   : > { %9793 = vmatpush3.bf16.msra.mxu1 %v10440_v20  ;;  %2485 = vmatprep.subr.bf16.mxu0 %v10443_v21  ;;  %v10479_v20 = vld [vmem:[#allocation13 + $0xc4] ss:$8 sps:$4 sm:$0xff]   ;;  %v10477_v21 = vld [vmem:[#allocation13 + $0xc0] ss:$8 sps:$4 sm:$0xff]  }
 0x36f   : > { %9798 = vmatprep.subr.bf16.mxu1 %v11744_v0 }
 0x423   : > { %v9260_v29 = vpop.f32.mrb[4].mxu0  ;;  %v1840_v31 = vpop.f32.mrb[4].mxu1 }
 0x424   : > { %v9261_v33 = vpop.f32.mrb[5].mxu0  ;;  %v9776_v34 = vpop.f32.mrb[5].mxu1 }
 0x425   : > { %v9262_v35 = vadd.f32 %v9261_v33, %v9260_v29  ;;  %v9263_v36 = vpop.f32.mrb[6].mxu0  ;;  %v1843_v37 = vpop.f32.mrb[6].mxu1  ;;  %v1878_v33 = vld [vmem:[#allocation18 + $0x2] sm:$0x1] }
 0x426   : > { %v9264_v38 = vpop.f32.mrb[7].mxu0  ;;  %v9777_v39 = vpop.f32.mrb[7].mxu1 }
 0x427   : > { %v1800_v40 = vadd.f32 %v9262_v35, %v8521_v32  ;;  %v9265_v41 = vadd.f32 %v9264_v38, %v9263_v36  ;;  %v1886_v39 = vlaneseq }
 0x429   : > { %v12302_v42 = vadd.f32 %v1840_v31, %v1800_v40  ;;  %v1803_v43 = vadd.f32 %v9265_v41, %v8521_v32  ;;  %v1887_v40 = vshrl.u32 %v1886_v39, 7 }
 0x42b   : > { %v12304_v44 = vadd.f32 %v1843_v37, %v1803_v43  ;;  %v12321_v41 = vsub.s32 0, %v1887_v40 }
 0x42d   : > { %v1847_v45 = vadd.f32 %v12304_v44, %v12302_v42 }
 0x42f   : > { %v1848_v46 = vrot.slane %v1847_v45, 4 }
 0x431   : > { %v1849_v47 = vadd.f32 %v1848_v46, %v1847_v45 }
 0x433   : > { %v1850_v48 = vrot.slane %v1849_v47, 2 }
 0x435   : > { %v1851_v49 = vadd.f32 %v1850_v48, %v1849_v47  ;;  %v12327_v48 = vld [vmem:[%s12264_s7] sm:$0xff] }
 0x437   : > { %v1852_v50 = vrot.slane %v1851_v49, 1 }
 0x439   : > { %v1853_v52 = vadd.f32 %v1852_v50, %v1851_v49  ;;  %v12331_v50 = vld [vmem:[%s12264_s7 + $0x8] sm:$0xff] }
 0x43b   : > { %v1855_v53 = vmul.f32 %v1854_v51, %v1853_v52 }
 0x43d   : > { %v1857_v54 = vsel %vm1856_vm9, %v1855_v53, 0.0 }
 0x43e   : > { %1858 = vadd.xlane.f32.xlu0 %v1857_v54 }
 0x4cb   : > { %v1859_v57 = vpop.xlane.xlu0 %1858 }
 0x4cc   : > { %v1861_v58 = vadd.f32 %v1860_v56, %v1859_v57 }
 0x4ce   : > { %v1862_v59 = vmax.f32 %v1861_v58, 0.0 }
 0x4d0   : > { %1867 = vperm.xlu0 %10367, %v1862_v59  }
 0x54f   : > { %v1868_v23 = vpop.permute.xlu0 %1867 }
 0x550   : > { %v1870_v24 = vmul.f32 %v1868_v23, %v1864_v22  ;;  %v10482_v22 = vld [vmem:[#allocation13 + $0xd4] ss:$8 sps:$4 sm:$0xff]   ;;  %v10480_v23 = vld [vmem:[#allocation13 + $0xd0] ss:$8 sps:$4 sm:$0xff]  }
 0x552   : > { %v1871_v25 = vsel %vm1856_vm9, %v1870_v24, 0.0  ;;  %v10485_v24 = vld [vmem:[#allocation13 + $0xe4] ss:$8 sps:$4 sm:$0xff]  }
 0x553   : > { %v1872_v27 = vrot.slane %v1871_v25, 4 }
 0x555   : > { %v1873_v28 = vadd.f32 %v1872_v27, %v1871_v25  ;;  %v10483_v25 = vld [vmem:[#allocation13 + $0xe0] ss:$8 sps:$4 sm:$0xff]   ;;  %v10486_v27 = vld [vmem:[#allocation13 + $0xf0] ss:$8 sps:$4 sm:$0xff]  }
 0x557   : > { %v1874_v29 = vrot.slane %v1873_v28, 2 }
 0x559   : > { %v1875_v31 = vadd.f32 %v1874_v29, %v1873_v28  ;;  %v10488_v28 = vld [vmem:[#allocation13 + $0xf4] ss:$8 sps:$4 sm:$0xff]   ;;  %v10491_v29 = vld [vmem:[#allocation13 + $0x104] ss:$8 sps:$4 sm:$0xff]  }
 0x55b   : > { %v1876_v32 = vrot.slane %v1875_v31, 1 }
 0x55d   : > { %v1877_v34 = vadd.f32 %v1876_v32, %v1875_v31 }
 0x55f   : > { %v1879_v35 = vadd.f32 %v1878_v33, %v1877_v34 }
 0x561   : > { %v8546_v36 = vmul.f32 -1.442695, %v1879_v35 }
 0x563   : > { %11051 = vpow2.f32 %v8546_v36 }
 0x56d   : > { %v11052_v37 = vpop.eup %11051 }
 0x56e   : > { %v1883_v38 = vadd.f32 1.0, %v11052_v37 }
 0x570   : > { %11053 = vrcp.f32 %v1883_v38 }
 0x57a   : > { %v11054_v43 = vpop.eup %11053 }
 0x57b   : > { %v1889_v45 = vrot.slane %v11054_v43, %v12321_v41 }
 0x57d   : > { %v1890_v46 = vmul.f32 %v1889_v45, %v12302_v42  ;;  %v1891_v47 = vmul.f32 %v1889_v45, %v12304_v44  ;;  %v10446_v42 = vld [vmem:[#allocation13 + $0x14] ss:$8 sps:$4 sm:$0xff]  }
 0x57f   : > { %v1892_v49 = vadd.f32 %v12327_v48, %v1890_v46  ;;  %v1893_v51 = vadd.f32 %v12331_v50, %v1891_v47 }
 0x581   : > { %v1943_v52 = vpack.c.bf16 %v1893_v51, %v1892_v49 }
 0x583   : > { %v1945_v53 = vshrl.u32 %v1943_v52, 16  ;;  %2133 = vmatprep.mubr.bf16.mxu0 %v1943_v52  ;;  %v1948_v54 = vshll.u32 %v1943_v52, 16 }
 0x585   : > { %v1947_v56 = vrot.slane %v1945_v53, 7  ;;  %v1953_v57 = vrot.slane %v1948_v54, 1 }
 0x587   : > { %v1950_v58 = vor.u32 %v1948_v54, %v1947_v56  ;;  %v1954_v59 = vor.u32 %v1953_v57, %v1945_v53  ;;  %v10489_v54 = vld [vmem:[#allocation13 + $0x100] ss:$8 sps:$4 sm:$0xff]   ;;  %v10494_v57 = vld [vmem:[#allocation13 + $0x114] ss:$8 sps:$4 sm:$0xff]  }
 0x589   : > { %v1952_v44 = vsel %vm12271_vm5, 0, %v1950_v58  ;;  %v1956_v61 = vsel %vm12276_vm6, %v1954_v59, 0  ;;  %v10492_v58 = vld [vmem:[#allocation13 + $0x110] ss:$8 sps:$4 sm:$0xff]   ;;  %v10495_v59 = vld [vmem:[#allocation13 + $0x120] ss:$8 sps:$4 sm:$0xff]  }
 0x58a   : > { %2134 = vmatmul.mubr.bf16.vlgmr.msra.gmra.mrb[8].mxu0 %v1952_v44  ;;  %9795 = vmatmul.mubr.bf16.vlgmr.msra.gmra.mrb[8].mxu1 %v1956_v61  ;;  %v10503_v44 = vld [vmem:[#allocation13 + $0x144] ss:$8 sps:$4 sm:$0xff]   ;;  %v10501_v61 = vld [vmem:[#allocation13 + $0x140] ss:$8 sps:$4 sm:$0xff]  }
 0x58b   : > { %2486 = vmatpush1.bf16.msra.mxu0 %v10441_v60  ;;  %9800 = vmatprep.mubr.msk.bf16.mxu1 %vm11745_vm0, %v11744_v0  ;;  %v10500_v60 = vld [vmem:[#allocation13 + $0x134] ss:$8 sps:$4 sm:$0xff]  }
 0x58c   : > { %2487 = vmatprep.subr.bf16.mxu0 %v10446_v42  ;;  %v10498_v42 = vld [vmem:[#allocation13 + $0x130] ss:$8 sps:$4 sm:$0xff]  }
 0x58f   : > { %2488 = vmatpush1.bf16.msra.mxu0 %v10444_v62  ;;  %v10506_v62 = vld [vmem:[#allocation13 + $0x154] ss:$8 sps:$4 sm:$0xff]  }
 0x590   : > { %2489 = vmatprep.subr.bf16.mxu0 %v10449_v63  ;;  %v10504_v63 = vld [vmem:[#allocation13 + $0x150] ss:$8 sps:$4 sm:$0xff]  }
 0x593   : > { %2490 = vmatpush1.bf16.msra.mxu0 %v10447_v1  ;;  %v10509_v1 = vld [vmem:[#allocation13 + $0x164] ss:$8 sps:$4 sm:$0xff]  }
 0x594   : > { %2491 = vmatprep.subr.bf16.mxu0 %v10452_v2  ;;  %v10507_v2 = vld [vmem:[#allocation13 + $0x160] ss:$8 sps:$4 sm:$0xff]  }
 0x597   : > { %2492 = vmatpush1.bf16.msra.mxu0 %v10450_v3  ;;  %v10512_v3 = vld [vmem:[#allocation13 + $0x174] ss:$8 sps:$4 sm:$0xff]  }
 0x598   : > { %2493 = vmatprep.subr.bf16.mxu0 %v10455_v4 }
 0x59b   : > { %2494 = vmatpush1.bf16.msra.mxu0 %v10453_v5  ;;  %v10510_v5 = vld [vmem:[#allocation13 + $0x170] ss:$8 sps:$4 sm:$0xff]  }
 0x59c   : > { %2495 = vmatprep.subr.bf16.mxu0 %v10458_v6 }
 0x59f   : > { %2496 = vmatpush1.bf16.msra.mxu0 %v10456_v7 }
 0x5a0   : > { %2497 = vmatprep.subr.bf16.mxu0 %v10461_v8 }
 0x5a3   : > { %2498 = vmatpush1.bf16.msra.mxu0 %v10459_v9 }
 0x5a4   : > { %2499 = vmatprep.subr.bf16.mxu0 %v10464_v10 }
 0x5a7   : > { %2500 = vmatpush1.bf16.msra.mxu0 %v10462_v11 }
 0x5a8   : > { %2501 = vmatprep.subr.bf16.mxu0 %v10467_v12 }
 0x5ab   : > { %2502 = vmatpush1.bf16.msra.mxu0 %v10465_v13 }
 0x5ac   : > { %2503 = vmatprep.subr.bf16.mxu0 %v10470_v14  ;;  %v2575_v14 = vld [vmem:[#allocation12 + $0x4] sm:$0xf] }
 0x5af   : > { %2504 = vmatpush1.bf16.msra.mxu0 %v10468_v15  ;;  %v10513_v15 = vld [vmem:[#allocation25 + $0x40] sm:$0xff]  }
 0x5b0   : > { %2505 = vmatprep.subr.bf16.mxu0 %v10473_v16  ;;  %v2573_v16 = vld [vmem:[#allocation12] sm:$0xf] }
 0x5b3   : > { %2506 = vmatpush1.bf16.msra.mxu0 %v10471_v17  ;;  %v10514_v17 = vld [vmem:[#allocation25] sm:$0xff]  }
 0x5b4   : > { %2507 = vmatprep.subr.bf16.mxu0 %v10476_v18  ;;  %v10515_v18 = vld [vmem:[#allocation25 + $0x48] sm:$0xff]  }
 0x5b7   : > { %2508 = vmatpush1.bf16.msra.mxu0 %v10474_v19  ;;  %v10516_v19 = vld [vmem:[#allocation25 + $0x8] sm:$0xff]  }
 0x5b8   : > { %2509 = vmatprep.subr.bf16.mxu0 %v10479_v20  ;;  %v10517_v20 = vld [vmem:[#allocation25 + $0x50] sm:$0xff]  }
 0x5bb   : > { %2510 = vmatpush1.bf16.msra.mxu0 %v10477_v21  ;;  %v10518_v21 = vld [vmem:[#allocation25 + $0x10] sm:$0xff]  }
 0x5bc   : > { %2511 = vmatprep.subr.bf16.mxu0 %v10482_v22  ;;  %v10519_v22 = vld [vmem:[#allocation25 + $0x58] sm:$0xff]  }
 0x5bf   : > { %2512 = vmatpush1.bf16.msra.mxu0 %v10480_v23  ;;  %v10520_v23 = vld [vmem:[#allocation25 + $0x18] sm:$0xff]  }
 0x5c0   : > { %2513 = vmatprep.subr.bf16.mxu0 %v10485_v24  ;;  %v10521_v24 = vld [vmem:[#allocation25 + $0x60] sm:$0xff]  }
 0x5c3   : > { %2514 = vmatpush1.bf16.msra.mxu0 %v10483_v25  ;;  %v10522_v25 = vld [vmem:[#allocation25 + $0x20] sm:$0xff]  }
 0x5c4   : > { %2515 = vmatprep.subr.bf16.mxu0 %v10488_v28  ;;  %v10524_v28 = vld [vmem:[#allocation25 + $0x28] sm:$0xff]  }
 0x5c7   : > { %2516 = vmatpush1.bf16.msra.mxu0 %v10486_v27  ;;  %v10523_v27 = vld [vmem:[#allocation25 + $0x68] sm:$0xff]  }
 0x5c8   : > { %2528 = vmatprep.subr.bf16.mxu0 %v10491_v29  ;;  %v10525_v29 = vld [vmem:[#allocation25 + $0x70] sm:$0xff]  }
 0x65d   : > { %v9291_v31 = vpop.f32.mrb[8].mxu0  ;;  %v2176_v32 = vpop.f32.mrb[8].mxu1 }
 0x65e   : > { %v9292_v33 = vpop.f32.mrb[9].mxu0  ;;  %v9796_v34 = vpop.f32.mrb[9].mxu1 }
 0x65f   : > { %v9293_v35 = vadd.f32 %v9292_v33, %v9291_v31  ;;  %v9294_v36 = vpop.f32.mrb[10].mxu0  ;;  %v2179_v37 = vpop.f32.mrb[10].mxu1  ;;  %v10526_v31 = vld [vmem:[#allocation25 + $0x30] sm:$0xff]   ;;  %v10528_v33 = vld [vmem:[#allocation25 + $0x38] sm:$0xff]  }
 0x660   : > { %v9295_v38 = vpop.f32.mrb[11].mxu0  ;;  %v9797_v39 = vpop.f32.mrb[11].mxu1 }
 0x661   : > { %v2136_v40 = vadd.f32 %v12327_v48, %v9293_v35  ;;  %v9296_v43 = vadd.f32 %v9295_v38, %v9294_v36 }
 0x663   : > { %v2177_v45 = vadd.f32 %v2176_v32, %v2136_v40  ;;  %v2139_v46 = vadd.f32 %v12331_v50, %v9296_v43  ;;  %v10497_v50 = vld [vmem:[#allocation13 + $0x124] ss:$8 sps:$4 sm:$0xff]   ;;  %v10527_v32 = vld [vmem:[#allocation25 + $0x78] sm:$0xff]  }
 0x665   : > { %v2180_v47 = vadd.f32 %v2179_v37, %v2139_v46  ;;  %v10529_v46 = vld [vmem:[#allocation25 + $0x80] sm:$0xff]  }
 0x667   : > { %v12342_v49 = vpack.c.bf16 %v2180_v47, %v2177_v45 }
 0x669   : > { %2517 = vmatprep.mubr.bf16.mxu0 %v12342_v49  ;;  %v2233_v51 = vshrl.u32 %v12342_v49, 16  ;;  %v2236_v53 = vshll.u32 %v12342_v49, 16 }
 0x66b   : > { %v2235_v52 = vrot.slane %v2233_v51, 7  ;;  %v2241_v4 = vrot.slane %v2236_v53, 1 }
 0x66d   : > { %v2238_v56 = vor.u32 %v2236_v53, %v2235_v52  ;;  %v2242_v6 = vor.u32 %v2241_v4, %v2233_v51  ;;  %v10530_v51 = vld [vmem:[#allocation25 + $0x88] sm:$0xff]   ;;  %v10531_v52 = vld [vmem:[#allocation25 + $0x90] sm:$0xff]   ;;  %v10532_v53 = vld [vmem:[#allocation25 + $0x98] sm:$0xff]  }
 0x66e   : > { %v10544_v4 = vld [vmem:[#allocation25 + $0xd0] sm:$0xff]  }
 0x66f   : > { %v2240_v48 = vsel %vm12271_vm5, 0, %v2238_v56  ;;  %v2244_v7 = vsel %vm12276_vm6, %v2242_v6, 0  ;;  %v10534_v56 = vld [vmem:[#allocation25 + $0xa8] sm:$0xff]   ;;  %v10548_v6 = vld [vmem:[#allocation25 + $0x158] sm:$0xff]  }
 0x670   : > { %2518 = vmatmul.mubr.bf16.vlgmr.msra.gmra.mrb[12].mxu0 %v2240_v48 }
 0x671   : > { %2529 = vmatpush1.bf16.msra.mxu0 %v10489_v54  ;;  %2560 = vmatprep.mubr.bf16.mxu0 %v11746_v55  ;;  %v10533_v54 = vld [vmem:[#allocation25 + $0xa0] sm:$0xff]  }
 0x672   : > { %2530 = vmatprep.subr.bf16.mxu0 %v10494_v57  ;;  %v10535_v57 = vld [vmem:[#allocation25 + $0xb0] sm:$0xff]  }
 0x675   : > { %2531 = vmatpush1.bf16.msra.mxu0 %v10492_v58  ;;  %v10536_v58 = vld [vmem:[#allocation25 + $0xb8] sm:$0xff]  }
 0x676   : > { %2532 = vmatprep.subr.bf16.mxu0 %v10497_v50 }
 0x679   : > { %2533 = vmatpush1.bf16.msra.mxu0 %v10495_v59 }
 0x67a   : > { %2534 = vmatprep.subr.bf16.mxu0 %v10500_v60 }
 0x67d   : > { %2535 = vmatpush1.bf16.msra.mxu0 %v10498_v42  ;;  %v10537_v42 = vld [vmem:[#allocation25 + $0x100] sm:$0xff]  }
 0x67e   : > { %2536 = vmatprep.subr.bf16.mxu0 %v10503_v44  ;;  %v10538_v44 = vld [vmem:[#allocation25 + $0xc0] sm:$0xff]  }
 0x681   : > { %2537 = vmatpush1.bf16.msra.mxu0 %v10501_v61  ;;  %v10539_v61 = vld [vmem:[#allocation25 + $0x140] sm:$0xff]  }
 0x682   : > { %2538 = vmatprep.subr.bf16.mxu0 %v10506_v62  ;;  %v10540_v62 = vld [vmem:[#allocation25 + $0x108] sm:$0xff]  }
 0x685   : > { %2539 = vmatpush1.bf16.msra.mxu0 %v10504_v63  ;;  %v10542_v63 = vld [vmem:[#allocation25 + $0x148] sm:$0xff]  }
 0x686   : > { %2540 = vmatprep.subr.bf16.mxu0 %v10509_v1  ;;  %v10541_v1 = vld [vmem:[#allocation25 + $0xc8] sm:$0xff]  }
 0x689   : > { %2541 = vmatpush1.bf16.msra.mxu0 %v10507_v2  ;;  %v10543_v2 = vld [vmem:[#allocation25 + $0x110] sm:$0xff]  }
 0x68a   : > { %2542 = vmatprep.subr.bf16.mxu0 %v10512_v3  ;;  %v10545_v3 = vld [vmem:[#allocation25 + $0x150] sm:$0xff]  }
 0x68d   : > { %2543 = vmatpush1.bf16.msra.mxu0 %v10510_v5  ;;  %v10546_v5 = vld [vmem:[#allocation25 + $0x118] sm:$0xff]  }
 0x68e   : > { %9830 = vmatprep.subr.bf16.mxu0 %v11744_v0 }
 0x690   : > { %2561 = vmatmul.mubr.bf16.vlgmr.msra.gmra.mrb[12].mxu0 %v2244_v7  ;;  %v10547_v7 = vld [vmem:[#allocation25 + $0xd8] sm:$0xff]  }
 0x691   : > { %9846 = vmatprep.mubr.msk.bf16.mxu0 %vm11745_vm0, %v11744_v0  ;;  %9831 = vmatpush3.bf16.msra.mxu0 %v10539_v61 }
 0x692   : > { %9832 = vmatprep.subr.bf16.mxu0 %v11744_v0 }
 0x695   : > { %9833 = vmatpush3.bf16.msra.mxu0 %v10542_v63 }
 0x696   : > { %9834 = vmatprep.subr.bf16.mxu0 %v11744_v0 }
 0x699   : > { %9835 = vmatpush3.bf16.msra.mxu0 %v10545_v3 }
 0x69a   : > { %9836 = vmatprep.subr.bf16.mxu0 %v11744_v0 }
 0x69d   : > { %9837 = vmatpush3.bf16.msra.mxu0 %v10548_v6 }
 0x69e   : > { %9838 = vmatprep.subr.bf16.mxu0 %v11744_v0 }
 0x763   : > { %v2562_v8 = vpop.f32.mrb[12].mxu0 }
 0x764   : > { %v2564_v9 = vpop.f32.mrb[13].mxu0 }
 0x765   : > { %v2566_v10 = vpop.f32.mrb[14].mxu0 }
 0x766   : > { %v2571_v11 = vpack.c.bf16 %v2566_v10, %v2562_v8  ;;  %v2568_v12 = vpop.f32.mrb[15].mxu0  ;;  %v10549_v8 = vld [vmem:[#allocation25 + $0x120] sm:$0xff]  }
 0x767   : > { %v2572_v13 = vpack.c.bf16 %v2568_v12, %v2564_v9  ;;  %v10550_v9 = vld [vmem:[#allocation25 + $0xe0] sm:$0xff]   ;;  %v10553_v12 = vld [vmem:[#allocation25 + $0xe8] sm:$0xff]  }
 0x768   : > { %v10551_v10 = vld [vmem:[#allocation25 + $0x160] sm:$0xff]  }
 0x769   : > { %9799 = vmatpush3.bf16.msra.mxu1 %v2572_v13  ;;  %9839 = vmatpush3.bf16.msra.mxu0 %v10551_v10  ;;  %v10554_v13 = vld [vmem:[#allocation25 + $0x168] sm:$0xff]  }
 0x76a   : > { %9804 = vmatprep.subr.bf16.mxu1 %v11744_v0  ;;  %9840 = vmatprep.subr.bf16.mxu0 %v11744_v0 }
 0x76c   : > { %9801 = vmatmul.mubr.msk.bf16.vlgmr.msra.gmra.mrb[12].mxu1 %vm2576_vm10, %v2575_v14  ;;  %v10555_v14 = vld [vmem:[#allocation25 + $0x130] sm:$0xff]  }
 0x76d   : > { %9805 = vmatpush3.bf16.msra.mxu1 %v2571_v11  ;;  %9806 = vmatprep.mubr.msk.bf16.mxu1 %vm11745_vm0, %v11744_v0  ;;  %v10552_v11 = vld [vmem:[#allocation25 + $0x128] sm:$0xff]  }
 0x76e   : > { %9310 = vmatprep.subr.bf16.mxu1 %v10513_v15  ;;  %9841 = vmatpush3.bf16.msra.mxu0 %v10554_v13  ;;  %v10556_v15 = vld [vmem:[#allocation25 + $0xf0] sm:$0xff]   ;;  %v10561_v13 = vld [vmem:[#allocation25 + $0x1c0] sm:$0xff]  }
 0x76f   : > { %9842 = vmatprep.subr.bf16.mxu0 %v11744_v0 }
 0x778   : > { %9807 = vmatmul.mubr.msk.bf16.vlgmr.msra.gmra.mrb[12].mxu1 %vm2576_vm10, %v2573_v16  ;;  %v10557_v16 = vld [vmem:[#allocation25 + $0x170] sm:$0xff]  }
 0x779   : > { %9311 = vmatpush3.bf16.msra.mxu1 %v10514_v17  ;;  %9843 = vmatpush3.bf16.msra.mxu0 %v10557_v16  ;;  %v10558_v17 = vld [vmem:[#allocation25 + $0x138] sm:$0xff]   ;;  %v10564_v16 = vld [vmem:[#allocation25 + $0x1c8] sm:$0xff]  }
 0x77a   : > { %9312 = vmatprep.subr.bf16.mxu1 %v10515_v18  ;;  %v10559_v18 = vld [vmem:[#allocation25 + $0xf8] sm:$0xff]   ;;  %9844 = vmatprep.subr.bf16.mxu0 %v11744_v0 }
 0x77d   : > { %9313 = vmatpush3.bf16.msra.mxu1 %v10516_v19  ;;  %v10560_v19 = vld [vmem:[#allocation25 + $0x178] sm:$0xff]  }
 0x77e   : > { %9314 = vmatprep.subr.bf16.mxu1 %v10517_v20  ;;  %9845 = vmatpush3.bf16.msra.mxu0 %v10560_v19  ;;  %v10567_v19 = vld [vmem:[#allocation25 + $0x1d0] sm:$0xff]  }
 0x77f   : > { %9850 = vmatprep.subr.bf16.mxu0 %v11744_v0 }
 0x781   : > { %9315 = vmatpush3.bf16.msra.mxu1 %v10518_v21 }
 0x782   : > { %9316 = vmatprep.subr.bf16.mxu1 %v10519_v22 }
 0x785   : > { %9317 = vmatpush3.bf16.msra.mxu1 %v10520_v23 }
 0x786   : > { %9318 = vmatprep.subr.bf16.mxu1 %v10521_v24 }
 0x789   : > { %9319 = vmatpush3.bf16.msra.mxu1 %v10522_v25  ;;  %v8621_v25 = vld [vmem:[#allocation22] ss:$0 sm:$0xff] }
 0x78a   : > { %9320 = vmatprep.subr.bf16.mxu1 %v10523_v27 }
 0x78d   : > { %9321 = vmatpush3.bf16.msra.mxu1 %v10524_v28 }
 0x78e   : > { %9322 = vmatprep.subr.bf16.mxu1 %v10525_v29  ;;  %v8646_v29 = vld [vmem:[#allocation22 + $0x3] ss:$0 sm:$0xff] }
 0x791   : > { %9323 = vmatpush3.bf16.msra.mxu1 %v10526_v31 }
 0x792   : > { %9324 = vmatprep.subr.bf16.mxu1 %v10527_v32 }
 0x795   : > { %9325 = vmatpush3.bf16.msra.mxu1 %v10528_v33 }
 0x796   : > { %9810 = vmatprep.subr.bf16.mxu1 %v11744_v0 }
 0x84b   : > { %v12359_v34 = vpop.f32.mrb[12].mxu1 }
 0x84c   : > { %v2711_v35 = vpack.c.bf16 %v12359_v34, %v12359_v34  ;;  %v9808_v36 = vpop.f32.mrb[13].mxu1 }
 0x84d   : > { %v2660_v37 = vpop.f32.mrb[14].mxu1 }
 0x84e   : > { %v2713_v38 = vshrl.u32 %v2711_v35, 16  ;;  %v9809_v39 = vpop.f32.mrb[15].mxu1  ;;  %2909 = vmatprep.mubr.bf16.mxu1 %v2711_v35  ;;  %v2716_v43 = vshll.u32 %v2711_v35, 16 }
 0x850   : > { %v2715_v40 = vrot.slane %v2713_v38, 7  ;;  %v2721_v48 = vrot.slane %v2716_v43, 1 }
 0x852   : > { %v2718_v45 = vor.u32 %v2716_v43, %v2715_v40  ;;  %v2722_v50 = vor.u32 %v2721_v48, %v2713_v38 }
 0x854   : > { %v2720_v47 = vsel %vm12271_vm5, 0, %v2718_v45  ;;  %v2727_v60 = vsel %vm12375_vm13, %v2722_v50, 0 }
 0x855   : > { %2910 = vmatmul.mubr.bf16.vlgmr.msra.gmra.mrb[16].mxu1 %v2720_v47 }
 0x856   : > { %9811 = vmatpush3.bf16.msra.mxu1 %v10529_v46  ;;  %9826 = vmatprep.mubr.msk.bf16.mxu1 %vm11745_vm0, %v11744_v0 }
 0x857   : > { %9812 = vmatprep.subr.bf16.mxu1 %v11744_v0 }
 0x85a   : > { %9813 = vmatpush3.bf16.msra.mxu1 %v10530_v51 }
 0x85b   : > { %9814 = vmatprep.subr.bf16.mxu1 %v11744_v0 }
 0x85e   : > { %9815 = vmatpush3.bf16.msra.mxu1 %v10531_v52 }
 0x85f   : > { %9816 = vmatprep.subr.bf16.mxu1 %v11744_v0 }
 0x862   : > { %9817 = vmatpush3.bf16.msra.mxu1 %v10532_v53 }
 0x863   : > { %9818 = vmatprep.subr.bf16.mxu1 %v11744_v0 }
 0x866   : > { %9819 = vmatpush3.bf16.msra.mxu1 %v10533_v54 }
 0x867   : > { %9820 = vmatprep.subr.bf16.mxu1 %v11744_v0 }
 0x86a   : > { %9821 = vmatpush3.bf16.msra.mxu1 %v10534_v56  ;;  %v8647_v56 = vld [vmem:[#allocation22 + $0x1] ss:$0 sm:$0xff] }
 0x86b   : > { %9822 = vmatprep.subr.bf16.mxu1 %v11744_v0 }
 0x86e   : > { %9823 = vmatpush3.bf16.msra.mxu1 %v10535_v57 }
 0x86f   : > { %9824 = vmatprep.subr.bf16.mxu1 %v11744_v0 }
 0x872   : > { %9825 = vmatpush3.bf16.msra.mxu1 %v10536_v58 }
 0x873   : > { %9341 = vmatprep.subr.bf16.mxu1 %v10537_v42 }
 0x875   : > { %9827 = vmatmul.mubr.bf16.vlgmr.msra.gmra.mrb[20].mxu1 %v2727_v60 }
 0x876   : > { %9342 = vmatpush3.bf16.msra.mxu1 %v10538_v44 }
 0x877   : > { %9343 = vmatprep.subr.bf16.mxu1 %v10540_v62 }
 0x87a   : > { %9344 = vmatpush3.bf16.msra.mxu1 %v10541_v1 }
 0x87b   : > { %9345 = vmatprep.subr.bf16.mxu1 %v10543_v2 }
 0x87e   : > { %9346 = vmatpush3.bf16.msra.mxu1 %v10544_v4 }
 0x87f   : > { %9347 = vmatprep.subr.bf16.mxu1 %v10546_v5  ;;  %v3263_v5 = vld [vmem:[#allocation24] sm:$0xf] }
 0x882   : > { %9348 = vmatpush3.bf16.msra.mxu1 %v10547_v7 }
 0x883   : > { %9349 = vmatprep.subr.bf16.mxu1 %v10549_v8 }
 0x886   : > { %9350 = vmatpush3.bf16.msra.mxu1 %v10550_v9  ;;  %v3269_v9 = vld [vmem:[%s12886_s23] sm:$0xf] }
 0x887   : > { %9351 = vmatprep.subr.bf16.mxu1 %v10552_v11 }
 0x88a   : > { %9352 = vmatpush3.bf16.msra.mxu1 %v10553_v12 }
 0x88b   : > { %9353 = vmatprep.subr.bf16.mxu1 %v10555_v14  ;;  %v10562_v14 = vld [vmem:[#allocation25 + $0x180] sm:$0xff]  }
 0x88e   : > { %9354 = vmatpush3.bf16.msra.mxu1 %v10556_v15  ;;  %v10563_v15 = vld [vmem:[#allocation25 + $0x200] sm:$0xff]  }
 0x88f   : > { %9355 = vmatprep.subr.bf16.mxu1 %v10558_v17  ;;  %v10565_v17 = vld [vmem:[#allocation25 + $0x188] sm:$0xff]  }
 0x892   : > { %9356 = vmatpush3.bf16.msra.mxu1 %v10559_v18  ;;  %v10566_v18 = vld [vmem:[#allocation25 + $0x208] sm:$0xff]  }
 0x893   : > { %9372 = vmatprep.subr.bf16.mxu1 %v10561_v13  ;;  %v10593_v13 = vld [vmem:[#allocation16 + $0x24] ss:$8 sps:$4 sm:$0xff]  }
 0x928   : > { %v9326_v20 = vpop.f32.mrb[16].mxu1 }
 0x929   : > { %v9327_v21 = vpop.f32.mrb[17].mxu1 }
 0x92a   : > { %v9328_v22 = vadd.f32 %v9327_v21, %v9326_v20  ;;  %v9329_v23 = vpop.f32.mrb[18].mxu1  ;;  %v10568_v20 = vld [vmem:[#allocation25 + $0x190] sm:$0xff]  }
 0x92b   : > { %v9330_v24 = vpop.f32.mrb[19].mxu1  ;;  %v10569_v21 = vld [vmem:[#allocation25 + $0x210] sm:$0xff]   ;;  %v10571_v23 = vld [vmem:[#allocation25 + $0x198] sm:$0xff]  }
 0x92c   : > { %v2912_v27 = vadd.f32 %v9328_v22, %v8621_v25  ;;  %v10570_v22 = vld [vmem:[#allocation25 + $0x1d8] sm:$0xff]   ;;  %v10573_v25 = vld [vmem:[#allocation25 + $0x1e0] sm:$0xff]  }
 0x92d   : > { %v10572_v24 = vld [vmem:[#allocation25 + $0x218] sm:$0xff]  }
 0x948   : > { %v2951_v28 = vpop.f32.mrb[20].mxu1 }
 0x949   : > { %v2952_v31 = vadd.f32 %v2951_v28, %v2912_v27  ;;  %v9828_v32 = vpop.f32.mrb[21].mxu1  ;;  %v10574_v27 = vld [vmem:[#allocation25 + $0x1a0] sm:$0xff]  }
 0x94a   : > { %v2954_v33 = vpop.f32.mrb[22].mxu1  ;;  %v10575_v28 = vld [vmem:[#allocation25 + $0x220] sm:$0xff]   ;;  %v10578_v32 = vld [vmem:[#allocation25 + $0x228] sm:$0xff]  }
 0x94b   : > { %vm2957_vm14 = vcmp.ge.f32.partialorder %v2952_v31, 0.0  ;;  %v2963_v35 = vmul.f32 %v8646_v29, %v2952_v31  ;;  %v9829_v36 = vpop.f32.mrb[23].mxu1  ;;  %v10576_v29 = vld [vmem:[#allocation25 + $0x1e8] sm:$0xff]   ;;  %v10579_v33 = vld [vmem:[#allocation25 + $0x1f0] sm:$0xff]  }
 0x94c   : > { %v10581_v36 = vld [vmem:[#allocation25 + $0x230] sm:$0xff]  }
 0x94d   : > { %v2964_v37 = vsel %vm2957_vm14, %v2952_v31, %v2963_v35  ;;  %v10577_v31 = vld [vmem:[#allocation25 + $0x1a8] sm:$0xff]   ;;  %v10580_v35 = vld [vmem:[#allocation25 + $0x1b0] sm:$0xff]  }
 0x94e   : > { %v3014_v38 = vpack.c.bf16 %v2964_v37, %v2964_v37  ;;  %v10582_v37 = vld [vmem:[#allocation25 + $0x1f8] sm:$0xff]  }
 0x950   : > { %v3016_v39 = vshrl.u32 %v3014_v38, 16  ;;  %3209 = vmatprep.mubr.bf16.mxu1 %v3014_v38  ;;  %v3019_v40 = vshll.u32 %v3014_v38, 16  ;;  %v10583_v38 = vld [vmem:[#allocation25 + $0x1b8] sm:$0xff]  }
 0x952   : > { %v3018_v43 = vrot.slane %v3016_v39, 7  ;;  %v3024_v45 = vrot.slane %v3019_v40, 1 }
 0x954   : > { %v3021_v46 = vor.u32 %v3019_v40, %v3018_v43  ;;  %v3025_v47 = vor.u32 %v3024_v45, %v3016_v39  ;;  %v10584_v39 = vld [vmem:[#allocation25 + $0x238] sm:$0xff]  }
 0x955   : > { %v10587_v40 = vld [vmem:[#allocation16 + $0x4] ss:$8 sps:$4 sm:$0xff]   ;;  %v3273_v43 = vld [vmem:[#allocation24 + $0x4] sm:$0xf] }
 0x956   : > { %v3023_v51 = vsel %vm12271_vm5, 0, %v3021_v46  ;;  %v3027_v52 = vsel %vm12375_vm13, %v3025_v47, 0 }
 0x957   : > { %3210 = vmatmul.mubr.bf16.vlgmr.msra.gmra.mrb[24].mxu1 %v3023_v51  ;;  %9847 = vmatmul.mubr.bf16.vlgmr.msra.gmra.mrb[16].mxu0 %v3027_v52 }
 0x958   : > { %9866 = vmatprep.mubr.msk.bf16.mxu0 %vm11745_vm0, %v11744_v0  ;;  %9373 = vmatpush3.bf16.msra.mxu1 %v10562_v14  ;;  %v10591_v14 = vld [vmem:[#allocation16 + $0x20] ss:$8 sps:$4 sm:$0xff]  }
 0x959   : > { %9851 = vmatpush3.bf16.msra.mxu0 %v10563_v15  ;;  %9374 = vmatprep.subr.bf16.mxu1 %v10564_v16  ;;  %v10596_v15 = vld [vmem:[#allocation16 + $0x34] ss:$8 sps:$4 sm:$0xff]   ;;  %v10594_v16 = vld [vmem:[#allocation16 + $0x30] ss:$8 sps:$4 sm:$0xff]  }
 0x95a   : > { %9852 = vmatprep.subr.bf16.mxu0 %v11744_v0 }
 0x95c   : > { %9375 = vmatpush3.bf16.msra.mxu1 %v10565_v17  ;;  %v10599_v17 = vld [vmem:[#allocation16 + $0x44] ss:$8 sps:$4 sm:$0xff]  }
 0x95d   : > { %9853 = vmatpush3.bf16.msra.mxu0 %v10566_v18  ;;  %9376 = vmatprep.subr.bf16.mxu1 %v10567_v19  ;;  %v10597_v18 = vld [vmem:[#allocation16 + $0x40] ss:$8 sps:$4 sm:$0xff]   ;;  %v10602_v19 = vld [vmem:[#allocation16 + $0x54] ss:$8 sps:$4 sm:$0xff]  }
 0x95e   : > { %9854 = vmatprep.subr.bf16.mxu0 %v11744_v0 }
 0x960   : > { %9377 = vmatpush3.bf16.msra.mxu1 %v10568_v20  ;;  %v10600_v20 = vld [vmem:[#allocation16 + $0x50] ss:$8 sps:$4 sm:$0xff]  }
 0x961   : > { %9855 = vmatpush3.bf16.msra.mxu0 %v10569_v21  ;;  %9378 = vmatprep.subr.bf16.mxu1 %v10570_v22  ;;  %v10605_v21 = vld [vmem:[#allocation16 + $0x64] ss:$8 sps:$4 sm:$0xff]   ;;  %v10603_v22 = vld [vmem:[#allocation16 + $0x60] ss:$8 sps:$4 sm:$0xff]  }
 0x962   : > { %9856 = vmatprep.subr.bf16.mxu0 %v11744_v0 }
 0x964   : > { %9379 = vmatpush3.bf16.msra.mxu1 %v10571_v23  ;;  %v10608_v23 = vld [vmem:[#allocation16 + $0x74] ss:$8 sps:$4 sm:$0xff]  }
 0x965   : > { %9857 = vmatpush3.bf16.msra.mxu0 %v10572_v24  ;;  %9380 = vmatprep.subr.bf16.mxu1 %v10573_v25  ;;  %v10606_v24 = vld [vmem:[#allocation16 + $0x70] ss:$8 sps:$4 sm:$0xff]   ;;  %v10611_v25 = vld [vmem:[#allocation16 + $0x84] ss:$8 sps:$4 sm:$0xff]  }
 0x966   : > { %9858 = vmatprep.subr.bf16.mxu0 %v11744_v0 }
 0x968   : > { %9381 = vmatpush3.bf16.msra.mxu1 %v10574_v27  ;;  %v10609_v27 = vld [vmem:[#allocation16 + $0x80] ss:$8 sps:$4 sm:$0xff]  }
 0x969   : > { %9859 = vmatpush3.bf16.msra.mxu0 %v10575_v28  ;;  %9382 = vmatprep.subr.bf16.mxu1 %v10576_v29  ;;  %v10614_v28 = vld [vmem:[#allocation16 + $0x94] ss:$8 sps:$4 sm:$0xff]   ;;  %v10612_v29 = vld [vmem:[#allocation16 + $0x90] ss:$8 sps:$4 sm:$0xff]  }
 0x96a   : > { %9860 = vmatprep.subr.bf16.mxu0 %v11744_v0 }
 0x96c   : > { %9383 = vmatpush3.bf16.msra.mxu1 %v10577_v31  ;;  %v10617_v31 = vld [vmem:[#allocation16 + $0xa4] ss:$8 sps:$4 sm:$0xff]  }
 0x96d   : > { %9861 = vmatpush3.bf16.msra.mxu0 %v10578_v32  ;;  %9384 = vmatprep.subr.bf16.mxu1 %v10579_v33  ;;  %v10615_v32 = vld [vmem:[#allocation16 + $0xa0] ss:$8 sps:$4 sm:$0xff]   ;;  %v10620_v33 = vld [vmem:[#allocation16 + $0xb4] ss:$8 sps:$4 sm:$0xff]  }
 0x96e   : > { %9862 = vmatprep.subr.bf16.mxu0 %v11744_v0 }
 0x970   : > { %9385 = vmatpush3.bf16.msra.mxu1 %v10580_v35  ;;  %v10618_v35 = vld [vmem:[#allocation16 + $0xb0] ss:$8 sps:$4 sm:$0xff]  }
 0x971   : > { %9863 = vmatpush3.bf16.msra.mxu0 %v10581_v36  ;;  %9386 = vmatprep.subr.bf16.mxu1 %v10582_v37  ;;  %v10623_v36 = vld [vmem:[#allocation16 + $0xc4] ss:$8 sps:$4 sm:$0xff]   ;;  %v10621_v37 = vld [vmem:[#allocation16 + $0xc0] ss:$8 sps:$4 sm:$0xff]  }
 0x972   : > { %9864 = vmatprep.subr.bf16.mxu0 %v11744_v0 }
 0x974   : > { %9387 = vmatpush3.bf16.msra.mxu1 %v10583_v38  ;;  %v10626_v38 = vld [vmem:[#allocation16 + $0xd4] ss:$8 sps:$4 sm:$0xff]  }
 0x975   : > { %9865 = vmatpush3.bf16.msra.mxu0 %v10584_v39  ;;  %3890 = vmatprep.subr.bf16.mxu1 %v10587_v40  ;;  %v10624_v39 = vld [vmem:[#allocation16 + $0xd0] ss:$8 sps:$4 sm:$0xff]   ;;  %v10629_v40 = vld [vmem:[#allocation16 + $0xe4] ss:$8 sps:$4 sm:$0xff]  }
 0xa2a   : > { %v9357_v53 = vpop.f32.mrb[24].mxu1  ;;  %v3251_v54 = vpop.f32.mrb[16].mxu0 }
 0xa2b   : > { %v9358_v57 = vpop.f32.mrb[25].mxu1  ;;  %v9848_v48 = vpop.f32.mrb[17].mxu0 }
 0xa2c   : > { %v9359_v58 = vadd.f32 %v9358_v57, %v9357_v53  ;;  %v9360_v50 = vpop.f32.mrb[26].mxu1  ;;  %v3254_v60 = vpop.f32.mrb[18].mxu0  ;;  %v3287_v57 = vld [vmem:[#allocation22 + $0x2] sm:$0x1] }
 0xa2d   : > { %v9361_v42 = vpop.f32.mrb[27].mxu1  ;;  %v9849_v44 = vpop.f32.mrb[19].mxu0 }
 0xa2e   : > { %v3212_v61 = vadd.f32 %v9359_v58, %v8647_v56 }
 0xa30   : > { %v12395_v62 = vadd.f32 %v3251_v54, %v3212_v61 }
 0xa32   : > { %v3257_v63 = vrot.slane %v12395_v62, 4 }
 0xa34   : > { %v3258_v1 = vadd.f32 %v3257_v63, %v12395_v62 }
 0xa36   : > { %v3259_v2 = vrot.slane %v3258_v1, 2 }
 0xa38   : > { %v3260_v3 = vadd.f32 %v3259_v2, %v3258_v1 }
 0xa3a   : > { %v3261_v4 = vrot.slane %v3260_v3, 1 }
 0xa3c   : > { %v3262_v6 = vadd.f32 %v3261_v4, %v3260_v3 }
 0xa3e   : > { %v3264_v7 = vmul.f32 %v3263_v5, %v3262_v6 }
 0xa40   : > { %v3266_v8 = vsel %vm2724_vm11, %v3264_v7, 0.0 }
 0xa41   : > { %3267 = vadd.xlane.f32.xlu1 %v3266_v8 }
 0xace   : > { %v3268_v10 = vpop.xlane.xlu1 %3267 }
 0xacf   : > { %v3270_v11 = vadd.f32 %v3269_v9, %v3268_v10  ;;  %v10585_v9 = vld [vmem:[#allocation16] ss:$8 sps:$4 sm:$0xff]   ;;  %v10590_v10 = vld [vmem:[#allocation16 + $0x14] ss:$8 sps:$4 sm:$0xff]  }
 0xad1   : > { %v3271_v12 = vmax.f32 %v3270_v11, 0.0 }
 0xad3   : > { %3276 = vperm.xlu1 %10368, %v3271_v12  }
 0xb52   : > { %v3277_v45 = vpop.permute.xlu1 %3276 }
 0xb53   : > { %v3279_v46 = vmul.f32 %v3277_v45, %v3273_v43  ;;  %v10627_v43 = vld [vmem:[#allocation16 + $0xe0] ss:$8 sps:$4 sm:$0xff]   ;;  %v10630_v45 = vld [vmem:[#allocation16 + $0xf0] ss:$8 sps:$4 sm:$0xff]  }
 0xb55   : > { %v3280_v47 = vsel %vm2724_vm11, %v3279_v46, 0.0  ;;  %v10632_v46 = vld [vmem:[#allocation16 + $0xf4] ss:$8 sps:$4 sm:$0xff]  }
 0xb56   : > { %v3281_v51 = vrot.slane %v3280_v47, 4 }
 0xb58   : > { %v3282_v52 = vadd.f32 %v3281_v51, %v3280_v47  ;;  %v10635_v47 = vld [vmem:[#allocation16 + $0x104] ss:$8 sps:$4 sm:$0xff]  }
 0xb5a   : > { %v3283_v53 = vrot.slane %v3282_v52, 2 }
 0xb5c   : > { %v3284_v54 = vadd.f32 %v3283_v53, %v3282_v52 }
 0xb5e   : > { %v3285_v56 = vrot.slane %v3284_v54, 1 }
 0xb60   : > { %v3286_v48 = vadd.f32 %v3285_v56, %v3284_v54 }
 0xb62   : > { %v3288_v58 = vadd.f32 %v3287_v57, %v3286_v48 }
 0xb64   : > { %v8672_v50 = vmul.f32 -1.442695, %v3288_v58 }
 0xb66   : > { %11055 = vpow2.f32 %v8672_v50 }
 0xb70   : > { %v11056_v60 = vpop.eup %11055 }
 0xb71   : > { %v3292_v42 = vadd.f32 1.0, %v11056_v60 }
 0xb73   : > { %11057 = vrcp.f32 %v3292_v42 }
 0xb7d   : > { %v11058_v44 = vpop.eup %11057 }
 0xb7e   : > { %v3298_v61 = vrot.slane %v11058_v44, %v12321_v41 }
 0xb80   : > { %v3299_v63 = vmul.f32 %v3298_v61, %v12395_v62  ;;  %v10588_v62 = vld [vmem:[#allocation16 + $0x10] ss:$8 sps:$4 sm:$0xff]  }
 0xb82   : > { %v3300_v1 = vadd.f32 %v3299_v63, %v12359_v34 }
 0xb84   : > { %v3350_v2 = vpack.c.bf16 %v3300_v1, %v3300_v1 }
 0xb86   : > { %v3352_v3 = vshrl.u32 %v3350_v2, 16  ;;  %3540 = vmatprep.mubr.bf16.mxu1 %v3350_v2  ;;  %v3355_v4 = vshll.u32 %v3350_v2, 16  ;;  %v10633_v2 = vld [vmem:[#allocation16 + $0x100] ss:$8 sps:$4 sm:$0xff]  }
 0xb88   : > { %v3354_v5 = vrot.slane %v3352_v3, 7  ;;  %v3360_v6 = vrot.slane %v3355_v4, 1 }
 0xb8a   : > { %v3357_v7 = vor.u32 %v3355_v4, %v3354_v5  ;;  %v3361_v8 = vor.u32 %v3360_v6, %v3352_v3  ;;  %v10638_v4 = vld [vmem:[#allocation16 + $0x114] ss:$8 sps:$4 sm:$0xff]   ;;  %v10636_v6 = vld [vmem:[#allocation16 + $0x110] ss:$8 sps:$4 sm:$0xff]  }
 0xb8c   : > { %v3359_v11 = vsel %vm12271_vm5, 0, %v3357_v7  ;;  %v3363_v12 = vsel %vm12375_vm13, %v3361_v8, 0  ;;  %v10639_v7 = vld [vmem:[#allocation16 + $0x120] ss:$8 sps:$4 sm:$0xff]   ;;  %v10644_v8 = vld [vmem:[#allocation16 + $0x134] ss:$8 sps:$4 sm:$0xff]  }
 0xb8d   : > { %3541 = vmatmul.mubr.bf16.vlgmr.msra.gmra.mrb[28].mxu1 %v3359_v11  ;;  %9867 = vmatmul.mubr.bf16.vlgmr.msra.gmra.mrb[20].mxu0 %v3363_v12  ;;  %v10645_v11 = vld [vmem:[#allocation16 + $0x140] ss:$8 sps:$4 sm:$0xff]   ;;  %v10650_v12 = vld [vmem:[#allocation16 + $0x154] ss:$8 sps:$4 sm:$0xff]  }
 0xb8e   : > { %3891 = vmatpush1.bf16.msra.mxu1 %v10585_v9  ;;  %v10642_v9 = vld [vmem:[#allocation16 + $0x130] ss:$8 sps:$4 sm:$0xff]  }
 0xb8f   : > { %3892 = vmatprep.subr.bf16.mxu1 %v10590_v10  ;;  %v10647_v10 = vld [vmem:[#allocation16 + $0x144] ss:$8 sps:$4 sm:$0xff]  }
 0xb92   : > { %3893 = vmatpush1.bf16.msra.mxu1 %v10588_v62  ;;  %v10648_v62 = vld [vmem:[#allocation16 + $0x150] ss:$8 sps:$4 sm:$0xff]  }
 0xb93   : > { %3894 = vmatprep.subr.bf16.mxu1 %v10593_v13  ;;  %v10653_v13 = vld [vmem:[#allocation16 + $0x164] ss:$8 sps:$4 sm:$0xff]  }
 0xb96   : > { %3895 = vmatpush1.bf16.msra.mxu1 %v10591_v14  ;;  %v10651_v14 = vld [vmem:[#allocation16 + $0x160] ss:$8 sps:$4 sm:$0xff]  }
 0xb97   : > { %3896 = vmatprep.subr.bf16.mxu1 %v10596_v15  ;;  %v10656_v15 = vld [vmem:[#allocation16 + $0x174] ss:$8 sps:$4 sm:$0xff]  }
 0xb9a   : > { %3897 = vmatpush1.bf16.msra.mxu1 %v10594_v16 }
 0xb9b   : > { %3898 = vmatprep.subr.bf16.mxu1 %v10599_v17  ;;  %v10654_v17 = vld [vmem:[#allocation16 + $0x170] ss:$8 sps:$4 sm:$0xff]  }
 0xb9e   : > { %3899 = vmatpush1.bf16.msra.mxu1 %v10597_v18 }
 0xb9f   : > { %3900 = vmatprep.subr.bf16.mxu1 %v10602_v19 }
 0xba2   : > { %3901 = vmatpush1.bf16.msra.mxu1 %v10600_v20  ;;  %v10657_v20 = vld [vmem:[#allocation30 + $0x40] sm:$0xff]  }
 0xba3   : > { %3902 = vmatprep.subr.bf16.mxu1 %v10605_v21  ;;  %v10658_v21 = vld [vmem:[#allocation30] sm:$0xff]   ;;  %9407 = vmatprep.subr.bf16.mxu0 %v10657_v20  ;;  %v10688_v20 = vld [vmem:[#allocation30 + $0xd0] sm:$0xff]  }
 0xba4   : > { %9408 = vmatpush3.bf16.msra.mxu0 %v10658_v21  ;;  %v10690_v21 = vld [vmem:[#allocation30 + $0x118] sm:$0xff]  }
 0xba6   : > { %3903 = vmatpush1.bf16.msra.mxu1 %v10603_v22  ;;  %v10659_v22 = vld [vmem:[#allocation30 + $0x48] sm:$0xff]  }
 0xba7   : > { %3904 = vmatprep.subr.bf16.mxu1 %v10608_v23  ;;  %v10660_v23 = vld [vmem:[#allocation30 + $0x8] sm:$0xff]   ;;  %9409 = vmatprep.subr.bf16.mxu0 %v10659_v22  ;;  %v10692_v22 = vld [vmem:[#allocation30 + $0x158] sm:$0xff]  }
 0xba8   : > { %9410 = vmatpush3.bf16.msra.mxu0 %v10660_v23  ;;  %v10691_v23 = vld [vmem:[#allocation30 + $0xd8] sm:$0xff]  }
 0xbaa   : > { %3905 = vmatpush1.bf16.msra.mxu1 %v10606_v24  ;;  %v10661_v24 = vld [vmem:[#allocation30 + $0x50] sm:$0xff]  }
 0xbab   : > { %3906 = vmatprep.subr.bf16.mxu1 %v10611_v25  ;;  %v10662_v25 = vld [vmem:[#allocation30 + $0x10] sm:$0xff]   ;;  %9411 = vmatprep.subr.bf16.mxu0 %v10661_v24  ;;  %v10693_v24 = vld [vmem:[#allocation30 + $0x120] sm:$0xff]  }
 0xbac   : > { %9412 = vmatpush3.bf16.msra.mxu0 %v10662_v25  ;;  %v10694_v25 = vld [vmem:[#allocation30 + $0xe0] sm:$0xff]  }
 0xbae   : > { %3907 = vmatpush1.bf16.msra.mxu1 %v10609_v27  ;;  %v10663_v27 = vld [vmem:[#allocation30 + $0x58] sm:$0xff]  }
 0xbaf   : > { %3908 = vmatprep.subr.bf16.mxu1 %v10614_v28  ;;  %v10664_v28 = vld [vmem:[#allocation30 + $0x18] sm:$0xff]   ;;  %9413 = vmatprep.subr.bf16.mxu0 %v10663_v27  ;;  %v10695_v27 = vld [vmem:[#allocation30 + $0x160] sm:$0xff]  }
 0xbb0   : > { %9414 = vmatpush3.bf16.msra.mxu0 %v10664_v28  ;;  %v10696_v28 = vld [vmem:[#allocation30 + $0x128] sm:$0xff]  }
 0xbb2   : > { %3909 = vmatpush1.bf16.msra.mxu1 %v10612_v29  ;;  %v10665_v29 = vld [vmem:[#allocation30 + $0x60] sm:$0xff]  }
 0xbb3   : > { %3910 = vmatprep.subr.bf16.mxu1 %v10617_v31  ;;  %v10666_v31 = vld [vmem:[#allocation30 + $0x20] sm:$0xff]   ;;  %9415 = vmatprep.subr.bf16.mxu0 %v10665_v29  ;;  %v10697_v29 = vld [vmem:[#allocation30 + $0xe8] sm:$0xff]  }
 0xbb4   : > { %9416 = vmatpush3.bf16.msra.mxu0 %v10666_v31  ;;  %v10698_v31 = vld [vmem:[#allocation30 + $0x168] sm:$0xff]  }
 0xbb6   : > { %3911 = vmatpush1.bf16.msra.mxu1 %v10615_v32  ;;  %v10667_v32 = vld [vmem:[#allocation30 + $0x68] sm:$0xff]  }
 0xbb7   : > { %3912 = vmatprep.subr.bf16.mxu1 %v10620_v33  ;;  %v10668_v33 = vld [vmem:[#allocation30 + $0x28] sm:$0xff]   ;;  %9417 = vmatprep.subr.bf16.mxu0 %v10667_v32  ;;  %v10699_v32 = vld [vmem:[#allocation30 + $0x130] sm:$0xff]  }
 0xbb8   : > { %9418 = vmatpush3.bf16.msra.mxu0 %v10668_v33  ;;  %v10700_v33 = vld [vmem:[#allocation30 + $0xf0] sm:$0xff]  }
 0xbba   : > { %3913 = vmatpush1.bf16.msra.mxu1 %v10618_v35 }
 0xbbb   : > { %3914 = vmatprep.subr.bf16.mxu1 %v10623_v36 }
 0xbbe   : > { %3915 = vmatpush1.bf16.msra.mxu1 %v10621_v37 }
 0xbbf   : > { %3916 = vmatprep.subr.bf16.mxu1 %v10626_v38 }
 0xbc2   : > { %3917 = vmatpush1.bf16.msra.mxu1 %v10624_v39 }
 0xbc3   : > { %3918 = vmatprep.subr.bf16.mxu1 %v10629_v40 }
 0xbc6   : > { %3919 = vmatpush1.bf16.msra.mxu1 %v10627_v43 }
 0xbc7   : > { %3920 = vmatprep.subr.bf16.mxu1 %v10632_v46 }
 0xbca   : > { %3921 = vmatpush1.bf16.msra.mxu1 %v10630_v45  ;;  %v3976_v45 = vld [vmem:[#allocation15 + $0x2] sm:$0x3] }
 0xbcb   : > { %3931 = vmatprep.subr.bf16.mxu1 %v10635_v47  ;;  %v3974_v47 = vld [vmem:[#allocation15] sm:$0x3] }
 0xc60   : > { %v9388_v51 = vpop.f32.mrb[28].mxu1  ;;  %v3582_v52 = vpop.f32.mrb[20].mxu0 }
 0xc61   : > { %v9389_v53 = vpop.f32.mrb[29].mxu1  ;;  %v9868_v54 = vpop.f32.mrb[21].mxu0 }
 0xc62   : > { %v9390_v56 = vadd.f32 %v9389_v53, %v9388_v51  ;;  %v9391_v57 = vpop.f32.mrb[30].mxu1  ;;  %v3585_v48 = vpop.f32.mrb[22].mxu0  ;;  %v10669_v51 = vld [vmem:[#allocation30 + $0x70] sm:$0xff]   ;;  %v10671_v53 = vld [vmem:[#allocation30 + $0x78] sm:$0xff]  }
 0xc63   : > { %v9392_v58 = vpop.f32.mrb[31].mxu1  ;;  %v9869_v50 = vpop.f32.mrb[23].mxu0  ;;  %9419 = vmatprep.subr.bf16.mxu0 %v10669_v51  ;;  %v10672_v54 = vld [vmem:[#allocation30 + $0x38] sm:$0xff]  }
 0xc64   : > { %v3543_v60 = vadd.f32 %v9390_v56, %v12359_v34  ;;  %v10641_v34 = vld [vmem:[#allocation16 + $0x124] ss:$8 sps:$4 sm:$0xff]  }
 0xc66   : > { %v3583_v42 = vadd.f32 %v3582_v52, %v3543_v60  ;;  %v10670_v52 = vld [vmem:[#allocation30 + $0x30] sm:$0xff]  }
 0xc67   : > { %9420 = vmatpush3.bf16.msra.mxu0 %v10670_v52 }
 0xc68   : > { %v12417_v44 = vpack.c.bf16 %v3583_v42, %v3583_v42  ;;  %9421 = vmatprep.subr.bf16.mxu0 %v10671_v53  ;;  %v8772_v53 = vld [vmem:[#allocation27 + $0x3] ss:$0 sm:$0xff] }
 0xc6a   : > { %3922 = vmatprep.mubr.bf16.mxu1 %v12417_v44  ;;  %v3638_v61 = vshrl.u32 %v12417_v44, 16  ;;  %v3641_v1 = vshll.u32 %v12417_v44, 16 }
 0xc6b   : > { %9422 = vmatpush3.bf16.msra.mxu0 %v10672_v54 }
 0xc6c   : > { %v3640_v63 = vrot.slane %v3638_v61, 7  ;;  %v3646_v16 = vrot.slane %v3641_v1, 1  ;;  %9882 = vmatprep.subr.bf16.mxu0 %v11744_v0 }
 0xc6e   : > { %v3643_v3 = vor.u32 %v3641_v1, %v3640_v63  ;;  %v3647_v18 = vor.u32 %v3646_v16, %v3638_v61  ;;  %v10673_v1 = vld [vmem:[#allocation30 + $0x80] sm:$0xff]   ;;  %v10686_v16 = vld [vmem:[#allocation30 + $0x148] sm:$0xff]  }
 0xc70   : > { %v3645_v5 = vsel %vm12271_vm5, 0, %v3643_v3  ;;  %v3649_v19 = vsel %vm12375_vm13, %v3647_v18, 0  ;;  %v10674_v3 = vld [vmem:[#allocation30 + $0x88] sm:$0xff]   ;;  %v10687_v18 = vld [vmem:[#allocation30 + $0x110] sm:$0xff]  }
 0xc71   : > { %3923 = vmatmul.mubr.bf16.vlgmr.msra.gmra.mrb[32].mxu1 %v3645_v5  ;;  %v10676_v5 = vld [vmem:[#allocation30 + $0x98] sm:$0xff]  }
 0xc72   : > { %3932 = vmatpush1.bf16.msra.mxu1 %v10633_v2  ;;  %3963 = vmatprep.mubr.bf16.mxu1 %v11746_v55 }
 0xc73   : > { %3933 = vmatprep.subr.bf16.mxu1 %v10638_v4  ;;  %v10675_v4 = vld [vmem:[#allocation30 + $0x90] sm:$0xff]  }
 0xc76   : > { %3934 = vmatpush1.bf16.msra.mxu1 %v10636_v6  ;;  %v10677_v6 = vld [vmem:[#allocation30 + $0xa0] sm:$0xff]  }
 0xc77   : > { %3935 = vmatprep.subr.bf16.mxu1 %v10641_v34  ;;  %v10678_v34 = vld [vmem:[#allocation30 + $0xa8] sm:$0xff]  }
 0xc7a   : > { %3936 = vmatpush1.bf16.msra.mxu1 %v10639_v7  ;;  %v10679_v7 = vld [vmem:[#allocation30 + $0xb0] sm:$0xff]  }
 0xc7b   : > { %3937 = vmatprep.subr.bf16.mxu1 %v10644_v8 }
 0xc7e   : > { %3938 = vmatpush1.bf16.msra.mxu1 %v10642_v9  ;;  %v10680_v9 = vld [vmem:[#allocation30 + $0xb8] sm:$0xff]  }
 0xc7f   : > { %3939 = vmatprep.subr.bf16.mxu1 %v10647_v10 }
 0xc82   : > { %3940 = vmatpush1.bf16.msra.mxu1 %v10645_v11  ;;  %v5379_v11 = vld [vmem:[%s11900_s20] sm:$0xf] }
 0xc83   : > { %3941 = vmatprep.subr.bf16.mxu1 %v10650_v12 }
 0xc86   : > { %3942 = vmatpush1.bf16.msra.mxu1 %v10648_v62  ;;  %v10681_v62 = vld [vmem:[#allocation30 + $0x100] sm:$0xff]  }
 0xc87   : > { %3943 = vmatprep.subr.bf16.mxu1 %v10653_v13  ;;  %v10682_v13 = vld [vmem:[#allocation30 + $0xc0] sm:$0xff]  }
 0xc8a   : > { %3944 = vmatpush1.bf16.msra.mxu1 %v10651_v14  ;;  %v10683_v14 = vld [vmem:[#allocation30 + $0x140] sm:$0xff]  }
 0xc8b   : > { %3945 = vmatprep.subr.bf16.mxu1 %v10656_v15  ;;  %v10684_v15 = vld [vmem:[#allocation30 + $0x108] sm:$0xff]  }
 0xc8e   : > { %3946 = vmatpush1.bf16.msra.mxu1 %v10654_v17  ;;  %v10685_v17 = vld [vmem:[#allocation30 + $0xc8] sm:$0xff]  }
 0xc8f   : > { %9870 = vmatprep.subr.bf16.mxu1 %v11744_v0 }
 0xc91   : > { %3964 = vmatmul.mubr.bf16.vlgmr.msra.gmra.mrb[32].mxu1 %v3649_v19  ;;  %v10689_v19 = vld [vmem:[#allocation30 + $0x150] sm:$0xff]  }
 0xc92   : > { %9872 = vmatprep.mubr.msk.bf16.mxu1 %vm11745_vm0, %v11744_v0 }
 0xd64   : > { %v3965_v35 = vpop.f32.mrb[32].mxu1 }
 0xd65   : > { %v3967_v36 = vpop.f32.mrb[33].mxu1  ;;  %v3972_v40 = vpack.c.bf16 %v3965_v35, %v3965_v35  ;;  %v10701_v35 = vld [vmem:[#allocation30 + $0x170] sm:$0xff]  }
 0xd66   : > { %v3973_v37 = vpack.c.bf16 %v3967_v36, %v3967_v36  ;;  %v3969_v38 = vpop.f32.mrb[34].mxu1  ;;  %v10702_v36 = vld [vmem:[#allocation30 + $0x138] sm:$0xff]  }
 0xd67   : > { %v3970_v39 = vpop.f32.mrb[35].mxu1  ;;  %v4028_v46 = vsel %vm2724_vm11, %v3972_v40, 0  ;;  %v10704_v38 = vld [vmem:[#allocation30 + $0x178] sm:$0xff]  }
 0xd68   : > { %v3982_v43 = vsel %vm2724_vm11, %v3973_v37, 0  ;;  %v10703_v37 = vld [vmem:[#allocation30 + $0xf8] sm:$0xff]  }
 0xd69   : > { %9871 = vmatpush3.bf16.msra.mxu1 %v3982_v43 }
 0xd6a   : > { %9876 = vmatprep.subr.bf16.mxu1 %v11744_v0 }
 0xd6c   : > { %9873 = vmatmul.mubr.msk.bf16.vlgmr.msra.gmra.mrb[36].mxu1 %vm3977_vm15, %v3976_v45 }
 0xd6d   : > { %9877 = vmatpush3.bf16.msra.mxu1 %v4028_v46  ;;  %9878 = vmatprep.mubr.msk.bf16.mxu1 %vm11745_vm0, %v11744_v0 }
 0xd6e   : > { %9902 = vmatprep.subr.bf16.mxu1 %v11744_v0 }
 0xd78   : > { %9879 = vmatmul.mubr.msk.bf16.vlgmr.msra.gmra.mrb[36].mxu1 %vm3977_vm15, %v3974_v47  ;;  %v8747_v47 = vld [vmem:[#allocation27] ss:$0 sm:$0xff] }
 0xd79   : > { %9918 = vmatprep.mubr.msk.bf16.mxu1 %vm11745_vm0, %v11744_v0  ;;  %9903 = vmatpush3.bf16.msra.mxu1 %v10683_v14 }
 0xd7a   : > { %9904 = vmatprep.subr.bf16.mxu1 %v11744_v0 }
 0xd7d   : > { %9905 = vmatpush3.bf16.msra.mxu1 %v10686_v16 }
 0xd7e   : > { %9906 = vmatprep.subr.bf16.mxu1 %v11744_v0 }
 0xd81   : > { %9907 = vmatpush3.bf16.msra.mxu1 %v10689_v19 }
 0xd82   : > { %9908 = vmatprep.subr.bf16.mxu1 %v11744_v0 }
 0xd85   : > { %9909 = vmatpush3.bf16.msra.mxu1 %v10692_v22 }
 0xd86   : > { %9910 = vmatprep.subr.bf16.mxu1 %v11744_v0 }
 0xd89   : > { %9911 = vmatpush3.bf16.msra.mxu1 %v10695_v27 }
 0xd8a   : > { %9912 = vmatprep.subr.bf16.mxu1 %v11744_v0 }
 0xd8d   : > { %9913 = vmatpush3.bf16.msra.mxu1 %v10698_v31 }
 0xd8e   : > { %9914 = vmatprep.subr.bf16.mxu1 %v11744_v0 }
 0xd91   : > { %9915 = vmatpush3.bf16.msra.mxu1 %v10701_v35  ;;  %v10706_v35 = vld [vmem:[#allocation30 + $0x180] sm:$0xff]  }
 0xd92   : > { %9916 = vmatprep.subr.bf16.mxu1 %v11744_v0 }
 0xd95   : > { %9917 = vmatpush3.bf16.msra.mxu1 %v10704_v38  ;;  %v10709_v38 = vld [vmem:[#allocation30 + $0x188] sm:$0xff]  }
 0xd96   : > { %9922 = vmatprep.subr.bf16.mxu1 %v11744_v0 }
 0xe4b   : > { %v12441_v56 = vpop.f32.mrb[36].mxu1 }
 0xe4c   : > { %v4118_v57 = vpack.c.bf16 %v12441_v56, %v12441_v56  ;;  %v9880_v48 = vpop.f32.mrb[37].mxu1 }
 0xe4d   : > { %v4067_v58 = vpop.f32.mrb[38].mxu1 }
 0xe4e   : > { %v4120_v50 = vshrl.u32 %v4118_v57, 16  ;;  %v9881_v60 = vpop.f32.mrb[39].mxu1  ;;  %4316 = vmatprep.mubr.bf16.mxu0 %v4118_v57  ;;  %v4123_v61 = vshll.u32 %v4118_v57, 16 }
 0xe50   : > { %v4122_v42 = vrot.slane %v4120_v50, 7  ;;  %v4128_v8 = vrot.slane %v4123_v61, 1 }
 0xe52   : > { %v4125_v63 = vor.u32 %v4123_v61, %v4122_v42  ;;  %v4129_v10 = vor.u32 %v4128_v8, %v4120_v50  ;;  %v8773_v8 = vld [vmem:[#allocation27 + $0x1] ss:$0 sm:$0xff] }
 0xe54   : > { %v4127_v2 = vsel %vm12271_vm5, 0, %v4125_v63  ;;  %v4134_v12 = vsel %vm12457_vm2, %v4129_v10, 0 }
 0xe55   : > { %4317 = vmatmul.mubr.bf16.vlgmr.msra.gmra.mrb[24].mxu0 %v4127_v2 }
 0xe56   : > { %9883 = vmatpush3.bf16.msra.mxu0 %v10673_v1  ;;  %9898 = vmatprep.mubr.msk.bf16.mxu0 %vm11745_vm0, %v11744_v0 }
 0xe57   : > { %9884 = vmatprep.subr.bf16.mxu0 %v11744_v0 }
 0xe5a   : > { %9885 = vmatpush3.bf16.msra.mxu0 %v10674_v3 }
 0xe5b   : > { %9886 = vmatprep.subr.bf16.mxu0 %v11744_v0 }
 0xe5e   : > { %9887 = vmatpush3.bf16.msra.mxu0 %v10675_v4 }
 0xe5f   : > { %9888 = vmatprep.subr.bf16.mxu0 %v11744_v0 }
 0xe62   : > { %9889 = vmatpush3.bf16.msra.mxu0 %v10676_v5 }
 0xe63   : > { %9890 = vmatprep.subr.bf16.mxu0 %v11744_v0 }
 0xe66   : > { %9891 = vmatpush3.bf16.msra.mxu0 %v10677_v6 }
 0xe67   : > { %9892 = vmatprep.subr.bf16.mxu0 %v11744_v0 }
 0xe6a   : > { %9893 = vmatpush3.bf16.msra.mxu0 %v10678_v34 }
 0xe6b   : > { %9894 = vmatprep.subr.bf16.mxu0 %v11744_v0 }
 0xe6e   : > { %9895 = vmatpush3.bf16.msra.mxu0 %v10679_v7 }
 0xe6f   : > { %9896 = vmatprep.subr.bf16.mxu0 %v11744_v0 }
 0xe72   : > { %9897 = vmatpush3.bf16.msra.mxu0 %v10680_v9 }
 0xe73   : > { %9438 = vmatprep.subr.bf16.mxu0 %v10681_v62 }
 0xe75   : > { %9899 = vmatmul.mubr.bf16.vlgmr.msra.gmra.mrb[28].mxu0 %v4134_v12 }
 0xe76   : > { %9439 = vmatpush3.bf16.msra.mxu0 %v10682_v13 }
 0xe77   : > { %9440 = vmatprep.subr.bf16.mxu0 %v10684_v15 }
 0xe7a   : > { %9441 = vmatpush3.bf16.msra.mxu0 %v10685_v17 }
 0xe7b   : > { %9442 = vmatprep.subr.bf16.mxu0 %v10687_v18 }
 0xe7e   : > { %9443 = vmatpush3.bf16.msra.mxu0 %v10688_v20 }
 0xe7f   : > { %9444 = vmatprep.subr.bf16.mxu0 %v10690_v21 }
 0xe82   : > { %9445 = vmatpush3.bf16.msra.mxu0 %v10691_v23 }
 0xe83   : > { %9446 = vmatprep.subr.bf16.mxu0 %v10693_v24  ;;  %v4671_v24 = vld [vmem:[#allocation28] sm:$0xff] }
 0xe86   : > { %9447 = vmatpush3.bf16.msra.mxu0 %v10694_v25 }
 0xe87   : > { %9448 = vmatprep.subr.bf16.mxu0 %v10696_v28  ;;  %v4675_v28 = vld [vmem:[%s12889_s15] sm:$0xff] }
 0xe8a   : > { %9449 = vmatpush3.bf16.msra.mxu0 %v10697_v29 }
 0xe8b   : > { %9450 = vmatprep.subr.bf16.mxu0 %v10699_v32 }
 0xe8e   : > { %9451 = vmatpush3.bf16.msra.mxu0 %v10700_v33  ;;  %v10705_v33 = vld [vmem:[#allocation30 + $0x1c0] sm:$0xff]  }
 0xe8f   : > { %9452 = vmatprep.subr.bf16.mxu0 %v10702_v36  ;;  %v10707_v36 = vld [vmem:[#allocation30 + $0x200] sm:$0xff]  }
 0xe92   : > { %9453 = vmatpush3.bf16.msra.mxu0 %v10703_v37  ;;  %v10708_v37 = vld [vmem:[#allocation30 + $0x1c8] sm:$0xff]  }
 0xe93   : > { %9469 = vmatprep.subr.bf16.mxu0 %v10705_v33 }
 0xf28   : > { %v9423_v39 = vpop.f32.mrb[24].mxu0 }
 0xf29   : > { %v9424_v40 = vpop.f32.mrb[25].mxu0 }
 0xf2a   : > { %v9425_v43 = vadd.f32 %v9424_v40, %v9423_v39  ;;  %v9426_v45 = vpop.f32.mrb[26].mxu0  ;;  %v10710_v39 = vld [vmem:[#allocation30 + $0x208] sm:$0xff]   ;;  %v10711_v40 = vld [vmem:[#allocation30 + $0x1d0] sm:$0xff]  }
 0xf2b   : > { %v9427_v46 = vpop.f32.mrb[27].mxu0  ;;  %v10713_v45 = vld [vmem:[#allocation30 + $0x210] sm:$0xff]  }
 0xf2c   : > { %v4319_v51 = vadd.f32 %v9425_v43, %v8747_v47  ;;  %v10712_v43 = vld [vmem:[#allocation30 + $0x190] sm:$0xff]   ;;  %v10714_v46 = vld [vmem:[#allocation30 + $0x1d8] sm:$0xff]  }
 0xf2d   : > { %v10715_v47 = vld [vmem:[#allocation30 + $0x198] sm:$0xff]  }
 0xf48   : > { %v4358_v52 = vpop.f32.mrb[28].mxu0 }
 0xf49   : > { %v4359_v54 = vadd.f32 %v4358_v52, %v4319_v51  ;;  %v9900_v57 = vpop.f32.mrb[29].mxu0  ;;  %v10716_v51 = vld [vmem:[#allocation30 + $0x218] sm:$0xff]   ;;  %v10717_v52 = vld [vmem:[#allocation30 + $0x1e0] sm:$0xff]  }
 0xf4a   : > { %v4361_v48 = vpop.f32.mrb[30].mxu0  ;;  %v10720_v57 = vld [vmem:[#allocation30 + $0x1e8] sm:$0xff]  }
 0xf4b   : > { %vm4364_vm3 = vcmp.ge.f32.partialorder %v4359_v54, 0.0  ;;  %v4370_v58 = vmul.f32 %v8772_v53, %v4359_v54  ;;  %v9901_v50 = vpop.f32.mrb[31].mxu0  ;;  %v10718_v53 = vld [vmem:[#allocation30 + $0x1a0] sm:$0xff]   ;;  %v10721_v48 = vld [vmem:[#allocation30 + $0x1a8] sm:$0xff]  }
 0xf4c   : > { %v10723_v50 = vld [vmem:[#allocation30 + $0x1f0] sm:$0xff]  }
 0xf4d   : > { %v4371_v60 = vsel %vm4364_vm3, %v4359_v54, %v4370_v58  ;;  %v10719_v54 = vld [vmem:[#allocation30 + $0x220] sm:$0xff]   ;;  %v10722_v58 = vld [vmem:[#allocation30 + $0x228] sm:$0xff]  }
 0xf4e   : > { %v4421_v42 = vpack.c.bf16 %v4371_v60, %v4371_v60  ;;  %v10724_v60 = vld [vmem:[#allocation30 + $0x1b0] sm:$0xff]  }
 0xf50   : > { %v4423_v61 = vshrl.u32 %v4421_v42, 16  ;;  %4616 = vmatprep.mubr.bf16.mxu0 %v4421_v42  ;;  %v4426_v63 = vshll.u32 %v4421_v42, 16  ;;  %v10725_v42 = vld [vmem:[#allocation30 + $0x230] sm:$0xff]  }
 0xf52   : > { %v4425_v1 = vrot.slane %v4423_v61, 7  ;;  %v4431_v2 = vrot.slane %v4426_v63, 1 }
 0xf54   : > { %v4428_v3 = vor.u32 %v4426_v63, %v4425_v1  ;;  %v4432_v4 = vor.u32 %v4431_v2, %v4423_v61  ;;  %v10726_v61 = vld [vmem:[#allocation30 + $0x1f8] sm:$0xff]   ;;  %v10731_v2 = vld [vmem:[#allocation31 + $0x4] ss:$8 sps:$4 sm:$0xff]  }
 0xf55   : > { %v10727_v63 = vld [vmem:[#allocation30 + $0x1b8] sm:$0xff]  }
 0xf56   : > { %v4430_v5 = vsel %vm12271_vm5, 0, %v4428_v3  ;;  %v4434_v6 = vsel %vm12457_vm2, %v4432_v4, 0  ;;  %v10728_v1 = vld [vmem:[#allocation30 + $0x238] sm:$0xff]  }
 0xf57   : > { %4617 = vmatmul.mubr.bf16.vlgmr.msra.gmra.mrb[32].mxu0 %v4430_v5  ;;  %9919 = vmatmul.mubr.bf16.vlgmr.msra.gmra.mrb[40].mxu1 %v4434_v6  ;;  %v4679_v3 = vld [vmem:[#allocation28 + $0x8] sm:$0xff] }
 0xf58   : > { %9938 = vmatprep.mubr.msk.bf16.mxu1 %vm11745_vm0, %v11744_v0  ;;  %9470 = vmatpush3.bf16.msra.mxu0 %v10706_v35  ;;  %v10737_v35 = vld [vmem:[#allocation31 + $0x24] ss:$8 sps:$4 sm:$0xff]  }
 0xf59   : > { %9923 = vmatpush3.bf16.msra.mxu1 %v10707_v36  ;;  %9471 = vmatprep.subr.bf16.mxu0 %v10708_v37  ;;  %v10735_v36 = vld [vmem:[#allocation31 + $0x20] ss:$8 sps:$4 sm:$0xff]   ;;  %v10740_v37 = vld [vmem:[#allocation31 + $0x34] ss:$8 sps:$4 sm:$0xff]  }
 0xf5a   : > { %9924 = vmatprep.subr.bf16.mxu1 %v11744_v0 }
 0xf5c   : > { %9472 = vmatpush3.bf16.msra.mxu0 %v10709_v38  ;;  %v10738_v38 = vld [vmem:[#allocation31 + $0x30] ss:$8 sps:$4 sm:$0xff]  }
 0xf5d   : > { %9925 = vmatpush3.bf16.msra.mxu1 %v10710_v39  ;;  %9473 = vmatprep.subr.bf16.mxu0 %v10711_v40  ;;  %v10743_v39 = vld [vmem:[#allocation31 + $0x44] ss:$8 sps:$4 sm:$0xff]   ;;  %v10741_v40 = vld [vmem:[#allocation31 + $0x40] ss:$8 sps:$4 sm:$0xff]  }
 0xf5e   : > { %9926 = vmatprep.subr.bf16.mxu1 %v11744_v0 }
 0xf60   : > { %9474 = vmatpush3.bf16.msra.mxu0 %v10712_v43  ;;  %v10746_v43 = vld [vmem:[#allocation31 + $0x54] ss:$8 sps:$4 sm:$0xff]  }
 0xf61   : > { %9927 = vmatpush3.bf16.msra.mxu1 %v10713_v45  ;;  %9475 = vmatprep.subr.bf16.mxu0 %v10714_v46  ;;  %v10744_v45 = vld [vmem:[#allocation31 + $0x50] ss:$8 sps:$4 sm:$0xff]   ;;  %v10749_v46 = vld [vmem:[#allocation31 + $0x64] ss:$8 sps:$4 sm:$0xff]  }
 0xf62   : > { %9928 = vmatprep.subr.bf16.mxu1 %v11744_v0 }
 0xf64   : > { %9476 = vmatpush3.bf16.msra.mxu0 %v10715_v47  ;;  %v10747_v47 = vld [vmem:[#allocation31 + $0x60] ss:$8 sps:$4 sm:$0xff]  }
 0xf65   : > { %9929 = vmatpush3.bf16.msra.mxu1 %v10716_v51  ;;  %9477 = vmatprep.subr.bf16.mxu0 %v10717_v52  ;;  %v10752_v51 = vld [vmem:[#allocation31 + $0x74] ss:$8 sps:$4 sm:$0xff]   ;;  %v10750_v52 = vld [vmem:[#allocation31 + $0x70] ss:$8 sps:$4 sm:$0xff]  }
 0xf66   : > { %9930 = vmatprep.subr.bf16.mxu1 %v11744_v0 }
 0xf68   : > { %9478 = vmatpush3.bf16.msra.mxu0 %v10718_v53  ;;  %v10755_v53 = vld [vmem:[#allocation31 + $0x84] ss:$8 sps:$4 sm:$0xff]  }
 0xf69   : > { %9931 = vmatpush3.bf16.msra.mxu1 %v10719_v54  ;;  %9479 = vmatprep.subr.bf16.mxu0 %v10720_v57  ;;  %v10753_v54 = vld [vmem:[#allocation31 + $0x80] ss:$8 sps:$4 sm:$0xff]   ;;  %v10758_v57 = vld [vmem:[#allocation31 + $0x94] ss:$8 sps:$4 sm:$0xff]  }
 0xf6a   : > { %9932 = vmatprep.subr.bf16.mxu1 %v11744_v0 }
 0xf6c   : > { %9480 = vmatpush3.bf16.msra.mxu0 %v10721_v48  ;;  %v10756_v48 = vld [vmem:[#allocation31 + $0x90] ss:$8 sps:$4 sm:$0xff]  }
 0xf6d   : > { %9933 = vmatpush3.bf16.msra.mxu1 %v10722_v58  ;;  %9481 = vmatprep.subr.bf16.mxu0 %v10723_v50  ;;  %v10761_v58 = vld [vmem:[#allocation31 + $0xa4] ss:$8 sps:$4 sm:$0xff]   ;;  %v10759_v50 = vld [vmem:[#allocation31 + $0xa0] ss:$8 sps:$4 sm:$0xff]  }
 0xf6e   : > { %9934 = vmatprep.subr.bf16.mxu1 %v11744_v0 }
 0xf70   : > { %9482 = vmatpush3.bf16.msra.mxu0 %v10724_v60  ;;  %v10764_v60 = vld [vmem:[#allocation31 + $0xb4] ss:$8 sps:$4 sm:$0xff]  }
 0xf71   : > { %9935 = vmatpush3.bf16.msra.mxu1 %v10725_v42  ;;  %9483 = vmatprep.subr.bf16.mxu0 %v10726_v61  ;;  %v10762_v42 = vld [vmem:[#allocation31 + $0xb0] ss:$8 sps:$4 sm:$0xff]   ;;  %v10767_v61 = vld [vmem:[#allocation31 + $0xc4] ss:$8 sps:$4 sm:$0xff]  }
 0xf72   : > { %9936 = vmatprep.subr.bf16.mxu1 %v11744_v0 }
 0xf74   : > { %9484 = vmatpush3.bf16.msra.mxu0 %v10727_v63  ;;  %v10765_v63 = vld [vmem:[#allocation31 + $0xc0] ss:$8 sps:$4 sm:$0xff]  }
 0xf75   : > { %9937 = vmatpush3.bf16.msra.mxu1 %v10728_v1  ;;  %5295 = vmatprep.subr.bf16.mxu0 %v10731_v2  ;;  %v10770_v1 = vld [vmem:[#allocation31 + $0xd4] ss:$8 sps:$4 sm:$0xff]   ;;  %v10768_v2 = vld [vmem:[#allocation31 + $0xd0] ss:$8 sps:$4 sm:$0xff]  }
 0xf76   : > { %9942 = vmatprep.subr.bf16.mxu1 %v11744_v0 }
0x102a   : > { %v9454_v34 = vpop.f32.mrb[32].mxu0  ;;  %v4658_v7 = vpop.f32.mrb[40].mxu1 }
0x102b   : > { %v9455_v9 = vpop.f32.mrb[33].mxu0  ;;  %v9920_v10 = vpop.f32.mrb[41].mxu1 }
0x102c   : > { %v9456_v12 = vadd.f32 %v9455_v9, %v9454_v34  ;;  %v9457_v62 = vpop.f32.mrb[34].mxu0  ;;  %v4661_v13 = vpop.f32.mrb[42].mxu1  ;;  %v4692_v10 = vld [vmem:[#allocation27 + $0x2] sm:$0x1] }
0x102d   : > { %v9458_v14 = vpop.f32.mrb[35].mxu0  ;;  %v9921_v15 = vpop.f32.mrb[43].mxu1 }
0x102e   : > { %v4619_v16 = vadd.f32 %v9456_v12, %v8773_v8 }
0x1030   : > { %v12477_v17 = vadd.f32 %v4658_v7, %v4619_v16 }
0x1032   : > { %v4664_v18 = vsel %vm2724_vm11, %v12477_v17, 0.0 }
0x1033   : > { %v4665_v19 = vrot.slane %v4664_v18, 4 }
0x1035   : > { %v4666_v20 = vadd.f32 %v4665_v19, %v4664_v18 }
0x1037   : > { %v4667_v21 = vrot.slane %v4666_v20, 2 }
0x1039   : > { %v4668_v22 = vadd.f32 %v4667_v21, %v4666_v20 }
0x103b   : > { %v4669_v23 = vrot.slane %v4668_v22, 1 }
0x103d   : > { %v4670_v25 = vadd.f32 %v4669_v23, %v4668_v22 }
0x103f   : > { %v4672_v27 = vmul.f32 %v4671_v24, %v4670_v25 }
0x1041   : > { %4673 = vadd.xlane.f32.xlu1 %v4672_v27 }
0x10ce   : > { %v4674_v29 = vpop.xlane.xlu1 %4673 }
0x10cf   : > { %v4676_v31 = vadd.f32 %v4675_v28, %v4674_v29  ;;  %v10729_v29 = vld [vmem:[#allocation31] ss:$8 sps:$4 sm:$0xff]  }
0x10d1   : > { %v4677_v32 = vmax.f32 %v4676_v31, 0.0  ;;  %v10734_v31 = vld [vmem:[#allocation31 + $0x14] ss:$8 sps:$4 sm:$0xff]  }
0x10d3   : > { %4682 = vperm.xlu0 %10367, %v4677_v32  }
0x1152   : > { %v4683_v4 = vpop.permute.xlu0 %4682 }
0x1153   : > { %v4685_v5 = vmul.f32 %v4683_v4, %v4679_v3  ;;  %v10773_v3 = vld [vmem:[#allocation31 + $0xe4] ss:$8 sps:$4 sm:$0xff]   ;;  %v10771_v4 = vld [vmem:[#allocation31 + $0xe0] ss:$8 sps:$4 sm:$0xff]  }
0x1155   : > { %v4686_v6 = vrot.slane %v4685_v5, 4 }
0x1157   : > { %v4687_v34 = vadd.f32 %v4686_v6, %v4685_v5  ;;  %v10774_v5 = vld [vmem:[#allocation31 + $0xf0] ss:$8 sps:$4 sm:$0xff]   ;;  %v10776_v6 = vld [vmem:[#allocation31 + $0xf4] ss:$8 sps:$4 sm:$0xff]  }
0x1159   : > { %v4688_v7 = vrot.slane %v4687_v34, 2 }
0x115b   : > { %v4689_v8 = vadd.f32 %v4688_v7, %v4687_v34  ;;  %v10779_v34 = vld [vmem:[#allocation31 + $0x104] ss:$8 sps:$4 sm:$0xff]  }
0x115d   : > { %v4690_v9 = vrot.slane %v4689_v8, 1 }
0x115f   : > { %v4691_v12 = vadd.f32 %v4690_v9, %v4689_v8 }
0x1161   : > { %v4693_v62 = vadd.f32 %v4692_v10, %v4691_v12 }
0x1163   : > { %v8798_v13 = vmul.f32 -1.442695, %v4693_v62 }
0x1165   : > { %11059 = vpow2.f32 %v8798_v13 }
0x116f   : > { %v11060_v14 = vpop.eup %11059 }
0x1170   : > { %v4697_v15 = vadd.f32 1.0, %v11060_v14 }
0x1172   : > { %11061 = vrcp.f32 %v4697_v15 }
0x117c   : > { %v11062_v16 = vpop.eup %11061 }
0x117d   : > { %v4703_v18 = vrot.slane %v11062_v16, %v12321_v41 }
0x117f   : > { %v4704_v19 = vmul.f32 %v4703_v18, %v12477_v17  ;;  %v10732_v17 = vld [vmem:[#allocation31 + $0x10] ss:$8 sps:$4 sm:$0xff]  }
0x1181   : > { %v4705_v20 = vadd.f32 %v4704_v19, %v12441_v56 }
0x1183   : > { %v4755_v21 = vpack.c.bf16 %v4705_v20, %v4705_v20 }
0x1185   : > { %v4757_v22 = vshrl.u32 %v4755_v21, 16  ;;  %4945 = vmatprep.mubr.bf16.mxu0 %v4755_v21  ;;  %v4760_v23 = vshll.u32 %v4755_v21, 16 }
0x1187   : > { %v4759_v24 = vrot.slane %v4757_v22, 7  ;;  %v4765_v25 = vrot.slane %v4760_v23, 1 }
0x1189   : > { %v4762_v27 = vor.u32 %v4760_v23, %v4759_v24  ;;  %v4766_v28 = vor.u32 %v4765_v25, %v4757_v22  ;;  %v10777_v23 = vld [vmem:[#allocation31 + $0x100] ss:$8 sps:$4 sm:$0xff]   ;;  %v10782_v25 = vld [vmem:[#allocation31 + $0x114] ss:$8 sps:$4 sm:$0xff]  }
0x118b   : > { %v4764_v32 = vsel %vm12271_vm5, 0, %v4762_v27  ;;  %v4768_v33 = vsel %vm12457_vm2, %v4766_v28, 0  ;;  %v10780_v28 = vld [vmem:[#allocation31 + $0x110] ss:$8 sps:$4 sm:$0xff]  }
0x118c   : > { %4946 = vmatmul.mubr.bf16.vlgmr.msra.gmra.mrb[36].mxu0 %v4764_v32  ;;  %9939 = vmatmul.mubr.bf16.vlgmr.msra.gmra.mrb[44].mxu1 %v4768_v33  ;;  %v10786_v32 = vld [vmem:[#allocation31 + $0x130] ss:$8 sps:$4 sm:$0xff]   ;;  %v10791_v33 = vld [vmem:[#allocation31 + $0x144] ss:$8 sps:$4 sm:$0xff]  }
0x118d   : > { %5296 = vmatpush1.bf16.msra.mxu0 %v10729_v29  ;;  %9944 = vmatprep.mubr.msk.bf16.mxu1 %vm11745_vm0, %v11744_v0  ;;  %v10785_v29 = vld [vmem:[#allocation31 + $0x124] ss:$8 sps:$4 sm:$0xff]  }
0x118e   : > { %5297 = vmatprep.subr.bf16.mxu0 %v10734_v31  ;;  %v10788_v31 = vld [vmem:[#allocation31 + $0x134] ss:$8 sps:$4 sm:$0xff]  }
0x1191   : > { %5298 = vmatpush1.bf16.msra.mxu0 %v10732_v17  ;;  %v10789_v17 = vld [vmem:[#allocation31 + $0x140] ss:$8 sps:$4 sm:$0xff]  }
0x1192   : > { %5299 = vmatprep.subr.bf16.mxu0 %v10737_v35  ;;  %v10794_v35 = vld [vmem:[#allocation31 + $0x154] ss:$8 sps:$4 sm:$0xff]  }
0x1195   : > { %5300 = vmatpush1.bf16.msra.mxu0 %v10735_v36  ;;  %v10792_v36 = vld [vmem:[#allocation31 + $0x150] ss:$8 sps:$4 sm:$0xff]  }
0x1196   : > { %5301 = vmatprep.subr.bf16.mxu0 %v10740_v37  ;;  %v10797_v37 = vld [vmem:[#allocation31 + $0x164] ss:$8 sps:$4 sm:$0xff]  }
0x1199   : > { %5302 = vmatpush1.bf16.msra.mxu0 %v10738_v38  ;;  %v10795_v38 = vld [vmem:[#allocation31 + $0x160] ss:$8 sps:$4 sm:$0xff]  }
0x119a   : > { %5303 = vmatprep.subr.bf16.mxu0 %v10743_v39  ;;  %v10800_v39 = vld [vmem:[#allocation31 + $0x174] ss:$8 sps:$4 sm:$0xff]  }
0x119d   : > { %5304 = vmatpush1.bf16.msra.mxu0 %v10741_v40 }
0x119e   : > { %5305 = vmatprep.subr.bf16.mxu0 %v10746_v43  ;;  %v10798_v43 = vld [vmem:[#allocation31 + $0x170] ss:$8 sps:$4 sm:$0xff]  }
0x11a1   : > { %5306 = vmatpush1.bf16.msra.mxu0 %v10744_v45 }
0x11a2   : > { %5307 = vmatprep.subr.bf16.mxu0 %v10749_v46 }
0x11a5   : > { %5308 = vmatpush1.bf16.msra.mxu0 %v10747_v47 }
0x11a6   : > { %5309 = vmatprep.subr.bf16.mxu0 %v10752_v51 }
0x11a9   : > { %5310 = vmatpush1.bf16.msra.mxu0 %v10750_v52 }
0x11aa   : > { %5311 = vmatprep.subr.bf16.mxu0 %v10755_v53 }
0x11ad   : > { %5312 = vmatpush1.bf16.msra.mxu0 %v10753_v54 }
0x11ae   : > { %5313 = vmatprep.subr.bf16.mxu0 %v10758_v57 }
0x11b1   : > { %5314 = vmatpush1.bf16.msra.mxu0 %v10756_v48 }
0x11b2   : > { %5315 = vmatprep.subr.bf16.mxu0 %v10761_v58  ;;  %v8871_v58 = vld [vmem:[%s11900_s20 + $0x4] sm:$0xf] }
0x11b5   : > { %5316 = vmatpush1.bf16.msra.mxu0 %v10759_v50  ;;  %v10801_v50 = vld [vmem:[#allocation10 + $0x40] sm:$0xff]  }
0x11b6   : > { %5317 = vmatprep.subr.bf16.mxu0 %v10764_v60 }
0x11b9   : > { %5318 = vmatpush1.bf16.msra.mxu0 %v10762_v42  ;;  %v10802_v42 = vld [vmem:[#allocation10] sm:$0xff]  }
0x11ba   : > { %5319 = vmatprep.subr.bf16.mxu0 %v10767_v61  ;;  %v10803_v61 = vld [vmem:[#allocation10 + $0x48] sm:$0xff]  }
0x11bd   : > { %5320 = vmatpush1.bf16.msra.mxu0 %v10765_v63  ;;  %v10804_v63 = vld [vmem:[#allocation10 + $0x8] sm:$0xff]  }
0x11be   : > { %5321 = vmatprep.subr.bf16.mxu0 %v10770_v1  ;;  %v10805_v1 = vld [vmem:[#allocation10 + $0x50] sm:$0xff]  }
0x11c1   : > { %5322 = vmatpush1.bf16.msra.mxu0 %v10768_v2  ;;  %v10806_v2 = vld [vmem:[#allocation10 + $0x10] sm:$0xff]  }
0x11c2   : > { %5323 = vmatprep.subr.bf16.mxu0 %v10773_v3  ;;  %v10807_v3 = vld [vmem:[#allocation10 + $0x58] sm:$0xff]  }
0x11c5   : > { %5324 = vmatpush1.bf16.msra.mxu0 %v10771_v4  ;;  %v10808_v4 = vld [vmem:[#allocation10 + $0x18] sm:$0xff]  }
0x11c6   : > { %5325 = vmatprep.subr.bf16.mxu0 %v10776_v6  ;;  %v10810_v6 = vld [vmem:[#allocation10 + $0x20] sm:$0xff]  }
0x11c9   : > { %5326 = vmatpush1.bf16.msra.mxu0 %v10774_v5  ;;  %v10809_v5 = vld [vmem:[#allocation10 + $0x60] sm:$0xff]  }
0x11ca   : > { %5336 = vmatprep.subr.bf16.mxu0 %v10779_v34  ;;  %v10811_v34 = vld [vmem:[#allocation10 + $0x68] sm:$0xff]  }
0x125f   : > { %v9485_v7 = vpop.f32.mrb[36].mxu0  ;;  %v4987_v8 = vpop.f32.mrb[44].mxu1 }
0x1260   : > { %v9486_v9 = vpop.f32.mrb[37].mxu0  ;;  %v9940_v10 = vpop.f32.mrb[45].mxu1 }
0x1261   : > { %v9487_v12 = vadd.f32 %v9486_v9, %v9485_v7  ;;  %v9488_v62 = vpop.f32.mrb[38].mxu0  ;;  %v4990_v13 = vpop.f32.mrb[46].mxu1  ;;  %v10812_v7 = vld [vmem:[#allocation10 + $0x28] sm:$0xff]   ;;  %v10815_v9 = vld [vmem:[#allocation10 + $0x78] sm:$0xff]  }
0x1262   : > { %v9489_v14 = vpop.f32.mrb[39].mxu0  ;;  %v9941_v15 = vpop.f32.mrb[47].mxu1  ;;  %v10816_v10 = vld [vmem:[#allocation10 + $0x38] sm:$0xff]   ;;  %v10818_v13 = vld [vmem:[#allocation9] sm:$0xff]  }
0x1263   : > { %v4948_v16 = vadd.f32 %v9487_v12, %v12441_v56  ;;  %v10783_v56 = vld [vmem:[#allocation31 + $0x120] ss:$8 sps:$4 sm:$0xff]   ;;  %v10817_v12 = vld [vmem:[#allocation9 + $0x40] sm:$0xff]  }
0x1265   : > { %v4988_v18 = vadd.f32 %v4987_v8, %v4948_v16  ;;  %v10814_v8 = vld [vmem:[#allocation10 + $0x30] sm:$0xff]   ;;  %v10819_v16 = vld [vmem:[#allocation9 + $0x48] sm:$0xff]  }
0x1267   : > { %v5041_v19 = vpack.c.bf16 %v4988_v18, %v4988_v18 }
0x1269   : > { %v5043_v20 = vshrl.u32 %v5041_v19, 16  ;;  %5327 = vmatprep.mubr.bf16.mxu0 %v5041_v19  ;;  %v5046_v22 = vshll.u32 %v5041_v19, 16 }
0x126b   : > { %v5045_v21 = vrot.slane %v5043_v20, 7  ;;  %v5051_v40 = vrot.slane %v5046_v22, 1 }
0x126d   : > { %v5048_v24 = vor.u32 %v5046_v22, %v5045_v21  ;;  %v5052_v45 = vor.u32 %v5051_v40, %v5043_v20  ;;  %v10820_v20 = vld [vmem:[#allocation9 + $0x8] sm:$0xff]   ;;  %v10821_v21 = vld [vmem:[#allocation9 + $0x50] sm:$0xff]  }
0x126e   : > { %v10822_v22 = vld [vmem:[#allocation9 + $0x10] sm:$0xff]  }
0x126f   : > { %v5050_v27 = vsel %vm12271_vm5, 0, %v5048_v24  ;;  %v5054_v46 = vsel %vm12457_vm2, %v5052_v45, 0  ;;  %v10824_v24 = vld [vmem:[#allocation9 + $0x18] sm:$0xff]  }
0x1270   : > { %5328 = vmatmul.mubr.bf16.vlgmr.msra.gmra.mrb[40].mxu0 %v5050_v27  ;;  %v10826_v27 = vld [vmem:[#allocation9 + $0x20] sm:$0xff]  }
0x1271   : > { %5337 = vmatpush1.bf16.msra.mxu0 %v10777_v23  ;;  %5368 = vmatprep.mubr.bf16.mxu0 %v11746_v55  ;;  %v10823_v23 = vld [vmem:[#allocation9 + $0x58] sm:$0xff]  }
0x1272   : > { %5338 = vmatprep.subr.bf16.mxu0 %v10782_v25  ;;  %v10825_v25 = vld [vmem:[#allocation9 + $0x60] sm:$0xff]  }
0x1275   : > { %5339 = vmatpush1.bf16.msra.mxu0 %v10780_v28  ;;  %v10827_v28 = vld [vmem:[#allocation9 + $0x68] sm:$0xff]  }
0x1276   : > { %5340 = vmatprep.subr.bf16.mxu0 %v10785_v29  ;;  %v10828_v29 = vld [vmem:[#allocation9 + $0x28] sm:$0xff]  }
0x1279   : > { %5341 = vmatpush1.bf16.msra.mxu0 %v10783_v56  ;;  %v10829_v56 = vld [vmem:[#allocation9 + $0x70] sm:$0xff]  }
0x127a   : > { %5342 = vmatprep.subr.bf16.mxu0 %v10788_v31  ;;  %v10830_v31 = vld [vmem:[#allocation9 + $0x30] sm:$0xff]  }
0x127d   : > { %5343 = vmatpush1.bf16.msra.mxu0 %v10786_v32  ;;  %v10831_v32 = vld [vmem:[#allocation9 + $0x78] sm:$0xff]  }
0x127e   : > { %5344 = vmatprep.subr.bf16.mxu0 %v10791_v33  ;;  %v10832_v33 = vld [vmem:[#allocation9 + $0x38] sm:$0xff]  }
0x1281   : > { %5345 = vmatpush1.bf16.msra.mxu0 %v10789_v17 }
0x1282   : > { %5346 = vmatprep.subr.bf16.mxu0 %v10794_v35 }
0x1285   : > { %5347 = vmatpush1.bf16.msra.mxu0 %v10792_v36 }
0x1286   : > { %5348 = vmatprep.subr.bf16.mxu0 %v10797_v37 }
0x1289   : > { %5349 = vmatpush1.bf16.msra.mxu0 %v10795_v38 }
0x128a   : > { %5350 = vmatprep.subr.bf16.mxu0 %v10800_v39 }
0x128d   : > { %5351 = vmatpush1.bf16.msra.mxu0 %v10798_v43 }
0x1290   : > { %5369 = vmatmul.mubr.bf16.vlgmr.msra.gmra.mrb[40].mxu0 %v5054_v46 }
0x1363   : > { %v5370_v47 = vpop.f32.mrb[40].mxu0 }
0x1364   : > { %v5372_v51 = vpop.f32.mrb[41].mxu0  ;;  %v5377_v57 = vpack.c.bf16 %v5370_v47, %v5370_v47  ;;  %v10833_v47 = vld [vmem:[#allocation9 + $0x80] sm:$0xff]  }
0x1365   : > { %v5378_v52 = vpack.c.bf16 %v5372_v51, %v5372_v51  ;;  %v5374_v53 = vpop.f32.mrb[42].mxu0 }
0x1366   : > { %v5375_v54 = vpop.f32.mrb[43].mxu0  ;;  %v5433_v60 = vsel %vm1856_vm9, %v5377_v57, 0  ;;  %v10835_v53 = vld [vmem:[#allocation9 + $0x90] sm:$0xff]   ;;  %v10837_v57 = vld [vmem:[#allocation9 + $0xa0] sm:$0xff]  }
0x1367   : > { %v5387_v48 = vsel %vm1856_vm9, %v5378_v52, 0  ;;  %v10834_v52 = vld [vmem:[#allocation9 + $0x88] sm:$0xff]   ;;  %v10836_v54 = vld [vmem:[#allocation9 + $0x98] sm:$0xff]  }
0x1368   : > { %9943 = vmatpush3.bf16.msra.mxu1 %v5387_v48  ;;  %v10838_v48 = vld [vmem:[#allocation9 + $0xa8] sm:$0xff]  }
0x1369   : > { %9948 = vmatprep.subr.bf16.mxu1 %v11744_v0 }
0x136b   : > { %9945 = vmatmul.mubr.msk.bf16.vlgmr.msra.gmra.mrb[48].mxu1 %vm5382_vm4, %v8871_v58  ;;  %v10839_v58 = vld [vmem:[#allocation9 + $0xb0] sm:$0xff]  }
0x136c   : > { %9949 = vmatpush3.bf16.msra.mxu1 %v5433_v60  ;;  %9950 = vmatprep.mubr.msk.bf16.mxu1 %vm11745_vm0, %v11744_v0  ;;  %v10840_v60 = vld [vmem:[#allocation9 + $0xb8] sm:$0xff]  }
0x136d   : > { %9504 = vmatprep.subr.bf16.mxu1 %v10801_v50 }
0x1377   : > { %9951 = vmatmul.mubr.msk.bf16.vlgmr.msra.gmra.mrb[48].mxu1 %vm5382_vm4, %v5379_v11 }
0x1378   : > { %5636 = vmatprep.mubr.bf16.mxu1 %v12417_v44  ;;  %9505 = vmatpush3.bf16.msra.mxu1 %v10802_v42  ;;  %v10813_v44 = vld [vmem:[#allocation10 + $0x70] sm:$0xff]  }
0x1379   : > { %9506 = vmatprep.subr.bf16.mxu1 %v10803_v61  ;;  %v10841_v61 = vld [vmem:[#allocation9 + $0x100] sm:$0xff]  }
0x137a   : > { %9557 = vmatprep.subr.bf16.mxu0 %v10841_v61 }
0x137c   : > { %9507 = vmatpush3.bf16.msra.mxu1 %v10804_v63  ;;  %v10842_v63 = vld [vmem:[#allocation9 + $0xc0] sm:$0xff]  }
0x137d   : > { %9508 = vmatprep.subr.bf16.mxu1 %v10805_v1  ;;  %v10843_v1 = vld [vmem:[#allocation9 + $0x140] sm:$0xff]   ;;  %9558 = vmatpush3.bf16.msra.mxu0 %v10842_v63 }
0x1380   : > { %9509 = vmatpush3.bf16.msra.mxu1 %v10806_v2  ;;  %v10844_v2 = vld [vmem:[#allocation9 + $0x108] sm:$0xff]  }
0x1381   : > { %9510 = vmatprep.subr.bf16.mxu1 %v10807_v3  ;;  %v10846_v3 = vld [vmem:[#allocation9 + $0x148] sm:$0xff]   ;;  %9559 = vmatprep.subr.bf16.mxu0 %v10844_v2 }
0x1384   : > { %9511 = vmatpush3.bf16.msra.mxu1 %v10808_v4  ;;  %v10845_v4 = vld [vmem:[#allocation9 + $0xc8] sm:$0xff]  }
0x1385   : > { %9512 = vmatprep.subr.bf16.mxu1 %v10809_v5  ;;  %v10847_v5 = vld [vmem:[#allocation9 + $0x110] sm:$0xff]   ;;  %9560 = vmatpush3.bf16.msra.mxu0 %v10845_v4 }
0x1386   : > { %9561 = vmatprep.subr.bf16.mxu0 %v10847_v5 }
0x1388   : > { %9513 = vmatpush3.bf16.msra.mxu1 %v10810_v6  ;;  %v10849_v6 = vld [vmem:[#allocation9 + $0x150] sm:$0xff]  }
0x1389   : > { %9514 = vmatprep.subr.bf16.mxu1 %v10811_v34  ;;  %v10848_v34 = vld [vmem:[#allocation9 + $0xd0] sm:$0xff]  }
0x138a   : > { %9562 = vmatpush3.bf16.msra.mxu0 %v10848_v34 }
0x138c   : > { %9515 = vmatpush3.bf16.msra.mxu1 %v10812_v7  ;;  %v10850_v7 = vld [vmem:[#allocation9 + $0x118] sm:$0xff]  }
0x138d   : > { %9516 = vmatprep.subr.bf16.mxu1 %v10813_v44  ;;  %v10852_v44 = vld [vmem:[#allocation9 + $0x158] sm:$0xff]   ;;  %9563 = vmatprep.subr.bf16.mxu0 %v10850_v7  ;;  %v6241_v7 = vld [vmem:[%s12890_s11] sm:$0xf] }
0x1390   : > { %9517 = vmatpush3.bf16.msra.mxu1 %v10814_v8  ;;  %v10851_v8 = vld [vmem:[#allocation9 + $0xd8] sm:$0xff]  }
0x1391   : > { %9518 = vmatprep.subr.bf16.mxu1 %v10815_v9  ;;  %v10853_v9 = vld [vmem:[#allocation9 + $0x120] sm:$0xff]   ;;  %9564 = vmatpush3.bf16.msra.mxu0 %v10851_v8 }
0x1392   : > { %9565 = vmatprep.subr.bf16.mxu0 %v10853_v9 }
0x1394   : > { %9519 = vmatpush3.bf16.msra.mxu1 %v10816_v10  ;;  %v10854_v10 = vld [vmem:[#allocation9 + $0xe0] sm:$0xff]  }
0x1395   : > { %9526 = vmatprep.subr.bf16.mxu1 %v10817_v12  ;;  %v10855_v12 = vld [vmem:[#allocation9 + $0x160] sm:$0xff]   ;;  %9566 = vmatpush3.bf16.msra.mxu0 %v10854_v10  ;;  %v6246_v10 = vld [vmem:[%s12891_s1] sm:$0xf] }
0x144a   : > { %v5469_v62 = vpop.f32.mrb[48].mxu1 }
0x144b   : > { %v5475_v14 = vpack.c.bf16 %v5469_v62, %v5469_v62  ;;  %v9952_v15 = vpop.f32.mrb[49].mxu1  ;;  %v10856_v62 = vld [vmem:[#allocation9 + $0x128] sm:$0xff]  }
0x144c   : > { %v5472_v18 = vpop.f32.mrb[50].mxu1  ;;  %9567 = vmatprep.subr.bf16.mxu0 %v10856_v62  ;;  %v10859_v15 = vld [vmem:[#allocation9 + $0x130] sm:$0xff]  }
0x144d   : > { %v9953_v19 = vpop.f32.mrb[51].mxu1  ;;  %5637 = vmatmul.mubr.bf16.vlgmr.msra.gmra.mrb[52].mxu1 %v5475_v14  ;;  %v10858_v14 = vld [vmem:[#allocation9 + $0x168] sm:$0xff]   ;;  %v10861_v18 = vld [vmem:[#allocation9 + $0x170] sm:$0xff]  }
0x144e   : > { %9527 = vmatpush3.bf16.msra.mxu1 %v10818_v13  ;;  %v10857_v13 = vld [vmem:[#allocation9 + $0xe8] sm:$0xff]   ;;  %v10862_v19 = vld [vmem:[#allocation9 + $0x138] sm:$0xff]  }
0x144f   : > { %9528 = vmatprep.subr.bf16.mxu1 %v10819_v16  ;;  %9568 = vmatpush3.bf16.msra.mxu0 %v10857_v13  ;;  %v10860_v16 = vld [vmem:[#allocation9 + $0xf0] sm:$0xff]  }
0x1450   : > { %9569 = vmatprep.subr.bf16.mxu0 %v10859_v15  ;;  %v10866_v15 = vld [vmem:[#allocation9 + $0x180] sm:$0xff]  }
0x1452   : > { %9529 = vmatpush3.bf16.msra.mxu1 %v10820_v20  ;;  %v10863_v20 = vld [vmem:[#allocation9 + $0xf8] sm:$0xff]  }
0x1453   : > { %9530 = vmatprep.subr.bf16.mxu1 %v10821_v21  ;;  %9570 = vmatpush3.bf16.msra.mxu0 %v10860_v16  ;;  %v10864_v21 = vld [vmem:[#allocation9 + $0x178] sm:$0xff]   ;;  %v10867_v16 = vld [vmem:[#allocation9 + $0x200] sm:$0xff]  }
0x1454   : > { %9571 = vmatprep.subr.bf16.mxu0 %v10862_v19  ;;  %v10869_v19 = vld [vmem:[#allocation9 + $0x188] sm:$0xff]  }
0x1456   : > { %9531 = vmatpush3.bf16.msra.mxu1 %v10822_v22 }
0x1457   : > { %9532 = vmatprep.subr.bf16.mxu1 %v10823_v23  ;;  %9572 = vmatpush3.bf16.msra.mxu0 %v10863_v20  ;;  %v10870_v20 = vld [vmem:[#allocation9 + $0x208] sm:$0xff]  }
0x145a   : > { %9533 = vmatpush3.bf16.msra.mxu1 %v10824_v24 }
0x145b   : > { %9534 = vmatprep.subr.bf16.mxu1 %v10825_v25 }
0x145e   : > { %9535 = vmatpush3.bf16.msra.mxu1 %v10826_v27 }
0x145f   : > { %9536 = vmatprep.subr.bf16.mxu1 %v10827_v28  ;;  %v8890_v28 = vld [vmem:[#allocation7] ss:$0 sm:$0xff] }
0x1462   : > { %9537 = vmatpush3.bf16.msra.mxu1 %v10828_v29 }
0x1463   : > { %9538 = vmatprep.subr.bf16.mxu1 %v10829_v56 }
0x1466   : > { %9539 = vmatpush3.bf16.msra.mxu1 %v10830_v31  ;;  %v8915_v31 = vld [vmem:[#allocation7 + $0x3] ss:$0 sm:$0xff] }
0x1467   : > { %9540 = vmatprep.subr.bf16.mxu1 %v10831_v32 }
0x146a   : > { %9541 = vmatpush3.bf16.msra.mxu1 %v10832_v33 }
0x146b   : > { %9954 = vmatprep.subr.bf16.mxu1 %v11744_v0 }
0x1520   : > { %v9520_v17 = vpop.f32.mrb[52].mxu1 }
0x1521   : > { %v9521_v35 = vpop.f32.mrb[53].mxu1 }
0x1522   : > { %v12514_v36 = vadd.f32 %v9521_v35, %v9520_v17  ;;  %v9523_v37 = vpop.f32.mrb[54].mxu1 }
0x1523   : > { %v9524_v38 = vpop.f32.mrb[55].mxu1 }
0x1524   : > { %v5692_v39 = vpack.c.bf16 %v12514_v36, %v12514_v36 }
0x1526   : > { %v5694_v40 = vshrl.u32 %v5692_v39, 16  ;;  %5887 = vmatprep.mubr.bf16.mxu1 %v5692_v39  ;;  %v5697_v45 = vshll.u32 %v5692_v39, 16 }
0x1528   : > { %v5696_v43 = vrot.slane %v5694_v40, 7  ;;  %v5702_v50 = vrot.slane %v5697_v45, 1 }
0x152a   : > { %v5699_v46 = vor.u32 %v5697_v45, %v5696_v43  ;;  %v5703_v11 = vor.u32 %v5702_v50, %v5694_v40 }
0x152c   : > { %v5701_v51 = vsel %vm12271_vm5, 0, %v5699_v46  ;;  %v5705_v42 = vsel %vm12375_vm13, %v5703_v11, 0 }
0x152d   : > { %5888 = vmatmul.mubr.bf16.vlgmr.msra.gmra.mrb[56].mxu1 %v5701_v51 }
0x152e   : > { %9955 = vmatpush3.bf16.msra.mxu1 %v10833_v47  ;;  %9970 = vmatprep.mubr.msk.bf16.mxu1 %vm11745_vm0, %v11744_v0 }
0x152f   : > { %9956 = vmatprep.subr.bf16.mxu1 %v11744_v0 }
0x1532   : > { %9957 = vmatpush3.bf16.msra.mxu1 %v10834_v52 }
0x1533   : > { %9958 = vmatprep.subr.bf16.mxu1 %v11744_v0 }
0x1536   : > { %9959 = vmatpush3.bf16.msra.mxu1 %v10835_v53 }
0x1537   : > { %9960 = vmatprep.subr.bf16.mxu1 %v11744_v0 }
0x153a   : > { %9961 = vmatpush3.bf16.msra.mxu1 %v10836_v54 }
0x153b   : > { %9962 = vmatprep.subr.bf16.mxu1 %v11744_v0 }
0x153e   : > { %9963 = vmatpush3.bf16.msra.mxu1 %v10837_v57 }
0x153f   : > { %9964 = vmatprep.subr.bf16.mxu1 %v11744_v0 }
0x1542   : > { %9965 = vmatpush3.bf16.msra.mxu1 %v10838_v48  ;;  %v8916_v48 = vld [vmem:[#allocation7 + $0x1] ss:$0 sm:$0xff] }
0x1543   : > { %9966 = vmatprep.subr.bf16.mxu1 %v11744_v0 }
0x1546   : > { %9967 = vmatpush3.bf16.msra.mxu1 %v10839_v58 }
0x1547   : > { %9968 = vmatprep.subr.bf16.mxu1 %v11744_v0 }
0x154a   : > { %9969 = vmatpush3.bf16.msra.mxu1 %v10840_v60 }
0x154b   : > { %9974 = vmatprep.subr.bf16.mxu1 %v11744_v0 }
0x154d   : > { %9971 = vmatmul.mubr.bf16.vlgmr.msra.gmra.mrb[60].mxu1 %v5705_v42 }
0x154e   : > { %9990 = vmatprep.mubr.msk.bf16.mxu1 %vm11745_vm0, %v11744_v0  ;;  %9975 = vmatpush3.bf16.msra.mxu1 %v10843_v1 }
0x154f   : > { %9976 = vmatprep.subr.bf16.mxu1 %v11744_v0 }
0x1552   : > { %9977 = vmatpush3.bf16.msra.mxu1 %v10846_v3 }
0x1553   : > { %9978 = vmatprep.subr.bf16.mxu1 %v11744_v0 }
0x1556   : > { %9979 = vmatpush3.bf16.msra.mxu1 %v10849_v6 }
0x1557   : > { %9980 = vmatprep.subr.bf16.mxu1 %v11744_v0 }
0x155a   : > { %9981 = vmatpush3.bf16.msra.mxu1 %v10852_v44 }
0x155b   : > { %9982 = vmatprep.subr.bf16.mxu1 %v11744_v0 }
0x155e   : > { %9983 = vmatpush3.bf16.msra.mxu1 %v10855_v12 }
0x155f   : > { %9984 = vmatprep.subr.bf16.mxu1 %v11744_v0 }
0x1562   : > { %9985 = vmatpush3.bf16.msra.mxu1 %v10858_v14  ;;  %v10865_v14 = vld [vmem:[#allocation9 + $0x1c0] sm:$0xff]  }
0x1563   : > { %9986 = vmatprep.subr.bf16.mxu1 %v11744_v0  ;;  %9588 = vmatprep.subr.bf16.mxu0 %v10865_v14  ;;  %v10897_v14 = vld [vmem:[%s11895_s3 + $0x24] ss:$8 sps:$4 sm:$0xff]  }
0x1566   : > { %9987 = vmatpush3.bf16.msra.mxu1 %v10861_v18  ;;  %v10868_v18 = vld [vmem:[#allocation9 + $0x1c8] sm:$0xff]  }
0x1567   : > { %9988 = vmatprep.subr.bf16.mxu1 %v11744_v0 }
0x156a   : > { %9989 = vmatpush3.bf16.msra.mxu1 %v10864_v21  ;;  %v10871_v21 = vld [vmem:[#allocation9 + $0x1d0] sm:$0xff]  }
0x156b   : > { %9994 = vmatprep.subr.bf16.mxu1 %v11744_v0 }
0x1600   : > { %v9542_v22 = vpop.f32.mrb[56].mxu1 }
0x1601   : > { %v9543_v23 = vpop.f32.mrb[57].mxu1 }
0x1602   : > { %v9544_v24 = vadd.f32 %v9543_v23, %v9542_v22  ;;  %v9545_v25 = vpop.f32.mrb[58].mxu1  ;;  %v10872_v22 = vld [vmem:[#allocation9 + $0x190] sm:$0xff]  }
0x1603   : > { %v9546_v27 = vpop.f32.mrb[59].mxu1  ;;  %v10873_v23 = vld [vmem:[#allocation9 + $0x210] sm:$0xff]   ;;  %v10875_v25 = vld [vmem:[#allocation9 + $0x198] sm:$0xff]  }
0x1604   : > { %v5890_v29 = vadd.f32 %v9544_v24, %v8890_v28  ;;  %v10874_v24 = vld [vmem:[#allocation9 + $0x1d8] sm:$0xff]   ;;  %v10877_v28 = vld [vmem:[#allocation9 + $0x1e0] sm:$0xff]  }
0x1605   : > { %v10876_v27 = vld [vmem:[#allocation9 + $0x218] sm:$0xff]  }
0x1620   : > { %v5929_v56 = vpop.f32.mrb[60].mxu1 }
0x1621   : > { %v5930_v32 = vadd.f32 %v5929_v56, %v5890_v29  ;;  %v9972_v33 = vpop.f32.mrb[61].mxu1  ;;  %v10878_v29 = vld [vmem:[#allocation9 + $0x1a0] sm:$0xff]  }
0x1622   : > { %v5932_v17 = vpop.f32.mrb[62].mxu1  ;;  %v10879_v56 = vld [vmem:[#allocation9 + $0x220] sm:$0xff]   ;;  %v10882_v33 = vld [vmem:[#allocation9 + $0x228] sm:$0xff]  }
0x1623   : > { %vm5935_vm7 = vcmp.ge.f32.partialorder %v5930_v32, 0.0  ;;  %v5941_v35 = vmul.f32 %v8915_v31, %v5930_v32  ;;  %v9973_v37 = vpop.f32.mrb[63].mxu1  ;;  %v10880_v31 = vld [vmem:[#allocation9 + $0x1e8] sm:$0xff]   ;;  %v10883_v17 = vld [vmem:[#allocation9 + $0x1f0] sm:$0xff]  }
0x1624   : > { %v10885_v37 = vld [vmem:[#allocation9 + $0x230] sm:$0xff]  }
0x1625   : > { %v5942_v38 = vsel %vm5935_vm7, %v5930_v32, %v5941_v35  ;;  %v10881_v32 = vld [vmem:[#allocation9 + $0x1a8] sm:$0xff]   ;;  %v10884_v35 = vld [vmem:[#allocation9 + $0x1b0] sm:$0xff]  }
0x1626   : > { %v5992_v39 = vpack.c.bf16 %v5942_v38, %v5942_v38  ;;  %v10886_v38 = vld [vmem:[#allocation9 + $0x1f8] sm:$0xff]  }
0x1628   : > { %v5994_v40 = vshrl.u32 %v5992_v39, 16  ;;  %6187 = vmatprep.mubr.bf16.mxu0 %v5992_v39  ;;  %v5997_v43 = vshll.u32 %v5992_v39, 16  ;;  %v10887_v39 = vld [vmem:[#allocation9 + $0x1b8] sm:$0xff]  }
0x162a   : > { %v5996_v45 = vrot.slane %v5994_v40, 7  ;;  %v6002_v46 = vrot.slane %v5997_v43, 1 }
0x162c   : > { %v5999_v47 = vor.u32 %v5997_v43, %v5996_v45  ;;  %v6003_v51 = vor.u32 %v6002_v46, %v5994_v40  ;;  %v10888_v40 = vld [vmem:[#allocation9 + $0x238] sm:$0xff]  }
0x162d   : > { %v10891_v43 = vld [vmem:[%s11895_s3 + $0x4] ss:$8 sps:$4 sm:$0xff]  }
0x162e   : > { %v6001_v52 = vsel %vm12271_vm5, 0, %v5999_v47  ;;  %v6005_v53 = vsel %vm12375_vm13, %v6003_v51, 0  ;;  %v8941_v45 = vld [vmem:[%s12890_s11 + $0x4] sm:$0xf] }
0x162f   : > { %6188 = vmatmul.mubr.bf16.vlgmr.msra.gmra.mrb[44].mxu0 %v6001_v52  ;;  %9991 = vmatmul.mubr.bf16.vlgmr.msra.gmra.mrb[64].mxu1 %v6005_v53 }
0x1630   : > { %10010 = vmatprep.mubr.msk.bf16.mxu1 %vm11745_vm0, %v11744_v0  ;;  %9589 = vmatpush3.bf16.msra.mxu0 %v10866_v15  ;;  %v10895_v15 = vld [vmem:[%s11895_s3 + $0x20] ss:$8 sps:$4 sm:$0xff]  }
0x1631   : > { %9995 = vmatpush3.bf16.msra.mxu1 %v10867_v16  ;;  %9590 = vmatprep.subr.bf16.mxu0 %v10868_v18  ;;  %v10900_v16 = vld [vmem:[%s11895_s3 + $0x34] ss:$8 sps:$4 sm:$0xff]   ;;  %v10898_v18 = vld [vmem:[%s11895_s3 + $0x30] ss:$8 sps:$4 sm:$0xff]  }
0x1632   : > { %9996 = vmatprep.subr.bf16.mxu1 %v11744_v0 }
0x1634   : > { %9591 = vmatpush3.bf16.msra.mxu0 %v10869_v19  ;;  %v10903_v19 = vld [vmem:[%s11895_s3 + $0x44] ss:$8 sps:$4 sm:$0xff]  }
0x1635   : > { %9997 = vmatpush3.bf16.msra.mxu1 %v10870_v20  ;;  %9592 = vmatprep.subr.bf16.mxu0 %v10871_v21  ;;  %v10901_v20 = vld [vmem:[%s11895_s3 + $0x40] ss:$8 sps:$4 sm:$0xff]   ;;  %v10906_v21 = vld [vmem:[%s11895_s3 + $0x54] ss:$8 sps:$4 sm:$0xff]  }
0x1636   : > { %9998 = vmatprep.subr.bf16.mxu1 %v11744_v0 }
0x1638   : > { %9593 = vmatpush3.bf16.msra.mxu0 %v10872_v22  ;;  %v10904_v22 = vld [vmem:[%s11895_s3 + $0x50] ss:$8 sps:$4 sm:$0xff]  }
0x1639   : > { %9999 = vmatpush3.bf16.msra.mxu1 %v10873_v23  ;;  %9594 = vmatprep.subr.bf16.mxu0 %v10874_v24  ;;  %v10909_v23 = vld [vmem:[%s11895_s3 + $0x64] ss:$8 sps:$4 sm:$0xff]   ;;  %v10907_v24 = vld [vmem:[%s11895_s3 + $0x60] ss:$8 sps:$4 sm:$0xff]  }
0x163a   : > { %10000 = vmatprep.subr.bf16.mxu1 %v11744_v0 }
0x163c   : > { %9595 = vmatpush3.bf16.msra.mxu0 %v10875_v25  ;;  %v10912_v25 = vld [vmem:[%s11895_s3 + $0x74] ss:$8 sps:$4 sm:$0xff]  }
0x163d   : > { %10001 = vmatpush3.bf16.msra.mxu1 %v10876_v27  ;;  %9596 = vmatprep.subr.bf16.mxu0 %v10877_v28  ;;  %v10910_v27 = vld [vmem:[%s11895_s3 + $0x70] ss:$8 sps:$4 sm:$0xff]   ;;  %v10915_v28 = vld [vmem:[%s11895_s3 + $0x84] ss:$8 sps:$4 sm:$0xff]  }
0x163e   : > { %10002 = vmatprep.subr.bf16.mxu1 %v11744_v0 }
0x1640   : > { %9597 = vmatpush3.bf16.msra.mxu0 %v10878_v29  ;;  %v10913_v29 = vld [vmem:[%s11895_s3 + $0x80] ss:$8 sps:$4 sm:$0xff]  }
0x1641   : > { %10003 = vmatpush3.bf16.msra.mxu1 %v10879_v56  ;;  %9598 = vmatprep.subr.bf16.mxu0 %v10880_v31  ;;  %v10918_v56 = vld [vmem:[%s11895_s3 + $0x94] ss:$8 sps:$4 sm:$0xff]   ;;  %v10916_v31 = vld [vmem:[%s11895_s3 + $0x90] ss:$8 sps:$4 sm:$0xff]  }
0x1642   : > { %10004 = vmatprep.subr.bf16.mxu1 %v11744_v0 }
0x1644   : > { %9599 = vmatpush3.bf16.msra.mxu0 %v10881_v32  ;;  %v10921_v32 = vld [vmem:[%s11895_s3 + $0xa4] ss:$8 sps:$4 sm:$0xff]  }
0x1645   : > { %10005 = vmatpush3.bf16.msra.mxu1 %v10882_v33  ;;  %9600 = vmatprep.subr.bf16.mxu0 %v10883_v17  ;;  %v10919_v33 = vld [vmem:[%s11895_s3 + $0xa0] ss:$8 sps:$4 sm:$0xff]   ;;  %v10924_v17 = vld [vmem:[%s11895_s3 + $0xb4] ss:$8 sps:$4 sm:$0xff]  }
0x1646   : > { %10006 = vmatprep.subr.bf16.mxu1 %v11744_v0 }
0x1648   : > { %9601 = vmatpush3.bf16.msra.mxu0 %v10884_v35  ;;  %v10922_v35 = vld [vmem:[%s11895_s3 + $0xb0] ss:$8 sps:$4 sm:$0xff]  }
0x1649   : > { %10007 = vmatpush3.bf16.msra.mxu1 %v10885_v37  ;;  %9602 = vmatprep.subr.bf16.mxu0 %v10886_v38  ;;  %v10927_v37 = vld [vmem:[%s11895_s3 + $0xc4] ss:$8 sps:$4 sm:$0xff]   ;;  %v10925_v38 = vld [vmem:[%s11895_s3 + $0xc0] ss:$8 sps:$4 sm:$0xff]  }
0x164a   : > { %10008 = vmatprep.subr.bf16.mxu1 %v11744_v0 }
0x164c   : > { %9603 = vmatpush3.bf16.msra.mxu0 %v10887_v39  ;;  %v10930_v39 = vld [vmem:[%s11895_s3 + $0xd4] ss:$8 sps:$4 sm:$0xff]  }
0x164d   : > { %10009 = vmatpush3.bf16.msra.mxu1 %v10888_v40  ;;  %6867 = vmatprep.subr.bf16.mxu0 %v10891_v43  ;;  %v10928_v40 = vld [vmem:[%s11895_s3 + $0xd0] ss:$8 sps:$4 sm:$0xff]   ;;  %v10933_v43 = vld [vmem:[%s11895_s3 + $0xe4] ss:$8 sps:$4 sm:$0xff]  }
0x164e   : > { %10014 = vmatprep.subr.bf16.mxu1 %v11744_v0 }
0x1702   : > { %v9573_v54 = vpop.f32.mrb[44].mxu0  ;;  %v6229_v57 = vpop.f32.mrb[64].mxu1 }
0x1703   : > { %v9574_v58 = vpop.f32.mrb[45].mxu0  ;;  %v9992_v50 = vpop.f32.mrb[65].mxu1 }
0x1704   : > { %v9575_v60 = vadd.f32 %v9574_v58, %v9573_v54  ;;  %v9576_v11 = vpop.f32.mrb[46].mxu0  ;;  %v6232_v42 = vpop.f32.mrb[66].mxu1  ;;  %v6264_v58 = vld [vmem:[#allocation7 + $0x2] sm:$0x1] }
0x1705   : > { %v9577_v61 = vpop.f32.mrb[47].mxu0  ;;  %v9993_v63 = vpop.f32.mrb[67].mxu1 }
0x1706   : > { %v6190_v1 = vadd.f32 %v9575_v60, %v8916_v48 }
0x1708   : > { %v12548_v2 = vadd.f32 %v6229_v57, %v6190_v1 }
0x170a   : > { %v6235_v3 = vrot.slane %v12548_v2, 4 }
0x170c   : > { %v6236_v4 = vadd.f32 %v6235_v3, %v12548_v2 }
0x170e   : > { %v6237_v5 = vrot.slane %v6236_v4, 2 }
0x1710   : > { %v6238_v6 = vadd.f32 %v6237_v5, %v6236_v4 }
0x1712   : > { %v6239_v34 = vrot.slane %v6238_v6, 1 }
0x1714   : > { %v6240_v44 = vadd.f32 %v6239_v34, %v6238_v6 }
0x1716   : > { %v6242_v8 = vmul.f32 %v6241_v7, %v6240_v44 }
0x1718   : > { %v6243_v9 = vsel %vm2724_vm11, %v6242_v8, 0.0 }
0x1719   : > { %6244 = vadd.xlane.f32.xlu0 %v6243_v9 }
0x17a6   : > { %v6245_v12 = vpop.xlane.xlu0 %6244 }
0x17a7   : > { %v6247_v62 = vadd.f32 %v6246_v10, %v6245_v12  ;;  %v10889_v10 = vld [vmem:[%s11895_s3] ss:$8 sps:$4 sm:$0xff]   ;;  %v10894_v12 = vld [vmem:[%s11895_s3 + $0x14] ss:$8 sps:$4 sm:$0xff]  }
0x17a9   : > { %v6248_v13 = vmax.f32 %v6247_v62, 0.0 }
0x17ab   : > { %6253 = vperm.xlu1 %10368, %v6248_v13   ;;  %v10892_v13 = vld [vmem:[%s11895_s3 + $0x10] ss:$8 sps:$4 sm:$0xff]  }
0x182a   : > { %v6254_v46 = vpop.permute.xlu1 %6253 }
0x182b   : > { %v6256_v47 = vmul.f32 %v8941_v45, %v6254_v46  ;;  %v10931_v45 = vld [vmem:[%s11895_s3 + $0xe0] ss:$8 sps:$4 sm:$0xff]   ;;  %v10934_v46 = vld [vmem:[%s11895_s3 + $0xf0] ss:$8 sps:$4 sm:$0xff]  }
0x182d   : > { %v6257_v51 = vsel %vm2724_vm11, %v6256_v47, 0.0  ;;  %v10936_v47 = vld [vmem:[%s11895_s3 + $0xf4] ss:$8 sps:$4 sm:$0xff]  }
0x182e   : > { %v6258_v52 = vrot.slane %v6257_v51, 4 }
0x1830   : > { %v6259_v53 = vadd.f32 %v6258_v52, %v6257_v51  ;;  %v10939_v51 = vld [vmem:[%s11895_s3 + $0x104] ss:$8 sps:$4 sm:$0xff]  }
0x1832   : > { %v6260_v54 = vrot.slane %v6259_v53, 2 }
0x1834   : > { %v6261_v57 = vadd.f32 %v6260_v54, %v6259_v53 }
0x1836   : > { %v6262_v48 = vrot.slane %v6261_v57, 1 }
0x1838   : > { %v6263_v50 = vadd.f32 %v6262_v48, %v6261_v57 }
0x183a   : > { %v6265_v60 = vadd.f32 %v6264_v58, %v6263_v50 }
0x183c   : > { %v8942_v11 = vmul.f32 -1.442695, %v6265_v60 }
0x183e   : > { %11063 = vpow2.f32 %v8942_v11 }
0x1848   : > { %v11064_v42 = vpop.eup %11063 }
0x1849   : > { %v6269_v61 = vadd.f32 1.0, %v11064_v42 }
0x184b   : > { %11065 = vrcp.f32 %v6269_v61 }
0x1855   : > { %v11066_v63 = vpop.eup %11065 }
0x1856   : > { %v6275_v1 = vrot.slane %v11066_v63, %v12321_v41 }
0x1858   : > { %v6276_v3 = vmul.f32 %v6275_v1, %v12548_v2 }
0x185a   : > { %v6277_v4 = vadd.f32 %v12514_v36, %v6276_v3 }
0x185c   : > { %v6327_v5 = vpack.c.bf16 %v6277_v4, %v6277_v4 }
0x185e   : > { %v6329_v6 = vshrl.u32 %v6327_v5, 16  ;;  %6517 = vmatprep.mubr.bf16.mxu0 %v6327_v5  ;;  %v6332_v34 = vshll.u32 %v6327_v5, 16  ;;  %v10937_v5 = vld [vmem:[%s11895_s3 + $0x100] ss:$8 sps:$4 sm:$0xff]  }
0x1860   : > { %v6331_v7 = vrot.slane %v6329_v6, 7  ;;  %v6337_v44 = vrot.slane %v6332_v34, 1 }
0x1862   : > { %v6334_v8 = vor.u32 %v6332_v34, %v6331_v7  ;;  %v6338_v9 = vor.u32 %v6337_v44, %v6329_v6  ;;  %v10942_v34 = vld [vmem:[%s11895_s3 + $0x114] ss:$8 sps:$4 sm:$0xff]   ;;  %v10945_v44 = vld [vmem:[%s11895_s3 + $0x124] ss:$8 sps:$4 sm:$0xff]  }
0x1864   : > { %v6336_v2 = vsel %vm12271_vm5, 0, %v6334_v8  ;;  %v6340_v62 = vsel %vm12375_vm13, %v6338_v9, 0  ;;  %v10943_v8 = vld [vmem:[%s11895_s3 + $0x120] ss:$8 sps:$4 sm:$0xff]   ;;  %v10948_v9 = vld [vmem:[%s11895_s3 + $0x134] ss:$8 sps:$4 sm:$0xff]  }
0x1865   : > { %6518 = vmatmul.mubr.bf16.vlgmr.msra.gmra.mrb[48].mxu0 %v6336_v2  ;;  %10011 = vmatmul.mubr.bf16.vlgmr.msra.gmra.mrb[68].mxu1 %v6340_v62  ;;  %v10949_v2 = vld [vmem:[%s11895_s3 + $0x140] ss:$8 sps:$4 sm:$0xff]   ;;  %v10954_v62 = vld [vmem:[%s11895_s3 + $0x154] ss:$8 sps:$4 sm:$0xff]  }
0x1866   : > { %6868 = vmatpush1.bf16.msra.mxu0 %v10889_v10  ;;  %10016 = vmatprep.mubr.msk.bf16.mxu1 %vm11745_vm0, %v11744_v0  ;;  %v10946_v10 = vld [vmem:[%s11895_s3 + $0x130] ss:$8 sps:$4 sm:$0xff]  }
0x1867   : > { %6869 = vmatprep.subr.bf16.mxu0 %v10894_v12  ;;  %v10951_v12 = vld [vmem:[%s11895_s3 + $0x144] ss:$8 sps:$4 sm:$0xff]  }
0x186a   : > { %6870 = vmatpush1.bf16.msra.mxu0 %v10892_v13  ;;  %v10957_v13 = vld [vmem:[%s11895_s3 + $0x164] ss:$8 sps:$4 sm:$0xff]  }
0x186b   : > { %6871 = vmatprep.subr.bf16.mxu0 %v10897_v14  ;;  %v10955_v14 = vld [vmem:[%s11895_s3 + $0x160] ss:$8 sps:$4 sm:$0xff]  }
0x186e   : > { %6872 = vmatpush1.bf16.msra.mxu0 %v10895_v15  ;;  %v10960_v15 = vld [vmem:[%s11895_s3 + $0x174] ss:$8 sps:$4 sm:$0xff]  }
0x186f   : > { %6873 = vmatprep.subr.bf16.mxu0 %v10900_v16 }
0x1872   : > { %6874 = vmatpush1.bf16.msra.mxu0 %v10898_v18  ;;  %v10958_v18 = vld [vmem:[%s11895_s3 + $0x170] ss:$8 sps:$4 sm:$0xff]  }
0x1873   : > { %6875 = vmatprep.subr.bf16.mxu0 %v10903_v19 }
0x1876   : > { %6876 = vmatpush1.bf16.msra.mxu0 %v10901_v20 }
0x1877   : > { %6877 = vmatprep.subr.bf16.mxu0 %v10906_v21 }
0x187a   : > { %6878 = vmatpush1.bf16.msra.mxu0 %v10904_v22 }
0x187b   : > { %6879 = vmatprep.subr.bf16.mxu0 %v10909_v23 }
0x187e   : > { %6880 = vmatpush1.bf16.msra.mxu0 %v10907_v24 }
0x187f   : > { %6881 = vmatprep.subr.bf16.mxu0 %v10912_v25 }
0x1882   : > { %6882 = vmatpush1.bf16.msra.mxu0 %v10910_v27 }
0x1883   : > { %6883 = vmatprep.subr.bf16.mxu0 %v10915_v28 }
0x1886   : > { %6884 = vmatpush1.bf16.msra.mxu0 %v10913_v29  ;;  %v10961_v29 = vld [vmem:[%s12892_s2 + $0x8] sm:$0xff]  }
0x1887   : > { %6885 = vmatprep.subr.bf16.mxu0 %v10918_v56  ;;  %v10963_v56 = vld [vmem:[#allocation6 + $0x40] sm:$0xff]  }
0x188a   : > { %6886 = vmatpush1.bf16.msra.mxu0 %v10916_v31  ;;  %v10962_v31 = vld [vmem:[%s12892_s2] sm:$0xff]  }
0x188b   : > { %6887 = vmatprep.subr.bf16.mxu0 %v10921_v32  ;;  %v10964_v32 = vld [vmem:[#allocation6] sm:$0xff]  }
0x188e   : > { %6888 = vmatpush1.bf16.msra.mxu0 %v10919_v33  ;;  %v10965_v33 = vld [vmem:[#allocation6 + $0x48] sm:$0xff]  }
0x188f   : > { %6889 = vmatprep.subr.bf16.mxu0 %v10924_v17  ;;  %v10966_v17 = vld [vmem:[#allocation6 + $0x8] sm:$0xff]  }
0x1892   : > { %6890 = vmatpush1.bf16.msra.mxu0 %v10922_v35  ;;  %v10967_v35 = vld [vmem:[#allocation6 + $0x50] sm:$0xff]  }
0x1893   : > { %6891 = vmatprep.subr.bf16.mxu0 %v10927_v37  ;;  %v10968_v37 = vld [vmem:[#allocation6 + $0x10] sm:$0xff]  }
0x1896   : > { %6892 = vmatpush1.bf16.msra.mxu0 %v10925_v38  ;;  %v10969_v38 = vld [vmem:[#allocation6 + $0x58] sm:$0xff]  }
0x1897   : > { %6893 = vmatprep.subr.bf16.mxu0 %v10930_v39  ;;  %v10970_v39 = vld [vmem:[#allocation6 + $0x18] sm:$0xff]  }
0x189a   : > { %6894 = vmatpush1.bf16.msra.mxu0 %v10928_v40  ;;  %v10971_v40 = vld [vmem:[#allocation6 + $0x60] sm:$0xff]  }
0x189b   : > { %6895 = vmatprep.subr.bf16.mxu0 %v10933_v43  ;;  %v10972_v43 = vld [vmem:[#allocation6 + $0x20] sm:$0xff]  }
0x189e   : > { %6896 = vmatpush1.bf16.msra.mxu0 %v10931_v45  ;;  %v10973_v45 = vld [vmem:[#allocation6 + $0x68] sm:$0xff]  }
0x189f   : > { %6897 = vmatprep.subr.bf16.mxu0 %v10936_v47  ;;  %v10976_v47 = vld [vmem:[#allocation6 + $0x30] sm:$0xff]  }
0x18a2   : > { %6898 = vmatpush1.bf16.msra.mxu0 %v10934_v46  ;;  %v10975_v46 = vld [vmem:[#allocation6 + $0x70] sm:$0xff]  }
0x18a3   : > { %6908 = vmatprep.subr.bf16.mxu0 %v10939_v51  ;;  %v10977_v51 = vld [vmem:[#allocation6 + $0x78] sm:$0xff]  }
0x1938   : > { %v9604_v52 = vpop.f32.mrb[48].mxu0  ;;  %v6559_v53 = vpop.f32.mrb[68].mxu1 }
0x1939   : > { %v9605_v54 = vpop.f32.mrb[49].mxu0  ;;  %v10012_v57 = vpop.f32.mrb[69].mxu1 }
0x193a   : > { %v9606_v48 = vadd.f32 %v9605_v54, %v9604_v52  ;;  %v9607_v58 = vpop.f32.mrb[50].mxu0  ;;  %v6562_v50 = vpop.f32.mrb[70].mxu1  ;;  %v10978_v52 = vld [vmem:[#allocation6 + $0x38] sm:$0xff]   ;;  %v10984_v57 = vld [vmem:[%s12893_s9 + $0x88] sm:$0xff]  }
0x193b   : > { %v9608_v60 = vpop.f32.mrb[51].mxu0  ;;  %v10013_v11 = vpop.f32.mrb[71].mxu1  ;;  %v10981_v54 = vld [vmem:[%s12893_s9 + $0x80] sm:$0xff]   ;;  %v10990_v58 = vld [vmem:[%s12893_s9 + $0x98] sm:$0xff]  }
0x193c   : > { %v6520_v42 = vadd.f32 %v9606_v48, %v12514_v36  ;;  %v10940_v36 = vld [vmem:[%s11895_s3 + $0x110] ss:$8 sps:$4 sm:$0xff]  }
0x193d   : > { %v10987_v48 = vld [vmem:[%s12893_s9 + $0x90] sm:$0xff]  }
0x193e   : > { %v6560_v61 = vadd.f32 %v6559_v53, %v6520_v42  ;;  %v10979_v53 = vld [vmem:[%s12893_s9 + $0x40] sm:$0xff]  }
0x193f   : > { %v10980_v42 = vld [vmem:[%s12893_s9] sm:$0xff]  }
0x1940   : > { %v6613_v63 = vpack.c.bf16 %v6560_v61, %v6560_v61 }
0x1942   : > { %v6615_v1 = vshrl.u32 %v6613_v63, 16  ;;  %6899 = vmatprep.mubr.bf16.mxu0 %v6613_v63  ;;  %v6618_v4 = vshll.u32 %v6613_v63, 16 }
0x1944   : > { %v6617_v3 = vrot.slane %v6615_v1, 7  ;;  %v6623_v16 = vrot.slane %v6618_v4, 1 }
0x1946   : > { %v6620_v6 = vor.u32 %v6618_v4, %v6617_v3  ;;  %v6624_v19 = vor.u32 %v6623_v16, %v6615_v1  ;;  %v10982_v1 = vld [vmem:[%s12893_s9 + $0x48] sm:$0xff]   ;;  %v10985_v4 = vld [vmem:[%s12893_s9 + $0x50] sm:$0xff]  }
0x1947   : > { %v10983_v3 = vld [vmem:[%s12893_s9 + $0x8] sm:$0xff]  }
0x1948   : > { %v6622_v7 = vsel %vm12271_vm5, 0, %v6620_v6  ;;  %v6626_v20 = vsel %vm12375_vm13, %v6624_v19, 0  ;;  %v10988_v6 = vld [vmem:[%s12893_s9 + $0x58] sm:$0xff]  }
0x1949   : > { %6900 = vmatmul.mubr.bf16.vlgmr.msra.gmra.mrb[52].mxu0 %v6622_v7  ;;  %v10991_v7 = vld [vmem:[%s12893_s9 + $0x60] sm:$0xff]  }
0x194a   : > { %6909 = vmatpush1.bf16.msra.mxu0 %v10937_v5  ;;  %6940 = vmatprep.mubr.bf16.mxu0 %v11746_v55  ;;  %v10952_v55 = vld [vmem:[%s11895_s3 + $0x150] ss:$8 sps:$4 sm:$0xff]  }
0x194b   : > { %6910 = vmatprep.subr.bf16.mxu0 %v10942_v34  ;;  %v10986_v5 = vld [vmem:[%s12893_s9 + $0x10] sm:$0xff]   ;;  %v10989_v34 = vld [vmem:[%s12893_s9 + $0x18] sm:$0xff]  }
0x194e   : > { %6911 = vmatpush1.bf16.msra.mxu0 %v10940_v36  ;;  %v10992_v36 = vld [vmem:[%s12893_s9 + $0x20] sm:$0xff]  }
0x194f   : > { %6912 = vmatprep.subr.bf16.mxu0 %v10945_v44  ;;  %v10993_v44 = vld [vmem:[%s12893_s9 + $0xa0] sm:$0xff]  }
0x1952   : > { %6913 = vmatpush1.bf16.msra.mxu0 %v10943_v8  ;;  %v10994_v8 = vld [vmem:[%s12893_s9 + $0x68] sm:$0xff]  }
0x1953   : > { %6914 = vmatprep.subr.bf16.mxu0 %v10948_v9  ;;  %v10995_v9 = vld [vmem:[%s12893_s9 + $0x28] sm:$0xff]  }
0x1956   : > { %6915 = vmatpush1.bf16.msra.mxu0 %v10946_v10  ;;  %v10996_v10 = vld [vmem:[%s12893_s9 + $0xa8] sm:$0xff]  }
0x1957   : > { %6916 = vmatprep.subr.bf16.mxu0 %v10951_v12  ;;  %v10997_v12 = vld [vmem:[%s12893_s9 + $0x70] sm:$0xff]  }
0x195a   : > { %6917 = vmatpush1.bf16.msra.mxu0 %v10949_v2  ;;  %v10998_v2 = vld [vmem:[%s12893_s9 + $0x30] sm:$0xff]  }
0x195b   : > { %6918 = vmatprep.subr.bf16.mxu0 %v10954_v62  ;;  %v10999_v62 = vld [vmem:[%s12893_s9 + $0xb0] sm:$0xff]  }
0x195e   : > { %6919 = vmatpush1.bf16.msra.mxu0 %v10952_v55  ;;  %v11000_v55 = vld [vmem:[%s12893_s9 + $0x78] sm:$0xff]  }
0x195f   : > { %6920 = vmatprep.subr.bf16.mxu0 %v10957_v13  ;;  %v11001_v13 = vld [vmem:[%s12893_s9 + $0x38] sm:$0xff]  }
0x1962   : > { %6921 = vmatpush1.bf16.msra.mxu0 %v10955_v14  ;;  %v11002_v14 = vld [vmem:[%s12893_s9 + $0xb8] sm:$0xff]  }
0x1963   : > { %6922 = vmatprep.subr.bf16.mxu0 %v10960_v15  ;;  %v11003_v15 = vld [vmem:[%s12893_s9 + $0x100] sm:$0xff]  }
0x1966   : > { %6923 = vmatpush1.bf16.msra.mxu0 %v10958_v18 }
0x1967   : > { %10026 = vmatprep.subr.bf16.mxu0 %v11744_v0 }
0x1969   : > { %6941 = vmatmul.mubr.bf16.vlgmr.msra.gmra.mrb[52].mxu0 %v6626_v20 }
0x196a   : > { %10042 = vmatprep.mubr.msk.bf16.mxu0 %vm11745_vm0, %v11744_v0  ;;  %10027 = vmatpush3.bf16.msra.mxu0 %v10981_v54  ;;  %v11020_v54 = vld [vmem:[%s12893_s9 + $0x168] sm:$0xff]  }
0x196b   : > { %10028 = vmatprep.subr.bf16.mxu0 %v11744_v0 }
0x196e   : > { %10029 = vmatpush3.bf16.msra.mxu0 %v10984_v57  ;;  %v11021_v57 = vld [vmem:[%s12893_s9 + $0x130] sm:$0xff]  }
0x196f   : > { %10030 = vmatprep.subr.bf16.mxu0 %v11744_v0 }
0x1972   : > { %10031 = vmatpush3.bf16.msra.mxu0 %v10987_v48  ;;  %v11022_v48 = vld [vmem:[%s12893_s9 + $0xf0] sm:$0xff]  }
0x1973   : > { %10032 = vmatprep.subr.bf16.mxu0 %v11744_v0 }
0x1976   : > { %10033 = vmatpush3.bf16.msra.mxu0 %v10990_v58  ;;  %v11023_v58 = vld [vmem:[%s12893_s9 + $0x170] sm:$0xff]  }
0x1977   : > { %10034 = vmatprep.subr.bf16.mxu0 %v11744_v0 }
0x197a   : > { %10035 = vmatpush3.bf16.msra.mxu0 %v10993_v44 }
0x197b   : > { %10036 = vmatprep.subr.bf16.mxu0 %v11744_v0 }
0x197e   : > { %10037 = vmatpush3.bf16.msra.mxu0 %v10996_v10 }
0x197f   : > { %10038 = vmatprep.subr.bf16.mxu0 %v11744_v0 }
0x1982   : > { %10039 = vmatpush3.bf16.msra.mxu0 %v10999_v62 }
0x1983   : > { %10040 = vmatprep.subr.bf16.mxu0 %v11744_v0 }
0x1986   : > { %10041 = vmatpush3.bf16.msra.mxu0 %v11002_v14 }
0x1987   : > { %10046 = vmatprep.subr.bf16.mxu0 %v11744_v0 }
0x1a3c   : > { %v6942_v21 = vpop.f32.mrb[52].mxu0 }
0x1a3d   : > { %v6944_v22 = vpop.f32.mrb[53].mxu0  ;;  %v6949_v27 = vpack.c.bf16 %v6942_v21, %v6942_v21 }
0x1a3e   : > { %v6950_v23 = vpack.c.bf16 %v6944_v22, %v6944_v22  ;;  %v6946_v24 = vpop.f32.mrb[54].mxu0 }
0x1a3f   : > { %v6947_v25 = vpop.f32.mrb[55].mxu0  ;;  %v7017_v59 = vsel %vm2724_vm11, %v6949_v27, 0 }
0x1a40   : > { %v6965_v28 = vsel %vm2724_vm11, %v6950_v23, 0 }
0x1a41   : > { %10015 = vmatpush3.bf16.msra.mxu1 %v6965_v28 }
0x1a42   : > { %10020 = vmatprep.subr.bf16.mxu1 %v11744_v0 }
0x1a44   : > { %10017 = vmatmul.mubr.msk.bf16.vlgmr.msra.gmra.mrb[72].mxu1 %vm3977_vm15, %v10961_v29 }
0x1a45   : > { %10021 = vmatpush3.bf16.msra.mxu1 %v7017_v59  ;;  %10022 = vmatprep.mubr.msk.bf16.mxu1 %vm11745_vm0, %v11744_v0  ;;  %v11004_v59 = vld [vmem:[%s12893_s9 + $0xc0] sm:$0xff]  }
0x1a46   : > { %9623 = vmatprep.subr.bf16.mxu1 %v10963_v56 }
0x1a50   : > { %10023 = vmatmul.mubr.msk.bf16.vlgmr.msra.gmra.mrb[72].mxu1 %vm3977_vm15, %v10962_v31  ;;  %v11005_v31 = vld [vmem:[%s12893_s9 + $0x140] sm:$0xff]  }
0x1a51   : > { %7221 = vmatprep.mubr.bf16.mxu1 %v12342_v49  ;;  %9624 = vmatpush3.bf16.msra.mxu1 %v10964_v32  ;;  %v10974_v49 = vld [vmem:[#allocation6 + $0x28] sm:$0xff]   ;;  %v11006_v32 = vld [vmem:[%s12893_s9 + $0x108] sm:$0xff]  }
0x1a52   : > { %9625 = vmatprep.subr.bf16.mxu1 %v10965_v33 }
0x1a55   : > { %9626 = vmatpush3.bf16.msra.mxu1 %v10966_v17 }
0x1a56   : > { %9627 = vmatprep.subr.bf16.mxu1 %v10967_v35  ;;  %v11007_v35 = vld [vmem:[%s12893_s9 + $0xc8] sm:$0xff]  }
0x1a59   : > { %9628 = vmatpush3.bf16.msra.mxu1 %v10968_v37  ;;  %v11008_v37 = vld [vmem:[%s12893_s9 + $0x148] sm:$0xff]  }
0x1a5a   : > { %9629 = vmatprep.subr.bf16.mxu1 %v10969_v38  ;;  %v11009_v38 = vld [vmem:[%s12893_s9 + $0x110] sm:$0xff]  }
0x1a5d   : > { %9630 = vmatpush3.bf16.msra.mxu1 %v10970_v39  ;;  %v11010_v39 = vld [vmem:[%s12893_s9 + $0xd0] sm:$0xff]  }
0x1a5e   : > { %9631 = vmatprep.subr.bf16.mxu1 %v10971_v40  ;;  %v11011_v40 = vld [vmem:[%s12893_s9 + $0x150] sm:$0xff]  }
0x1a61   : > { %9632 = vmatpush3.bf16.msra.mxu1 %v10972_v43  ;;  %v11012_v43 = vld [vmem:[%s12893_s9 + $0x118] sm:$0xff]  }
0x1a62   : > { %9633 = vmatprep.subr.bf16.mxu1 %v10973_v45  ;;  %v11013_v45 = vld [vmem:[%s12893_s9 + $0xd8] sm:$0xff]  }
0x1a65   : > { %9634 = vmatpush3.bf16.msra.mxu1 %v10974_v49  ;;  %v11014_v49 = vld [vmem:[%s12893_s9 + $0x158] sm:$0xff]  }
0x1a66   : > { %9635 = vmatprep.subr.bf16.mxu1 %v10975_v46  ;;  %v11015_v46 = vld [vmem:[%s12893_s9 + $0x120] sm:$0xff]  }
0x1a69   : > { %9636 = vmatpush3.bf16.msra.mxu1 %v10976_v47  ;;  %v11016_v47 = vld [vmem:[%s12893_s9 + $0xe0] sm:$0xff]  }
0x1a6a   : > { %9637 = vmatprep.subr.bf16.mxu1 %v10977_v51  ;;  %v11017_v51 = vld [vmem:[%s12893_s9 + $0x160] sm:$0xff]  }
0x1a6d   : > { %9638 = vmatpush3.bf16.msra.mxu1 %v10978_v52  ;;  %v11018_v52 = vld [vmem:[%s12893_s9 + $0x128] sm:$0xff]  }
0x1a6e   : > { %9645 = vmatprep.subr.bf16.mxu1 %v10979_v53  ;;  %v11019_v53 = vld [vmem:[%s12893_s9 + $0xe8] sm:$0xff]  }
0x1b23   : > { %v7053_v50 = vpop.f32.mrb[72].mxu1 }
0x1b24   : > { %v10024_v60 = vpop.f32.mrb[73].mxu1 }
0x1b25   : > { %v7056_v11 = vpop.f32.mrb[74].mxu1  ;;  %v11025_v60 = vld [vmem:[%s12893_s9 + $0xf8] sm:$0xff]  }
0x1b26   : > { %v7060_v61 = vpack.c.bf16 %v7056_v11, %v7053_v50  ;;  %v10025_v63 = vpop.f32.mrb[75].mxu1  ;;  %v11024_v50 = vld [vmem:[%s12893_s9 + $0x138] sm:$0xff]  }
0x1b27   : > { %v11026_v11 = vld [vmem:[%s12893_s9 + $0x178] sm:$0xff]   ;;  %v9037_v63 = vld [vmem:[#allocation2] ss:$0 sm:$0xff] }
0x1b28   : > { %7222 = vmatmul.mubr.bf16.vlgmr.msra.gmra.mrb[76].mxu1 %v7060_v61 }
0x1b29   : > { %9646 = vmatpush3.bf16.msra.mxu1 %v10980_v42 }
0x1b2a   : > { %9647 = vmatprep.subr.bf16.mxu1 %v10982_v1 }
0x1b2d   : > { %9648 = vmatpush3.bf16.msra.mxu1 %v10983_v3 }
0x1b2e   : > { %9649 = vmatprep.subr.bf16.mxu1 %v10985_v4 }
0x1b31   : > { %9650 = vmatpush3.bf16.msra.mxu1 %v10986_v5 }
0x1b32   : > { %9651 = vmatprep.subr.bf16.mxu1 %v10988_v6 }
0x1b35   : > { %9652 = vmatpush3.bf16.msra.mxu1 %v10989_v34 }
0x1b36   : > { %9653 = vmatprep.subr.bf16.mxu1 %v10991_v7 }
0x1b39   : > { %9654 = vmatpush3.bf16.msra.mxu1 %v10992_v36 }
0x1b3a   : > { %9655 = vmatprep.subr.bf16.mxu1 %v10994_v8  ;;  %v9062_v8 = vld [vmem:[#allocation2 + $0x3] ss:$0 sm:$0xff] }
0x1b3d   : > { %9656 = vmatpush3.bf16.msra.mxu1 %v10995_v9 }
0x1b3e   : > { %9657 = vmatprep.subr.bf16.mxu1 %v10997_v12 }
0x1b41   : > { %9658 = vmatpush3.bf16.msra.mxu1 %v10998_v2 }
0x1b42   : > { %9659 = vmatprep.subr.bf16.mxu1 %v11000_v55 }
0x1b45   : > { %9660 = vmatpush3.bf16.msra.mxu1 %v11001_v13 }
0x1b46   : > { %9676 = vmatprep.subr.bf16.mxu1 %v11003_v15 }
0x1bfb   : > { %v9639_v16 = vpop.f32.mrb[76].mxu1 }
0x1bfc   : > { %v9640_v18 = vpop.f32.mrb[77].mxu1 }
0x1bfd   : > { %v12674_v19 = vadd.f32 %v9640_v18, %v9639_v16  ;;  %v9642_v20 = vpop.f32.mrb[78].mxu1 }
0x1bfe   : > { %v9643_v21 = vpop.f32.mrb[79].mxu1 }
0x1bff   : > { %v12676_v22 = vadd.f32 %v9643_v21, %v9642_v20 }
0x1c01   : > { %v7278_v23 = vpack.c.bf16 %v12676_v22, %v12674_v19 }
0x1c03   : > { %v7280_v24 = vshrl.u32 %v7278_v23, 16  ;;  %7473 = vmatprep.mubr.bf16.mxu1 %v7278_v23  ;;  %v7283_v25 = vshll.u32 %v7278_v23, 16 }
0x1c05   : > { %v7282_v27 = vrot.slane %v7280_v24, 7  ;;  %v7288_v28 = vrot.slane %v7283_v25, 1 }
0x1c07   : > { %v7285_v29 = vor.u32 %v7283_v25, %v7282_v27  ;;  %v7289_v56 = vor.u32 %v7288_v28, %v7280_v24 }
0x1c09   : > { %v7287_v33 = vsel %vm12271_vm5, 0, %v7285_v29  ;;  %v7291_v17 = vsel %vm12276_vm6, %v7289_v56, 0  ;;  %v9111_v29 = vld [vmem:[#allocation2 + $0x1] ss:$0 sm:$0xff] }
0x1c0a   : > { %7474 = vmatmul.mubr.bf16.vlgmr.msra.gmra.mrb[80].mxu1 %v7287_v33  ;;  %10043 = vmatmul.mubr.bf16.vlgmr.msra.gmra.mrb[56].mxu0 %v7291_v17 }
0x1c0b   : > { %9677 = vmatpush3.bf16.msra.mxu1 %v11004_v59  ;;  %10047 = vmatpush3.bf16.msra.mxu0 %v11005_v31 }
0x1c0c   : > { %9678 = vmatprep.subr.bf16.mxu1 %v11006_v32  ;;  %10048 = vmatprep.subr.bf16.mxu0 %v11744_v0 }
0x1c0d   : > { %10062 = vmatprep.mubr.msk.bf16.mxu0 %vm11745_vm0, %v11744_v0 }
0x1c0f   : > { %9679 = vmatpush3.bf16.msra.mxu1 %v11007_v35  ;;  %10049 = vmatpush3.bf16.msra.mxu0 %v11008_v37 }
0x1c10   : > { %9680 = vmatprep.subr.bf16.mxu1 %v11009_v38  ;;  %10050 = vmatprep.subr.bf16.mxu0 %v11744_v0 }
0x1c13   : > { %9681 = vmatpush3.bf16.msra.mxu1 %v11010_v39  ;;  %10051 = vmatpush3.bf16.msra.mxu0 %v11011_v40 }
0x1c14   : > { %10052 = vmatprep.subr.bf16.mxu0 %v11744_v0  ;;  %9682 = vmatprep.subr.bf16.mxu1 %v11012_v43 }
0x1c17   : > { %9683 = vmatpush3.bf16.msra.mxu1 %v11013_v45  ;;  %10053 = vmatpush3.bf16.msra.mxu0 %v11014_v49 }
0x1c18   : > { %10054 = vmatprep.subr.bf16.mxu0 %v11744_v0  ;;  %9684 = vmatprep.subr.bf16.mxu1 %v11015_v46 }
0x1c1b   : > { %9685 = vmatpush3.bf16.msra.mxu1 %v11016_v47  ;;  %10055 = vmatpush3.bf16.msra.mxu0 %v11017_v51 }
0x1c1c   : > { %10056 = vmatprep.subr.bf16.mxu0 %v11744_v0  ;;  %9686 = vmatprep.subr.bf16.mxu1 %v11018_v52 }
0x1c1f   : > { %9687 = vmatpush3.bf16.msra.mxu1 %v11019_v53  ;;  %10057 = vmatpush3.bf16.msra.mxu0 %v11020_v54  ;;  %v7835_v53 = vld [vmem:[#allocation4] sm:$0x3] }
0x1c20   : > { %9688 = vmatprep.subr.bf16.mxu1 %v11021_v57  ;;  %10058 = vmatprep.subr.bf16.mxu0 %v11744_v0 }
0x1c23   : > { %9689 = vmatpush3.bf16.msra.mxu1 %v11022_v48  ;;  %10059 = vmatpush3.bf16.msra.mxu0 %v11023_v58  ;;  %v7840_v58 = vld [vmem:[%s12894_s0] sm:$0x3] }
0x1c24   : > { %10060 = vmatprep.subr.bf16.mxu0 %v11744_v0  ;;  %9690 = vmatprep.subr.bf16.mxu1 %v11024_v50 }
0x1c27   : > { %9691 = vmatpush3.bf16.msra.mxu1 %v11025_v60  ;;  %10061 = vmatpush3.bf16.msra.mxu0 %v11026_v11 }
0x1c28   : > { %10066 = vmatprep.subr.bf16.mxu0 %v11744_v0 }
0x1cdd   : > { %v9661_v42 = vpop.f32.mrb[80].mxu1  ;;  %v7516_v61 = vpop.f32.mrb[56].mxu0 }
0x1cde   : > { %v9662_v1 = vpop.f32.mrb[81].mxu1  ;;  %v10044_v3 = vpop.f32.mrb[57].mxu0 }
0x1cdf   : > { %v9663_v4 = vadd.f32 %v9662_v1, %v9661_v42  ;;  %v9664_v5 = vpop.f32.mrb[82].mxu1  ;;  %v7519_v6 = vpop.f32.mrb[58].mxu0  ;;  %v11027_v42 = vld [vmem:[%s12893_s9 + $0x1c0] sm:$0xff]   ;;  %v11030_v1 = vld [vmem:[%s12893_s9 + $0x1c8] sm:$0xff]  }
0x1ce0   : > { %v9665_v34 = vpop.f32.mrb[83].mxu1  ;;  %v10045_v7 = vpop.f32.mrb[59].mxu0  ;;  %9707 = vmatprep.subr.bf16.mxu1 %v11027_v42  ;;  %v11031_v3 = vld [vmem:[%s12893_s9 + $0x188] sm:$0xff]  }
0x1ce1   : > { %v7476_v36 = vadd.f32 %v9663_v4, %v9037_v63  ;;  %v9666_v44 = vadd.f32 %v9665_v34, %v9664_v5  ;;  %v11032_v4 = vld [vmem:[%s12893_s9 + $0x208] sm:$0xff]   ;;  %v11033_v5 = vld [vmem:[%s12893_s9 + $0x1d0] sm:$0xff]   ;;  %v11036_v7 = vld [vmem:[%s12893_s9 + $0x1d8] sm:$0xff]  }
0x1ce2   : > { %v11035_v34 = vld [vmem:[%s12893_s9 + $0x210] sm:$0xff]  }
0x1ce3   : > { %v7517_v9 = vadd.f32 %v7516_v61, %v7476_v36  ;;  %v7479_v10 = vadd.f32 %v9666_v44, %v9037_v63  ;;  %v11028_v61 = vld [vmem:[%s12893_s9 + $0x180] sm:$0xff]   ;;  %v11037_v36 = vld [vmem:[%s12893_s9 + $0x198] sm:$0xff]  }
0x1ce4   : > { %v11029_v63 = vld [vmem:[%s12893_s9 + $0x200] sm:$0xff]   ;;  %v11038_v44 = vld [vmem:[%s12893_s9 + $0x218] sm:$0xff]  }
0x1ce5   : > { %v7530_v12 = vmul.f32 %v9062_v8, %v7517_v9  ;;  %v7520_v2 = vadd.f32 %v7519_v6, %v7479_v10  ;;  %vm7523_vm8 = vcmp.ge.f32.partialorder %v7517_v9, 0.0  ;;  %v11034_v6 = vld [vmem:[%s12893_s9 + $0x190] sm:$0xff]   ;;  %v11041_v10 = vld [vmem:[%s12893_s9 + $0x220] sm:$0xff]  }
0x1ce7   : > { %v7531_v62 = vmul.f32 %v9062_v8, %v7520_v2  ;;  %vm7524_vm10 = vcmp.ge.f32.partialorder %v7520_v2, 0.0  ;;  %v7532_v55 = vsel %vm7523_vm8, %v7517_v9, %v7530_v12  ;;  %v11039_v8 = vld [vmem:[%s12893_s9 + $0x1e0] sm:$0xff]   ;;  %v11042_v12 = vld [vmem:[%s12893_s9 + $0x1e8] sm:$0xff]  }
0x1ce8   : > { %v11040_v9 = vld [vmem:[%s12893_s9 + $0x1a0] sm:$0xff]  }
0x1ce9   : > { %v7533_v13 = vsel %vm7524_vm10, %v7520_v2, %v7531_v62  ;;  %v11043_v2 = vld [vmem:[%s12893_s9 + $0x1a8] sm:$0xff]  }
0x1cea   : > { %v7583_v14 = vpack.c.bf16 %v7533_v13, %v7532_v55  ;;  %v11044_v62 = vld [vmem:[%s12893_s9 + $0x228] sm:$0xff]   ;;  %v11045_v55 = vld [vmem:[%s12893_s9 + $0x1f0] sm:$0xff]  }
0x1ceb   : > { %v11046_v13 = vld [vmem:[%s12893_s9 + $0x1b0] sm:$0xff]  }
0x1cec   : > { %v7585_v15 = vshrl.u32 %v7583_v14, 16  ;;  %7778 = vmatprep.mubr.bf16.mxu1 %v7583_v14  ;;  %v7588_v16 = vshll.u32 %v7583_v14, 16  ;;  %v11047_v14 = vld [vmem:[%s12893_s9 + $0x230] sm:$0xff]  }
0x1cee   : > { %v7587_v18 = vrot.slane %v7585_v15, 7  ;;  %v7593_v20 = vrot.slane %v7588_v16, 1 }
0x1cf0   : > { %v7590_v21 = vor.u32 %v7588_v16, %v7587_v18  ;;  %v7594_v23 = vor.u32 %v7593_v20, %v7585_v15  ;;  %v11048_v15 = vld [vmem:[%s12893_s9 + $0x1f8] sm:$0xff]   ;;  %v7844_v20 = vld [vmem:[#allocation4 + $0x2] sm:$0x3] }
0x1cf1   : > { %v11049_v16 = vld [vmem:[%s12893_s9 + $0x1b8] sm:$0xff]  }
0x1cf2   : > { %v7592_v24 = vsel %vm12271_vm5, 0, %v7590_v21  ;;  %v7596_v25 = vsel %vm12276_vm6, %v7594_v23, 0  ;;  %v11050_v18 = vld [vmem:[%s12893_s9 + $0x238] sm:$0xff]  }
0x1cf3   : > { %7779 = vmatmul.mubr.bf16.vlgmr.msra.gmra.mrb[84].mxu1 %v7592_v24  ;;  %10063 = vmatmul.mubr.bf16.vlgmr.msra.gmra.mrb[60].mxu0 %v7596_v25 }
0x1cf4   : > { %10082 = vmatprep.mubr.msk.bf16.mxu0 %vm11745_vm0, %v11744_v0  ;;  %9708 = vmatpush3.bf16.msra.mxu1 %v11028_v61 }
0x1cf5   : > { %10067 = vmatpush3.bf16.msra.mxu0 %v11029_v63  ;;  %9709 = vmatprep.subr.bf16.mxu1 %v11030_v1 }
0x1cf6   : > { %10068 = vmatprep.subr.bf16.mxu0 %v11744_v0 }
0x1cf8   : > { %9710 = vmatpush3.bf16.msra.mxu1 %v11031_v3 }
0x1cf9   : > { %10069 = vmatpush3.bf16.msra.mxu0 %v11032_v4  ;;  %9711 = vmatprep.subr.bf16.mxu1 %v11033_v5  ;;  %v11073_v4 = vld [vmem:[%s12264_s7] sm:$0xff] }
0x1cfa   : > { %10070 = vmatprep.subr.bf16.mxu0 %v11744_v0 }
0x1cfc   : > { %9712 = vmatpush3.bf16.msra.mxu1 %v11034_v6 }
0x1cfd   : > { %10071 = vmatpush3.bf16.msra.mxu0 %v11035_v34  ;;  %9713 = vmatprep.subr.bf16.mxu1 %v11036_v7  ;;  %v11074_v34 = vld [vmem:[%s12264_s7 + $0x8] sm:$0xff] }
0x1cfe   : > { %10072 = vmatprep.subr.bf16.mxu0 %v11744_v0 }
0x1d00   : > { %9714 = vmatpush3.bf16.msra.mxu1 %v11037_v36 }
0x1d01   : > { %10073 = vmatpush3.bf16.msra.mxu0 %v11038_v44  ;;  %9715 = vmatprep.subr.bf16.mxu1 %v11039_v8 }
0x1d02   : > { %10074 = vmatprep.subr.bf16.mxu0 %v11744_v0 }
0x1d04   : > { %9716 = vmatpush3.bf16.msra.mxu1 %v11040_v9 }
0x1d05   : > { %10075 = vmatpush3.bf16.msra.mxu0 %v11041_v10  ;;  %9717 = vmatprep.subr.bf16.mxu1 %v11042_v12 }
0x1d06   : > { %10076 = vmatprep.subr.bf16.mxu0 %v11744_v0 }
0x1d08   : > { %9718 = vmatpush3.bf16.msra.mxu1 %v11043_v2 }
0x1d09   : > { %10077 = vmatpush3.bf16.msra.mxu0 %v11044_v62  ;;  %9719 = vmatprep.subr.bf16.mxu1 %v11045_v55 }
0x1d0a   : > { %10078 = vmatprep.subr.bf16.mxu0 %v11744_v0 }
0x1d0c   : > { %9720 = vmatpush3.bf16.msra.mxu1 %v11046_v13 }
0x1d0d   : > { %10079 = vmatpush3.bf16.msra.mxu0 %v11047_v14  ;;  %9721 = vmatprep.subr.bf16.mxu1 %v11048_v15 }
0x1d0e   : > { %10080 = vmatprep.subr.bf16.mxu0 %v11744_v0 }
0x1d10   : > { %9722 = vmatpush3.bf16.msra.mxu1 %v11049_v16 }
0x1d11   : > { %10081 = vmatpush3.bf16.msra.mxu0 %v11050_v18 }
0x1dc6   : > { %v9692_v27 = vpop.f32.mrb[84].mxu1  ;;  %v7821_v28 = vpop.f32.mrb[60].mxu0 }
0x1dc7   : > { %v9693_v56 = vpop.f32.mrb[85].mxu1  ;;  %v10064_v59 = vpop.f32.mrb[61].mxu0 }
0x1dc8   : > { %v9694_v31 = vadd.f32 %v9693_v56, %v9692_v27  ;;  %v9695_v32 = vpop.f32.mrb[86].mxu1  ;;  %v7824_v33 = vpop.f32.mrb[62].mxu0  ;;  %v7858_v59 = vld [vmem:[#allocation2 + $0x2] sm:$0x1] }
0x1dc9   : > { %v9696_v17 = vpop.f32.mrb[87].mxu1  ;;  %v10065_v35 = vpop.f32.mrb[63].mxu0 }
0x1dca   : > { %v7781_v37 = vadd.f32 %v9694_v31, %v9111_v29  ;;  %v9697_v38 = vadd.f32 %v9696_v17, %v9695_v32 }
0x1dcc   : > { %v12723_v39 = vadd.f32 %v7821_v28, %v7781_v37  ;;  %v7784_v40 = vadd.f32 %v9697_v38, %v9111_v29 }
0x1dce   : > { %v12725_v43 = vadd.f32 %v7824_v33, %v7784_v40 }
0x1dd0   : > { %v7828_v45 = vadd.f32 %v12725_v43, %v12723_v39 }
0x1dd2   : > { %v7829_v49 = vrot.slane %v7828_v45, 4 }
0x1dd4   : > { %v7830_v46 = vadd.f32 %v7829_v49, %v7828_v45 }
0x1dd6   : > { %v7831_v47 = vrot.slane %v7830_v46, 2 }
0x1dd8   : > { %v7832_v51 = vadd.f32 %v7831_v47, %v7830_v46 }
0x1dda   : > { %v7833_v52 = vrot.slane %v7832_v51, 1 }
0x1ddc   : > { %v7834_v54 = vadd.f32 %v7833_v52, %v7832_v51 }
0x1dde   : > { %v7836_v57 = vmul.f32 %v7835_v53, %v7834_v54 }
0x1de0   : > { %v7837_v48 = vsel %vm1856_vm9, %v7836_v57, 0.0 }
0x1de1   : > { %7838 = vadd.xlane.f32.xlu1 %v7837_v48 }
0x1e6e   : > { %v7839_v50 = vpop.xlane.xlu1 %7838 }
0x1e6f   : > { %v7841_v60 = vadd.f32 %v7840_v58, %v7839_v50 }
0x1e71   : > { %v7842_v11 = vmax.f32 %v7841_v60, 0.0 }
0x1e73   : > { %7847 = vperm.xlu0 %10367, %v7842_v11  }
0x1ef2   : > { %v7848_v21 = vpop.permute.xlu0 %7847 }
0x1ef3   : > { %v7850_v23 = vmul.f32 %v7848_v21, %v7844_v20 }
0x1ef5   : > { %v7851_v24 = vsel %vm1856_vm9, %v7850_v23, 0.0 }
0x1ef6   : > { %v7852_v25 = vrot.slane %v7851_v24, 4 }
0x1ef8   : > { %v7853_v27 = vadd.f32 %v7852_v25, %v7851_v24 }
0x1efa   : > { %v7854_v28 = vrot.slane %v7853_v27, 2 }
0x1efc   : > { %v7855_v29 = vadd.f32 %v7854_v28, %v7853_v27 }
0x1efe   : > { %v7856_v56 = vrot.slane %v7855_v29, 1 }
0x1f00   : > { %v7857_v31 = vadd.f32 %v7856_v56, %v7855_v29 }
0x1f02   : > { %v7859_v32 = vadd.f32 %v7858_v59, %v7857_v31 }
0x1f04   : > { %v9136_v33 = vmul.f32 -1.442695, %v7859_v32 }
0x1f06   : > { %11067 = vpow2.f32 %v9136_v33 }
0x1f10   : > { %v11068_v17 = vpop.eup %11067 }
0x1f11   : > { %v7863_v0 = vadd.f32 1.0, %v11068_v17 }
0x1f13   : > { %11069 = vrcp.f32 %v7863_v0 }
0x1f1d   : > { %v11070_v35 = vpop.eup %11069 }
0x1f1e   : > { %v7869_v37 = vrot.slane %v11070_v35, %v12321_v41 }
0x1f20   : > { %v7870_v38 = vmul.f32 %v7869_v37, %v12723_v39  ;;  %v7871_v40 = vmul.f32 %v7869_v37, %v12725_v43 }
0x1f22   : > { %v7872_v45 = vadd.f32 %v12674_v19, %v7870_v38  ;;  %v7873_v49 = vadd.f32 %v12676_v22, %v7871_v40 }
0x1f24   : > { %v7923_v46 = vpack.c.bf16 %v7873_v49, %v7872_v45 }
0x1f26   : > { %v7925_v47 = vshrl.u32 %v7923_v46, 16  ;;  %8113 = vmatprep.mubr.bf16.mxu1 %v7923_v46  ;;  %v7928_v51 = vshll.u32 %v7923_v46, 16 }
0x1f28   : > { %v7927_v52 = vrot.slane %v7925_v47, 7  ;;  %v7933_v53 = vrot.slane %v7928_v51, 1 }
0x1f2a   : > { %v7930_v54 = vor.u32 %v7928_v51, %v7927_v52  ;;  %v7934_v57 = vor.u32 %v7933_v53, %v7925_v47 }
0x1f2c   : > { %v7932_v48 = vsel %vm12271_vm5, 0, %v7930_v54  ;;  %v7936_v41 = vsel %vm12276_vm6, %v7934_v57, 0 }
0x1f2d   : > { %8114 = vmatmul.mubr.bf16.vlgmr.msra.gmra.mrb[88].mxu1 %v7932_v48  ;;  %10083 = vmatmul.mubr.bf16.vlgmr.msra.gmra.mrb[64].mxu0 %v7936_v41 }
0x2000   : > { %v9723_v39 = vpop.f32.mrb[88].mxu1  ;;  %v8156_v43 = vpop.f32.mrb[64].mxu0 }
0x2001   : > { %v9724_v58 = vpop.f32.mrb[89].mxu1  ;;  %v10084_v50 = vpop.f32.mrb[65].mxu0 }
0x2002   : > { %v9725_v60 = vadd.f32 %v9724_v58, %v9723_v39  ;;  %v9726_v11 = vpop.f32.mrb[90].mxu1  ;;  %v8159_v42 = vpop.f32.mrb[66].mxu0 }
0x2003   : > { %v9727_v61 = vpop.f32.mrb[91].mxu1  ;;  %v10085_v63 = vpop.f32.mrb[67].mxu0 }
0x2004   : > { %v8116_v26 = vadd.f32 %v9725_v60, %v12674_v19  ;;  %v9728_v1 = vadd.f32 %v9727_v61, %v9726_v11 }
0x2006   : > { %v8157_v30 = vadd.f32 %v8156_v43, %v8116_v26  ;;  %v8119_v3 = vadd.f32 %v9728_v1, %v12676_v22 }
0x2008   : > { %v8163_v5 = vadd.f32 %v11073_v4, %v8157_v30  ;;  %v8160_v6 = vadd.f32 %v8159_v42, %v8119_v3 }
0x200a   : > { %8165 = vst [vmem:[%s1239_s4] sm:$0xff] %v8163_v5  ;;  %v8164_v7 = vadd.f32 %v11074_v34, %v8160_v6 }
0x200c   : > { %8166 = vst [vmem:[%s1239_s4 + $0x8] sm:$0xff] %v8164_v7 }
0x200d PF: > { %s84_s22 = sadd.s32 1, %s11685_s22  }
0x200e   : > { %p81_p13 = scmp.ge.s32.totalorder %s84_s22, 4  }
0x2010   :  { %83 = sbr.rel (!%p81_p13) target bundleno = 66 (0x42), region = 305 }
0x2017   :  { %8188 = vsyncpa [#allocation3], 1 }
0x2018   :  { %8190 = vsyncpa [#allocation3 + $0x1], 1 }
0x2019   :  { %8191 = vsyncpa [#allocation5], 1 }
0x201a   :  { %8192 = vsyncpa [#allocation8], 1 }
0x201b   :  { %8193 = vsyncpa [#allocation11], 1 }
0x201c   :  { %8194 = vsyncpa [#allocation14], 1 }
0x201d   :  { %8195 = vsyncpa [#allocation17], 1 }
0x201e   :  { %8196 = vsyncpa [#allocation20], 1 }
0x201f   :  { %8197 = vsyncpa [#allocation23], 1 }
0x2020   :  { %8198 = vsyncpa [#allocation26], 1 }
0x2021   :  { %8199 = vsyncpa [#allocation29], 1 }
0x2022   :  { %8200 = vsyncpa [#allocation32], 1 }

</bundles_post_ra>
